<compile_context>
chip_gen: v7x
topology: tpu7x:2x2x1
jax: 0.10.0
libtpu: 0.0.40
codegen_flags: <defaults>
</compile_context>

<pallas_src>
import functools

import jax
import jax.numpy as jnp
from jax.experimental import pallas as pl
from jax.experimental.pallas import tpu as pltpu
import numpy as np


def _sigmoid(x):
    return 1.0 / (1.0 + jnp.exp(-x))


def _elu(x):
    # min() keeps the unselected branch from overflowing for large positive x.
    return jnp.where(x > 0.0, x, jnp.exp(jnp.minimum(x, 0.0)) - 1.0)


def lstm_ode_kernel(x_ref,                                   # (T*Bp, D) time-major, flat
                    wih_ref,                                 # (D, 4H)
                    whh_i_ref, whh_f_ref, whh_g_ref, whh_o_ref,   # (H, H) each
                    b_i_ref, b_f_ref, b_g_ref, b_o_ref,           # (1, H) each (b_ih+b_hh)
                    w1_ref, b1_ref, w2_ref, b2_ref, w3_ref, b3_ref,     # latent ODE func
                    wd1_ref, bd1_ref, wd2_ref, bd2_ref,      # MLP decoder
                    out_ref,                                 # (n_times*Bp, D)
                    *, T, Bp, n_times):
    H = whh_i_ref.shape[0]

    # ---- hoist all weight / bias loads once (reused across every step) ----
    whh_i = whh_i_ref[...]
    whh_f = whh_f_ref[...]
    whh_g = whh_g_ref[...]
    whh_o = whh_o_ref[...]
    w1 = w1_ref[...]; b1 = b1_ref[...]
    w2 = w2_ref[...]; b2 = b2_ref[...]
    w3 = w3_ref[...]; b3 = b3_ref[...]
    wd1 = wd1_ref[...]; bd1 = bd1_ref[...]
    wd2 = wd2_ref[...]; bd2 = bd2_ref[...]

    # ---- hoisted LSTM input projection: one batched MXU call ----
    xg = jnp.dot(x_ref[...], wih_ref[...],
                 preferred_element_type=jnp.float32)         # (T*Bp, 4H)
    # One-time per-gate split (+ fused bias); recurrence below is lane-0 aligned.
    xg_i = xg[:, 0 * H:1 * H] + b_i_ref[...]
    xg_f = xg[:, 1 * H:2 * H] + b_f_ref[...]
    xg_g = xg[:, 2 * H:3 * H] + b_g_ref[...]
    xg_o = xg[:, 3 * H:4 * H] + b_o_ref[...]

    # ---- LSTM recurrence: fully unrolled (T static & small), per-gate matmuls ----
    h = jnp.zeros((Bp, H), jnp.float32)
    c = jnp.zeros((Bp, H), jnp.float32)
    for t in range(T):
        lo = t * Bp
        i_g = _sigmoid(xg_i[lo:lo + Bp]
                       + jnp.dot(h, whh_i, preferred_element_type=jnp.float32))
        f_g = _sigmoid(xg_f[lo:lo + Bp]
                       + jnp.dot(h, whh_f, preferred_element_type=jnp.float32))
        g_g = jnp.tanh(xg_g[lo:lo + Bp]
                       + jnp.dot(h, whh_g, preferred_element_type=jnp.float32))
        o_g = _sigmoid(xg_o[lo:lo + Bp]
                       + jnp.dot(h, whh_o, preferred_element_type=jnp.float32))
        c = f_g * c + i_g * g_g
        h = o_g * jnp.tanh(c)

    z = c                                                    # ODE initial state (Bp, H)

    # ---- latent ODE function (weights already hoisted) ----
    def ode_f(zz):
        o = _elu(jnp.dot(zz, w1, preferred_element_type=jnp.float32) + b1)
        o = _elu(jnp.dot(o, w2, preferred_element_type=jnp.float32) + b2)
        return jnp.dot(o, w3, preferred_element_type=jnp.float32) + b3

    dt = 5.0 / 60.0                     # spacing of time_steps = [5/60*i for i in range(5)]
    zs = [z]
    for _ in range(n_times - 1):
        k1 = ode_f(z)
        k2 = ode_f(z + (0.5 * dt) * k1)
        k3 = ode_f(z + (0.5 * dt) * k2)
        k4 = ode_f(z + dt * k3)
        z = z + (dt / 6.0) * (k1 + 2.0 * k2 + 2.0 * k3 + k4)
        zs.append(z)

    # ---- batched MLP decoder: one pass over all time points, single store ----
    z_all = jnp.concatenate(zs, axis=0)                      # (n_times*Bp, H)
    hid = jnp.maximum(jnp.dot(z_all, wd1, preferred_element_type=jnp.float32) + bd1, 0.0)
    y = jnp.dot(hid, wd2, preferred_element_type=jnp.float32) + bd2
    out_ref[...] = y.astype(out_ref.dtype)


def lstm_ode_forward(params, inputs, targets=None, target_len=None, n_times=5):
    """inputs: (B, T, D) float32 (PyTorch batch_first). Returns (B, n_times, D)."""
    B, T, D = inputs.shape
    Bp = max(8, ((B + 7) // 8) * 8)     # pad batch to f32 sublane multiple

    x = jnp.transpose(inputs.astype(jnp.float32), (1, 0, 2))      # (T, B, D) time-major
    if Bp != B:
        x = jnp.pad(x, ((0, 0), (0, Bp - B), (0, 0)))
    x2d = x.reshape(T * Bp, D)

    args = (x2d,
            params["wih_t"],
            params["whh_i_t"], params["whh_f_t"], params["whh_g_t"], params["whh_o_t"],
            params["b_i"], params["b_f"], params["b_g"], params["b_o"],
            params["w1_t"], params["b1"], params["w2_t"], params["b2"],
            params["w3_t"], params["b3"],
            params["wd1_t"], params["bd1"], params["wd2_t"], params["bd2"])

    vmem = pl.BlockSpec(memory_space=pltpu.MemorySpace.VMEM)
    kernel = functools.partial(lstm_ode_kernel, T=T, Bp=Bp, n_times=n_times)
    out2d = pl.pallas_call(
        kernel,
        out_shape=jax.ShapeDtypeStruct((n_times * Bp, D), jnp.float32),
        in_specs=[vmem] * len(args),
        out_specs=vmem,
    )(*args)

    out = out2d.reshape(n_times, Bp, D)[:, :B]                    # drop batch padding
    return jnp.transpose(out, (1, 0, 2))                          # (B, n_times, D)


# ---------------- deterministic parameter construction ----------------
def init_params(key, input_size, hidden_size):
    D, H = input_size, hidden_size
    NH = 2 * H  # nhidden of the ODE func / decoder

    def uni(k, shape, fan_in):
        bound = 1.0 / np.sqrt(fan_in)
        return jax.random.uniform(k, shape, jnp.float32, -bound, bound)

    keys = jax.random.split(key, 14)
    # nn.LSTM(input_size=D, hidden_size=H): weight_ih (4H, D), weight_hh (4H, H)
    w_ih = uni(keys[0], (4 * H, D), H)
    w_hh = uni(keys[1], (4 * H, H), H)
    b_ih = uni(keys[2], (4 * H,), H)
    b_hh = uni(keys[3], (4 * H,), H)
    # latent_odefunc: fc1 (NH, H), fc2 (NH, NH), fc3 (H, NH)
    w1 = uni(keys[4], (NH, H), H)
    b1 = uni(keys[5], (NH,), H)
    w2 = uni(keys[6], (NH, NH), NH)
    b2 = uni(keys[7], (NH,), NH)
    w3 = uni(keys[8], (H, NH), NH)
    b3 = uni(keys[9], (H,), NH)
    # mlp_decoder: fc1 (NH, H), fc2 (D, NH)
    wd1 = uni(keys[10], (NH, H), H)
    bd1 = uni(keys[11], (NH,), H)
    wd2 = uni(keys[12], (D, NH), NH)
    bd2 = uni(keys[13], (D,), NH)

    b = b_ih + b_hh                              # combined bias (opt: done host-side)

    def gate_t(m, g):                            # (4H, X) rows -> transposed (X, H)
        return jnp.asarray(m[g * H:(g + 1) * H].T)

    return {
        "wih_t": jnp.asarray(w_ih.T),            # (D, 4H), gate order i,f,g,o
        "whh_i_t": gate_t(w_hh, 0), "whh_f_t": gate_t(w_hh, 1),
        "whh_g_t": gate_t(w_hh, 2), "whh_o_t": gate_t(w_hh, 3),
        "b_i": b[0 * H:1 * H].reshape(1, H), "b_f": b[1 * H:2 * H].reshape(1, H),
        "b_g": b[2 * H:3 * H].reshape(1, H), "b_o": b[3 * H:4 * H].reshape(1, H),
        "w1_t": w1.T, "b1": b1.reshape(1, -1),
        "w2_t": w2.T, "b2": b2.reshape(1, -1),
        "w3_t": w3.T, "b3": b3.reshape(1, -1),
        "wd1_t": wd1.T, "bd1": bd1.reshape(1, -1),
        "wd2_t": wd2.T, "bd2": bd2.reshape(1, -1),
    }


# ---------------- pure-JAX reference (for self-check) ----------------
def reference_forward(params, inputs, n_times=5):
    x = inputs.astype(jnp.float32)
    B, T, D = x.shape
    H = params["whh_i_t"].shape[0]
    h = jnp.zeros((B, H), jnp.float32)
    c = jnp.zeros((B, H), jnp.float32)
    for t in range(T):
        xg = x[:, t, :] @ params["wih_t"]
        i_g = _sigmoid(xg[:, 0 * H:1 * H] + params["b_i"] + h @ params["whh_i_t"])
        f_g = _sigmoid(xg[:, 1 * H:2 * H] + params["b_f"] + h @ params["whh_f_t"])
        g_g = jnp.tanh(xg[:, 2 * H:3 * H] + params["b_g"] + h @ params["whh_g_t"])
        o_g = _sigmoid(xg[:, 3 * H:4 * H] + params["b_o"] + h @ params["whh_o_t"])
        c = f_g * c + i_g * g_g
        h = o_g * jnp.tanh(c)

    def f(z):
        o = _elu(z @ params["w1_t"] + params["b1"])
        o = _elu(o @ params["w2_t"] + params["b2"])
        return o @ params["w3_t"] + params["b3"]

    def dec(z):
        o = jnp.maximum(z @ params["wd1_t"] + params["bd1"], 0.0)
        return o @ params["wd2_t"] + params["bd2"]

    dt = 5.0 / 60.0
    z = c
    outs = [dec(z)]
    for _ in range(n_times - 1):
        k1 = f(z); k2 = f(z + 0.5 * dt * k1); k3 = f(z + 0.5 * dt * k2); k4 = f(z + dt * k3)
        z = z + (dt / 6.0) * (k1 + 2.0 * k2 + 2.0 * k3 + k4)
        outs.append(dec(z))
    return jnp.stack(outs, axis=1)               # (B, n_times, D)


if __name__ == "__main__":
    B, T, D, H = 2, 8, 16, 32
    key = jax.random.PRNGKey(0)
    k_param, k_in, k_tgt = jax.random.split(key, 3)

    params = init_params(k_param, input_size=D, hidden_size=H)
    inputs = jax.random.normal(k_in, (B, T, D), jnp.float32)
    targets = jax.random.normal(k_tgt, (B, 5, D), jnp.float32)   # unused by forward
    target_len = 5                                               # unused by forward

    out = lstm_ode_forward(params, inputs, targets, target_len)
    out = jax.block_until_ready(out)

    ref = jax.block_until_ready(reference_forward(params, inputs))
    assert out.shape == (B, 5, D), out.shape
    np.testing.assert_allclose(np.asarray(out), np.asarray(ref), rtol=1e-4, atol=1e-4)
    print("KERNEL_OK")
</pallas_src>

<mosaic_0001>
module attributes {stable_mosaic.version = 11 : i64} {
  func.func @lstm_ode_kernel(%arg0: memref<64x16xf32, #tpu.memory_space<vmem>>, %arg1: memref<16x128xf32, #tpu.memory_space<vmem>>, %arg2: memref<32x32xf32, #tpu.memory_space<vmem>>, %arg3: memref<32x32xf32, #tpu.memory_space<vmem>>, %arg4: memref<32x32xf32, #tpu.memory_space<vmem>>, %arg5: memref<32x32xf32, #tpu.memory_space<vmem>>, %arg6: memref<1x32xf32, #tpu.memory_space<vmem>>, %arg7: memref<1x32xf32, #tpu.memory_space<vmem>>, %arg8: memref<1x32xf32, #tpu.memory_space<vmem>>, %arg9: memref<1x32xf32, #tpu.memory_space<vmem>>, %arg10: memref<32x64xf32, #tpu.memory_space<vmem>>, %arg11: memref<1x64xf32, #tpu.memory_space<vmem>>, %arg12: memref<64x64xf32, #tpu.memory_space<vmem>>, %arg13: memref<1x64xf32, #tpu.memory_space<vmem>>, %arg14: memref<64x32xf32, #tpu.memory_space<vmem>>, %arg15: memref<1x32xf32, #tpu.memory_space<vmem>>, %arg16: memref<32x64xf32, #tpu.memory_space<vmem>>, %arg17: memref<1x64xf32, #tpu.memory_space<vmem>>, %arg18: memref<64x16xf32, #tpu.memory_space<vmem>>, %arg19: memref<1x16xf32, #tpu.memory_space<vmem>>, %arg20: memref<40x16xf32, #tpu.memory_space<vmem>>) attributes {dimension_semantics = [], scalar_prefetch = 0 : i64, scratch_operands = 0 : i64, tpu.core_type = #tpu.core_type<tc>} {
    %c0 = arith.constant 0 : index
    %c0_0 = arith.constant 0 : index
    %0 = vector.load %arg2[%c0, %c0_0] : memref<32x32xf32, #tpu.memory_space<vmem>>, vector<32x32xf32>
    %c0_1 = arith.constant 0 : index
    %c0_2 = arith.constant 0 : index
    %1 = vector.load %arg3[%c0_1, %c0_2] : memref<32x32xf32, #tpu.memory_space<vmem>>, vector<32x32xf32>
    %c0_3 = arith.constant 0 : index
    %c0_4 = arith.constant 0 : index
    %2 = vector.load %arg4[%c0_3, %c0_4] : memref<32x32xf32, #tpu.memory_space<vmem>>, vector<32x32xf32>
    %c0_5 = arith.constant 0 : index
    %c0_6 = arith.constant 0 : index
    %3 = vector.load %arg5[%c0_5, %c0_6] : memref<32x32xf32, #tpu.memory_space<vmem>>, vector<32x32xf32>
    %c0_7 = arith.constant 0 : index
    %c0_8 = arith.constant 0 : index
    %4 = vector.load %arg10[%c0_7, %c0_8] : memref<32x64xf32, #tpu.memory_space<vmem>>, vector<32x64xf32>
    %c0_9 = arith.constant 0 : index
    %c0_10 = arith.constant 0 : index
    %5 = vector.load %arg11[%c0_9, %c0_10] : memref<1x64xf32, #tpu.memory_space<vmem>>, vector<1x64xf32>
    %c0_11 = arith.constant 0 : index
    %c0_12 = arith.constant 0 : index
    %6 = vector.load %arg12[%c0_11, %c0_12] : memref<64x64xf32, #tpu.memory_space<vmem>>, vector<64x64xf32>
    %c0_13 = arith.constant 0 : index
    %c0_14 = arith.constant 0 : index
    %7 = vector.load %arg13[%c0_13, %c0_14] : memref<1x64xf32, #tpu.memory_space<vmem>>, vector<1x64xf32>
    %c0_15 = arith.constant 0 : index
    %c0_16 = arith.constant 0 : index
    %8 = vector.load %arg14[%c0_15, %c0_16] : memref<64x32xf32, #tpu.memory_space<vmem>>, vector<64x32xf32>
    %c0_17 = arith.constant 0 : index
    %c0_18 = arith.constant 0 : index
    %9 = vector.load %arg15[%c0_17, %c0_18] : memref<1x32xf32, #tpu.memory_space<vmem>>, vector<1x32xf32>
    %c0_19 = arith.constant 0 : index
    %c0_20 = arith.constant 0 : index
    %10 = vector.load %arg16[%c0_19, %c0_20] : memref<32x64xf32, #tpu.memory_space<vmem>>, vector<32x64xf32>
    %c0_21 = arith.constant 0 : index
    %c0_22 = arith.constant 0 : index
    %11 = vector.load %arg17[%c0_21, %c0_22] : memref<1x64xf32, #tpu.memory_space<vmem>>, vector<1x64xf32>
    %c0_23 = arith.constant 0 : index
    %c0_24 = arith.constant 0 : index
    %12 = vector.load %arg18[%c0_23, %c0_24] : memref<64x16xf32, #tpu.memory_space<vmem>>, vector<64x16xf32>
    %c0_25 = arith.constant 0 : index
    %c0_26 = arith.constant 0 : index
    %13 = vector.load %arg19[%c0_25, %c0_26] : memref<1x16xf32, #tpu.memory_space<vmem>>, vector<1x16xf32>
    %c0_27 = arith.constant 0 : index
    %c0_28 = arith.constant 0 : index
    %14 = vector.load %arg0[%c0_27, %c0_28] : memref<64x16xf32, #tpu.memory_space<vmem>>, vector<64x16xf32>
    %c0_29 = arith.constant 0 : index
    %c0_30 = arith.constant 0 : index
    %15 = vector.load %arg1[%c0_29, %c0_30] : memref<16x128xf32, #tpu.memory_space<vmem>>, vector<16x128xf32>
    %cst = arith.constant dense<0.000000e+00> : vector<64x128xf32>
    %16 = tpu.matmul %14, %15, %cst {dimension_numbers = #tpu.dot_dimension_numbers<[1], [0], [0], [1], [0, 0, 1, 1], [], []>} : vector<64x16xf32>, vector<16x128xf32>, vector<64x128xf32> -> vector<64x128xf32>
    %17 = vector.extract_strided_slice %16 {offsets = [0, 0], sizes = [64, 32], strides = [1, 1]} : vector<64x128xf32> to vector<64x32xf32>
    %c0_31 = arith.constant 0 : index
    %c0_32 = arith.constant 0 : index
    %18 = vector.load %arg6[%c0_31, %c0_32] : memref<1x32xf32, #tpu.memory_space<vmem>>, vector<1x32xf32>
    %19 = vector.broadcast %18 : vector<1x32xf32> to vector<64x32xf32>
    %20 = arith.addf %17, %19 : vector<64x32xf32>
    %21 = vector.extract_strided_slice %16 {offsets = [0, 32], sizes = [64, 32], strides = [1, 1]} : vector<64x128xf32> to vector<64x32xf32>
    %c0_33 = arith.constant 0 : index
    %c0_34 = arith.constant 0 : index
    %22 = vector.load %arg7[%c0_33, %c0_34] : memref<1x32xf32, #tpu.memory_space<vmem>>, vector<1x32xf32>
    %23 = vector.broadcast %22 : vector<1x32xf32> to vector<64x32xf32>
    %24 = arith.addf %21, %23 : vector<64x32xf32>
    %25 = vector.extract_strided_slice %16 {offsets = [0, 64], sizes = [64, 32], strides = [1, 1]} : vector<64x128xf32> to vector<64x32xf32>
    %c0_35 = arith.constant 0 : index
    %c0_36 = arith.constant 0 : index
    %26 = vector.load %arg8[%c0_35, %c0_36] : memref<1x32xf32, #tpu.memory_space<vmem>>, vector<1x32xf32>
    %27 = vector.broadcast %26 : vector<1x32xf32> to vector<64x32xf32>
    %28 = arith.addf %25, %27 : vector<64x32xf32>
    %29 = vector.extract_strided_slice %16 {offsets = [0, 96], sizes = [64, 32], strides = [1, 1]} : vector<64x128xf32> to vector<64x32xf32>
    %c0_37 = arith.constant 0 : index
    %c0_38 = arith.constant 0 : index
    %30 = vector.load %arg9[%c0_37, %c0_38] : memref<1x32xf32, #tpu.memory_space<vmem>>, vector<1x32xf32>
    %31 = vector.broadcast %30 : vector<1x32xf32> to vector<64x32xf32>
    %32 = arith.addf %29, %31 : vector<64x32xf32>
    %cst_39 = arith.constant 0.000000e+00 : f32
    %33 = vector.broadcast %cst_39 : f32 to vector<8x32xf32>
    %cst_40 = arith.constant 0.000000e+00 : f32
    %34 = vector.broadcast %cst_40 : f32 to vector<8x32xf32>
    %35 = vector.extract_strided_slice %20 {offsets = [0, 0], sizes = [8, 32], strides = [1, 1]} : vector<64x32xf32> to vector<8x32xf32>
    %cst_41 = arith.constant dense<0.000000e+00> : vector<8x32xf32>
    %36 = tpu.matmul %33, %0, %cst_41 {dimension_numbers = #tpu.dot_dimension_numbers<[1], [0], [0], [1], [0, 0, 1, 1], [], []>} : vector<8x32xf32>, vector<32x32xf32>, vector<8x32xf32> -> vector<8x32xf32>
    %37 = arith.addf %35, %36 : vector<8x32xf32>
    %cst_42 = arith.constant 0.000000e+00 : f32
    %38 = vector.broadcast %cst_42 : f32 to vector<8x32xf32>
    %39 = arith.subf %38, %37 : vector<8x32xf32>
    %40 = math.exp %39 : vector<8x32xf32>
    %cst_43 = arith.constant 1.000000e+00 : f32
    %41 = vector.broadcast %cst_43 : f32 to vector<8x32xf32>
    %42 = arith.addf %41, %40 : vector<8x32xf32>
    %cst_44 = arith.constant 1.000000e+00 : f32
    %43 = vector.broadcast %cst_44 : f32 to vector<8x32xf32>
    %44 = arith.divf %43, %42 : vector<8x32xf32>
    %45 = vector.extract_strided_slice %24 {offsets = [0, 0], sizes = [8, 32], strides = [1, 1]} : vector<64x32xf32> to vector<8x32xf32>
    %cst_45 = arith.constant dense<0.000000e+00> : vector<8x32xf32>
    %46 = tpu.matmul %33, %1, %cst_45 {dimension_numbers = #tpu.dot_dimension_numbers<[1], [0], [0], [1], [0, 0, 1, 1], [], []>} : vector<8x32xf32>, vector<32x32xf32>, vector<8x32xf32> -> vector<8x32xf32>
    %47 = arith.addf %45, %46 : vector<8x32xf32>
    %cst_46 = arith.constant 0.000000e+00 : f32
    %48 = vector.broadcast %cst_46 : f32 to vector<8x32xf32>
    %49 = arith.subf %48, %47 : vector<8x32xf32>
    %50 = math.exp %49 : vector<8x32xf32>
    %cst_47 = arith.constant 1.000000e+00 : f32
    %51 = vector.broadcast %cst_47 : f32 to vector<8x32xf32>
    %52 = arith.addf %51, %50 : vector<8x32xf32>
    %cst_48 = arith.constant 1.000000e+00 : f32
    %53 = vector.broadcast %cst_48 : f32 to vector<8x32xf32>
    %54 = arith.divf %53, %52 : vector<8x32xf32>
    %55 = vector.extract_strided_slice %28 {offsets = [0, 0], sizes = [8, 32], strides = [1, 1]} : vector<64x32xf32> to vector<8x32xf32>
    %cst_49 = arith.constant dense<0.000000e+00> : vector<8x32xf32>
    %56 = tpu.matmul %33, %2, %cst_49 {dimension_numbers = #tpu.dot_dimension_numbers<[1], [0], [0], [1], [0, 0, 1, 1], [], []>} : vector<8x32xf32>, vector<32x32xf32>, vector<8x32xf32> -> vector<8x32xf32>
    %57 = arith.addf %55, %56 : vector<8x32xf32>
    %58 = math.tanh %57 : vector<8x32xf32>
    %59 = vector.extract_strided_slice %32 {offsets = [0, 0], sizes = [8, 32], strides = [1, 1]} : vector<64x32xf32> to vector<8x32xf32>
    %cst_50 = arith.constant dense<0.000000e+00> : vector<8x32xf32>
    %60 = tpu.matmul %33, %3, %cst_50 {dimension_numbers = #tpu.dot_dimension_numbers<[1], [0], [0], [1], [0, 0, 1, 1], [], []>} : vector<8x32xf32>, vector<32x32xf32>, vector<8x32xf32> -> vector<8x32xf32>
    %61 = arith.addf %59, %60 : vector<8x32xf32>
    %cst_51 = arith.constant 0.000000e+00 : f32
    %62 = vector.broadcast %cst_51 : f32 to vector<8x32xf32>
    %63 = arith.subf %62, %61 : vector<8x32xf32>
    %64 = math.exp %63 : vector<8x32xf32>
    %cst_52 = arith.constant 1.000000e+00 : f32
    %65 = vector.broadcast %cst_52 : f32 to vector<8x32xf32>
    %66 = arith.addf %65, %64 : vector<8x32xf32>
    %cst_53 = arith.constant 1.000000e+00 : f32
    %67 = vector.broadcast %cst_53 : f32 to vector<8x32xf32>
    %68 = arith.divf %67, %66 : vector<8x32xf32>
    %69 = arith.mulf %54, %34 : vector<8x32xf32>
    %70 = arith.mulf %44, %58 : vector<8x32xf32>
    %71 = arith.addf %69, %70 : vector<8x32xf32>
    %72 = math.tanh %71 : vector<8x32xf32>
    %73 = arith.mulf %68, %72 : vector<8x32xf32>
    %74 = vector.extract_strided_slice %20 {offsets = [8, 0], sizes = [8, 32], strides = [1, 1]} : vector<64x32xf32> to vector<8x32xf32>
    %cst_54 = arith.constant dense<0.000000e+00> : vector<8x32xf32>
    %75 = tpu.matmul %73, %0, %cst_54 {dimension_numbers = #tpu.dot_dimension_numbers<[1], [0], [0], [1], [0, 0, 1, 1], [], []>} : vector<8x32xf32>, vector<32x32xf32>, vector<8x32xf32> -> vector<8x32xf32>
    %76 = arith.addf %74, %75 : vector<8x32xf32>
    %cst_55 = arith.constant 0.000000e+00 : f32
    %77 = vector.broadcast %cst_55 : f32 to vector<8x32xf32>
    %78 = arith.subf %77, %76 : vector<8x32xf32>
    %79 = math.exp %78 : vector<8x32xf32>
    %cst_56 = arith.constant 1.000000e+00 : f32
    %80 = vector.broadcast %cst_56 : f32 to vector<8x32xf32>
    %81 = arith.addf %80, %79 : vector<8x32xf32>
    %cst_57 = arith.constant 1.000000e+00 : f32
    %82 = vector.broadcast %cst_57 : f32 to vector<8x32xf32>
    %83 = arith.divf %82, %81 : vector<8x32xf32>
    %84 = vector.extract_strided_slice %24 {offsets = [8, 0], sizes = [8, 32], strides = [1, 1]} : vector<64x32xf32> to vector<8x32xf32>
    %cst_58 = arith.constant dense<0.000000e+00> : vector<8x32xf32>
    %85 = tpu.matmul %73, %1, %cst_58 {dimension_numbers = #tpu.dot_dimension_numbers<[1], [0], [0], [1], [0, 0, 1, 1], [], []>} : vector<8x32xf32>, vector<32x32xf32>, vector<8x32xf32> -> vector<8x32xf32>
    %86 = arith.addf %84, %85 : vector<8x32xf32>
    %cst_59 = arith.constant 0.000000e+00 : f32
    %87 = vector.broadcast %cst_59 : f32 to vector<8x32xf32>
    %88 = arith.subf %87, %86 : vector<8x32xf32>
    %89 = math.exp %88 : vector<8x32xf32>
    %cst_60 = arith.constant 1.000000e+00 : f32
    %90 = vector.broadcast %cst_60 : f32 to vector<8x32xf32>
    %91 = arith.addf %90, %89 : vector<8x32xf32>
    %cst_61 = arith.constant 1.000000e+00 : f32
    %92 = vector.broadcast %cst_61 : f32 to vector<8x32xf32>
    %93 = arith.divf %92, %91 : vector<8x32xf32>
    %94 = vector.extract_strided_slice %28 {offsets = [8, 0], sizes = [8, 32], strides = [1, 1]} : vector<64x32xf32> to vector<8x32xf32>
    %cst_62 = arith.constant dense<0.000000e+00> : vector<8x32xf32>
    %95 = tpu.matmul %73, %2, %cst_62 {dimension_numbers = #tpu.dot_dimension_numbers<[1], [0], [0], [1], [0, 0, 1, 1], [], []>} : vector<8x32xf32>, vector<32x32xf32>, vector<8x32xf32> -> vector<8x32xf32>
    %96 = arith.addf %94, %95 : vector<8x32xf32>
    %97 = math.tanh %96 : vector<8x32xf32>
    %98 = vector.extract_strided_slice %32 {offsets = [8, 0], sizes = [8, 32], strides = [1, 1]} : vector<64x32xf32> to vector<8x32xf32>
    %cst_63 = arith.constant dense<0.000000e+00> : vector<8x32xf32>
    %99 = tpu.matmul %73, %3, %cst_63 {dimension_numbers = #tpu.dot_dimension_numbers<[1], [0], [0], [1], [0, 0, 1, 1], [], []>} : vector<8x32xf32>, vector<32x32xf32>, vector<8x32xf32> -> vector<8x32xf32>
    %100 = arith.addf %98, %99 : vector<8x32xf32>
    %cst_64 = arith.constant 0.000000e+00 : f32
    %101 = vector.broadcast %cst_64 : f32 to vector<8x32xf32>
    %102 = arith.subf %101, %100 : vector<8x32xf32>
    %103 = math.exp %102 : vector<8x32xf32>
    %cst_65 = arith.constant 1.000000e+00 : f32
    %104 = vector.broadcast %cst_65 : f32 to vector<8x32xf32>
    %105 = arith.addf %104, %103 : vector<8x32xf32>
    %cst_66 = arith.constant 1.000000e+00 : f32
    %106 = vector.broadcast %cst_66 : f32 to vector<8x32xf32>
    %107 = arith.divf %106, %105 : vector<8x32xf32>
    %108 = arith.mulf %93, %71 : vector<8x32xf32>
    %109 = arith.mulf %83, %97 : vector<8x32xf32>
    %110 = arith.addf %108, %109 : vector<8x32xf32>
    %111 = math.tanh %110 : vector<8x32xf32>
    %112 = arith.mulf %107, %111 : vector<8x32xf32>
    %113 = vector.extract_strided_slice %20 {offsets = [16, 0], sizes = [8, 32], strides = [1, 1]} : vector<64x32xf32> to vector<8x32xf32>
    %cst_67 = arith.constant dense<0.000000e+00> : vector<8x32xf32>
    %114 = tpu.matmul %112, %0, %cst_67 {dimension_numbers = #tpu.dot_dimension_numbers<[1], [0], [0], [1], [0, 0, 1, 1], [], []>} : vector<8x32xf32>, vector<32x32xf32>, vector<8x32xf32> -> vector<8x32xf32>
    %115 = arith.addf %113, %114 : vector<8x32xf32>
    %cst_68 = arith.constant 0.000000e+00 : f32
    %116 = vector.broadcast %cst_68 : f32 to vector<8x32xf32>
    %117 = arith.subf %116, %115 : vector<8x32xf32>
    %118 = math.exp %117 : vector<8x32xf32>
    %cst_69 = arith.constant 1.000000e+00 : f32
    %119 = vector.broadcast %cst_69 : f32 to vector<8x32xf32>
    %120 = arith.addf %119, %118 : vector<8x32xf32>
    %cst_70 = arith.constant 1.000000e+00 : f32
    %121 = vector.broadcast %cst_70 : f32 to vector<8x32xf32>
    %122 = arith.divf %121, %120 : vector<8x32xf32>
    %123 = vector.extract_strided_slice %24 {offsets = [16, 0], sizes = [8, 32], strides = [1, 1]} : vector<64x32xf32> to vector<8x32xf32>
    %cst_71 = arith.constant dense<0.000000e+00> : vector<8x32xf32>
    %124 = tpu.matmul %112, %1, %cst_71 {dimension_numbers = #tpu.dot_dimension_numbers<[1], [0], [0], [1], [0, 0, 1, 1], [], []>} : vector<8x32xf32>, vector<32x32xf32>, vector<8x32xf32> -> vector<8x32xf32>
    %125 = arith.addf %123, %124 : vector<8x32xf32>
    %cst_72 = arith.constant 0.000000e+00 : f32
    %126 = vector.broadcast %cst_72 : f32 to vector<8x32xf32>
    %127 = arith.subf %126, %125 : vector<8x32xf32>
    %128 = math.exp %127 : vector<8x32xf32>
    %cst_73 = arith.constant 1.000000e+00 : f32
    %129 = vector.broadcast %cst_73 : f32 to vector<8x32xf32>
    %130 = arith.addf %129, %128 : vector<8x32xf32>
    %cst_74 = arith.constant 1.000000e+00 : f32
    %131 = vector.broadcast %cst_74 : f32 to vector<8x32xf32>
    %132 = arith.divf %131, %130 : vector<8x32xf32>
    %133 = vector.extract_strided_slice %28 {offsets = [16, 0], sizes = [8, 32], strides = [1, 1]} : vector<64x32xf32> to vector<8x32xf32>
    %cst_75 = arith.constant dense<0.000000e+00> : vector<8x32xf32>
    %134 = tpu.matmul %112, %2, %cst_75 {dimension_numbers = #tpu.dot_dimension_numbers<[1], [0], [0], [1], [0, 0, 1, 1], [], []>} : vector<8x32xf32>, vector<32x32xf32>, vector<8x32xf32> -> vector<8x32xf32>
    %135 = arith.addf %133, %134 : vector<8x32xf32>
    %136 = math.tanh %135 : vector<8x32xf32>
    %137 = vector.extract_strided_slice %32 {offsets = [16, 0], sizes = [8, 32], strides = [1, 1]} : vector<64x32xf32> to vector<8x32xf32>
    %cst_76 = arith.constant dense<0.000000e+00> : vector<8x32xf32>
    %138 = tpu.matmul %112, %3, %cst_76 {dimension_numbers = #tpu.dot_dimension_numbers<[1], [0], [0], [1], [0, 0, 1, 1], [], []>} : vector<8x32xf32>, vector<32x32xf32>, vector<8x32xf32> -> vector<8x32xf32>
    %139 = arith.addf %137, %138 : vector<8x32xf32>
    %cst_77 = arith.constant 0.000000e+00 : f32
    %140 = vector.broadcast %cst_77 : f32 to vector<8x32xf32>
    %141 = arith.subf %140, %139 : vector<8x32xf32>
    %142 = math.exp %141 : vector<8x32xf32>
    %cst_78 = arith.constant 1.000000e+00 : f32
    %143 = vector.broadcast %cst_78 : f32 to vector<8x32xf32>
    %144 = arith.addf %143, %142 : vector<8x32xf32>
    %cst_79 = arith.constant 1.000000e+00 : f32
    %145 = vector.broadcast %cst_79 : f32 to vector<8x32xf32>
    %146 = arith.divf %145, %144 : vector<8x32xf32>
    %147 = arith.mulf %132, %110 : vector<8x32xf32>
    %148 = arith.mulf %122, %136 : vector<8x32xf32>
    %149 = arith.addf %147, %148 : vector<8x32xf32>
    %150 = math.tanh %149 : vector<8x32xf32>
    %151 = arith.mulf %146, %150 : vector<8x32xf32>
    %152 = vector.extract_strided_slice %20 {offsets = [24, 0], sizes = [8, 32], strides = [1, 1]} : vector<64x32xf32> to vector<8x32xf32>
    %cst_80 = arith.constant dense<0.000000e+00> : vector<8x32xf32>
    %153 = tpu.matmul %151, %0, %cst_80 {dimension_numbers = #tpu.dot_dimension_numbers<[1], [0], [0], [1], [0, 0, 1, 1], [], []>} : vector<8x32xf32>, vector<32x32xf32>, vector<8x32xf32> -> vector<8x32xf32>
    %154 = arith.addf %152, %153 : vector<8x32xf32>
    %cst_81 = arith.constant 0.000000e+00 : f32
    %155 = vector.broadcast %cst_81 : f32 to vector<8x32xf32>
    %156 = arith.subf %155, %154 : vector<8x32xf32>
    %157 = math.exp %156 : vector<8x32xf32>
    %cst_82 = arith.constant 1.000000e+00 : f32
    %158 = vector.broadcast %cst_82 : f32 to vector<8x32xf32>
    %159 = arith.addf %158, %157 : vector<8x32xf32>
    %cst_83 = arith.constant 1.000000e+00 : f32
    %160 = vector.broadcast %cst_83 : f32 to vector<8x32xf32>
    %161 = arith.divf %160, %159 : vector<8x32xf32>
    %162 = vector.extract_strided_slice %24 {offsets = [24, 0], sizes = [8, 32], strides = [1, 1]} : vector<64x32xf32> to vector<8x32xf32>
    %cst_84 = arith.constant dense<0.000000e+00> : vector<8x32xf32>
    %163 = tpu.matmul %151, %1, %cst_84 {dimension_numbers = #tpu.dot_dimension_numbers<[1], [0], [0], [1], [0, 0, 1, 1], [], []>} : vector<8x32xf32>, vector<32x32xf32>, vector<8x32xf32> -> vector<8x32xf32>
    %164 = arith.addf %162, %163 : vector<8x32xf32>
    %cst_85 = arith.constant 0.000000e+00 : f32
    %165 = vector.broadcast %cst_85 : f32 to vector<8x32xf32>
    %166 = arith.subf %165, %164 : vector<8x32xf32>
    %167 = math.exp %166 : vector<8x32xf32>
    %cst_86 = arith.constant 1.000000e+00 : f32
    %168 = vector.broadcast %cst_86 : f32 to vector<8x32xf32>
    %169 = arith.addf %168, %167 : vector<8x32xf32>
    %cst_87 = arith.constant 1.000000e+00 : f32
    %170 = vector.broadcast %cst_87 : f32 to vector<8x32xf32>
    %171 = arith.divf %170, %169 : vector<8x32xf32>
    %172 = vector.extract_strided_slice %28 {offsets = [24, 0], sizes = [8, 32], strides = [1, 1]} : vector<64x32xf32> to vector<8x32xf32>
    %cst_88 = arith.constant dense<0.000000e+00> : vector<8x32xf32>
    %173 = tpu.matmul %151, %2, %cst_88 {dimension_numbers = #tpu.dot_dimension_numbers<[1], [0], [0], [1], [0, 0, 1, 1], [], []>} : vector<8x32xf32>, vector<32x32xf32>, vector<8x32xf32> -> vector<8x32xf32>
    %174 = arith.addf %172, %173 : vector<8x32xf32>
    %175 = math.tanh %174 : vector<8x32xf32>
    %176 = vector.extract_strided_slice %32 {offsets = [24, 0], sizes = [8, 32], strides = [1, 1]} : vector<64x32xf32> to vector<8x32xf32>
    %cst_89 = arith.constant dense<0.000000e+00> : vector<8x32xf32>
    %177 = tpu.matmul %151, %3, %cst_89 {dimension_numbers = #tpu.dot_dimension_numbers<[1], [0], [0], [1], [0, 0, 1, 1], [], []>} : vector<8x32xf32>, vector<32x32xf32>, vector<8x32xf32> -> vector<8x32xf32>
    %178 = arith.addf %176, %177 : vector<8x32xf32>
    %cst_90 = arith.constant 0.000000e+00 : f32
    %179 = vector.broadcast %cst_90 : f32 to vector<8x32xf32>
    %180 = arith.subf %179, %178 : vector<8x32xf32>
    %181 = math.exp %180 : vector<8x32xf32>
    %cst_91 = arith.constant 1.000000e+00 : f32
    %182 = vector.broadcast %cst_91 : f32 to vector<8x32xf32>
    %183 = arith.addf %182, %181 : vector<8x32xf32>
    %cst_92 = arith.constant 1.000000e+00 : f32
    %184 = vector.broadcast %cst_92 : f32 to vector<8x32xf32>
    %185 = arith.divf %184, %183 : vector<8x32xf32>
    %186 = arith.mulf %171, %149 : vector<8x32xf32>
    %187 = arith.mulf %161, %175 : vector<8x32xf32>
    %188 = arith.addf %186, %187 : vector<8x32xf32>
    %189 = math.tanh %188 : vector<8x32xf32>
    %190 = arith.mulf %185, %189 : vector<8x32xf32>
    %191 = vector.extract_strided_slice %20 {offsets = [32, 0], sizes = [8, 32], strides = [1, 1]} : vector<64x32xf32> to vector<8x32xf32>
    %cst_93 = arith.constant dense<0.000000e+00> : vector<8x32xf32>
    %192 = tpu.matmul %190, %0, %cst_93 {dimension_numbers = #tpu.dot_dimension_numbers<[1], [0], [0], [1], [0, 0, 1, 1], [], []>} : vector<8x32xf32>, vector<32x32xf32>, vector<8x32xf32> -> vector<8x32xf32>
    %193 = arith.addf %191, %192 : vector<8x32xf32>
    %cst_94 = arith.constant 0.000000e+00 : f32
    %194 = vector.broadcast %cst_94 : f32 to vector<8x32xf32>
    %195 = arith.subf %194, %193 : vector<8x32xf32>
    %196 = math.exp %195 : vector<8x32xf32>
    %cst_95 = arith.constant 1.000000e+00 : f32
    %197 = vector.broadcast %cst_95 : f32 to vector<8x32xf32>
    %198 = arith.addf %197, %196 : vector<8x32xf32>
    %cst_96 = arith.constant 1.000000e+00 : f32
    %199 = vector.broadcast %cst_96 : f32 to vector<8x32xf32>
    %200 = arith.divf %199, %198 : vector<8x32xf32>
    %201 = vector.extract_strided_slice %24 {offsets = [32, 0], sizes = [8, 32], strides = [1, 1]} : vector<64x32xf32> to vector<8x32xf32>
    %cst_97 = arith.constant dense<0.000000e+00> : vector<8x32xf32>
    %202 = tpu.matmul %190, %1, %cst_97 {dimension_numbers = #tpu.dot_dimension_numbers<[1], [0], [0], [1], [0, 0, 1, 1], [], []>} : vector<8x32xf32>, vector<32x32xf32>, vector<8x32xf32> -> vector<8x32xf32>
    %203 = arith.addf %201, %202 : vector<8x32xf32>
    %cst_98 = arith.constant 0.000000e+00 : f32
    %204 = vector.broadcast %cst_98 : f32 to vector<8x32xf32>
    %205 = arith.subf %204, %203 : vector<8x32xf32>
    %206 = math.exp %205 : vector<8x32xf32>
    %cst_99 = arith.constant 1.000000e+00 : f32
    %207 = vector.broadcast %cst_99 : f32 to vector<8x32xf32>
    %208 = arith.addf %207, %206 : vector<8x32xf32>
    %cst_100 = arith.constant 1.000000e+00 : f32
    %209 = vector.broadcast %cst_100 : f32 to vector<8x32xf32>
    %210 = arith.divf %209, %208 : vector<8x32xf32>
    %211 = vector.extract_strided_slice %28 {offsets = [32, 0], sizes = [8, 32], strides = [1, 1]} : vector<64x32xf32> to vector<8x32xf32>
    %cst_101 = arith.constant dense<0.000000e+00> : vector<8x32xf32>
    %212 = tpu.matmul %190, %2, %cst_101 {dimension_numbers = #tpu.dot_dimension_numbers<[1], [0], [0], [1], [0, 0, 1, 1], [], []>} : vector<8x32xf32>, vector<32x32xf32>, vector<8x32xf32> -> vector<8x32xf32>
    %213 = arith.addf %211, %212 : vector<8x32xf32>
    %214 = math.tanh %213 : vector<8x32xf32>
    %215 = vector.extract_strided_slice %32 {offsets = [32, 0], sizes = [8, 32], strides = [1, 1]} : vector<64x32xf32> to vector<8x32xf32>
    %cst_102 = arith.constant dense<0.000000e+00> : vector<8x32xf32>
    %216 = tpu.matmul %190, %3, %cst_102 {dimension_numbers = #tpu.dot_dimension_numbers<[1], [0], [0], [1], [0, 0, 1, 1], [], []>} : vector<8x32xf32>, vector<32x32xf32>, vector<8x32xf32> -> vector<8x32xf32>
    %217 = arith.addf %215, %216 : vector<8x32xf32>
    %cst_103 = arith.constant 0.000000e+00 : f32
    %218 = vector.broadcast %cst_103 : f32 to vector<8x32xf32>
    %219 = arith.subf %218, %217 : vector<8x32xf32>
    %220 = math.exp %219 : vector<8x32xf32>
    %cst_104 = arith.constant 1.000000e+00 : f32
    %221 = vector.broadcast %cst_104 : f32 to vector<8x32xf32>
    %222 = arith.addf %221, %220 : vector<8x32xf32>
    %cst_105 = arith.constant 1.000000e+00 : f32
    %223 = vector.broadcast %cst_105 : f32 to vector<8x32xf32>
    %224 = arith.divf %223, %222 : vector<8x32xf32>
    %225 = arith.mulf %210, %188 : vector<8x32xf32>
    %226 = arith.mulf %200, %214 : vector<8x32xf32>
    %227 = arith.addf %225, %226 : vector<8x32xf32>
    %228 = math.tanh %227 : vector<8x32xf32>
    %229 = arith.mulf %224, %228 : vector<8x32xf32>
    %230 = vector.extract_strided_slice %20 {offsets = [40, 0], sizes = [8, 32], strides = [1, 1]} : vector<64x32xf32> to vector<8x32xf32>
    %cst_106 = arith.constant dense<0.000000e+00> : vector<8x32xf32>
    %231 = tpu.matmul %229, %0, %cst_106 {dimension_numbers = #tpu.dot_dimension_numbers<[1], [0], [0], [1], [0, 0, 1, 1], [], []>} : vector<8x32xf32>, vector<32x32xf32>, vector<8x32xf32> -> vector<8x32xf32>
    %232 = arith.addf %230, %231 : vector<8x32xf32>
    %cst_107 = arith.constant 0.000000e+00 : f32
    %233 = vector.broadcast %cst_107 : f32 to vector<8x32xf32>
    %234 = arith.subf %233, %232 : vector<8x32xf32>
    %235 = math.exp %234 : vector<8x32xf32>
    %cst_108 = arith.constant 1.000000e+00 : f32
    %236 = vector.broadcast %cst_108 : f32 to vector<8x32xf32>
    %237 = arith.addf %236, %235 : vector<8x32xf32>
    %cst_109 = arith.constant 1.000000e+00 : f32
    %238 = vector.broadcast %cst_109 : f32 to vector<8x32xf32>
    %239 = arith.divf %238, %237 : vector<8x32xf32>
    %240 = vector.extract_strided_slice %24 {offsets = [40, 0], sizes = [8, 32], strides = [1, 1]} : vector<64x32xf32> to vector<8x32xf32>
    %cst_110 = arith.constant dense<0.000000e+00> : vector<8x32xf32>
    %241 = tpu.matmul %229, %1, %cst_110 {dimension_numbers = #tpu.dot_dimension_numbers<[1], [0], [0], [1], [0, 0, 1, 1], [], []>} : vector<8x32xf32>, vector<32x32xf32>, vector<8x32xf32> -> vector<8x32xf32>
    %242 = arith.addf %240, %241 : vector<8x32xf32>
    %cst_111 = arith.constant 0.000000e+00 : f32
    %243 = vector.broadcast %cst_111 : f32 to vector<8x32xf32>
    %244 = arith.subf %243, %242 : vector<8x32xf32>
    %245 = math.exp %244 : vector<8x32xf32>
    %cst_112 = arith.constant 1.000000e+00 : f32
    %246 = vector.broadcast %cst_112 : f32 to vector<8x32xf32>
    %247 = arith.addf %246, %245 : vector<8x32xf32>
    %cst_113 = arith.constant 1.000000e+00 : f32
    %248 = vector.broadcast %cst_113 : f32 to vector<8x32xf32>
    %249 = arith.divf %248, %247 : vector<8x32xf32>
    %250 = vector.extract_strided_slice %28 {offsets = [40, 0], sizes = [8, 32], strides = [1, 1]} : vector<64x32xf32> to vector<8x32xf32>
    %cst_114 = arith.constant dense<0.000000e+00> : vector<8x32xf32>
    %251 = tpu.matmul %229, %2, %cst_114 {dimension_numbers = #tpu.dot_dimension_numbers<[1], [0], [0], [1], [0, 0, 1, 1], [], []>} : vector<8x32xf32>, vector<32x32xf32>, vector<8x32xf32> -> vector<8x32xf32>
    %252 = arith.addf %250, %251 : vector<8x32xf32>
    %253 = math.tanh %252 : vector<8x32xf32>
    %254 = vector.extract_strided_slice %32 {offsets = [40, 0], sizes = [8, 32], strides = [1, 1]} : vector<64x32xf32> to vector<8x32xf32>
    %cst_115 = arith.constant dense<0.000000e+00> : vector<8x32xf32>
    %255 = tpu.matmul %229, %3, %cst_115 {dimension_numbers = #tpu.dot_dimension_numbers<[1], [0], [0], [1], [0, 0, 1, 1], [], []>} : vector<8x32xf32>, vector<32x32xf32>, vector<8x32xf32> -> vector<8x32xf32>
    %256 = arith.addf %254, %255 : vector<8x32xf32>
    %cst_116 = arith.constant 0.000000e+00 : f32
    %257 = vector.broadcast %cst_116 : f32 to vector<8x32xf32>
    %258 = arith.subf %257, %256 : vector<8x32xf32>
    %259 = math.exp %258 : vector<8x32xf32>
    %cst_117 = arith.constant 1.000000e+00 : f32
    %260 = vector.broadcast %cst_117 : f32 to vector<8x32xf32>
    %261 = arith.addf %260, %259 : vector<8x32xf32>
    %cst_118 = arith.constant 1.000000e+00 : f32
    %262 = vector.broadcast %cst_118 : f32 to vector<8x32xf32>
    %263 = arith.divf %262, %261 : vector<8x32xf32>
    %264 = arith.mulf %249, %227 : vector<8x32xf32>
    %265 = arith.mulf %239, %253 : vector<8x32xf32>
    %266 = arith.addf %264, %265 : vector<8x32xf32>
    %267 = math.tanh %266 : vector<8x32xf32>
    %268 = arith.mulf %263, %267 : vector<8x32xf32>
    %269 = vector.extract_strided_slice %20 {offsets = [48, 0], sizes = [8, 32], strides = [1, 1]} : vector<64x32xf32> to vector<8x32xf32>
    %cst_119 = arith.constant dense<0.000000e+00> : vector<8x32xf32>
    %270 = tpu.matmul %268, %0, %cst_119 {dimension_numbers = #tpu.dot_dimension_numbers<[1], [0], [0], [1], [0, 0, 1, 1], [], []>} : vector<8x32xf32>, vector<32x32xf32>, vector<8x32xf32> -> vector<8x32xf32>
    %271 = arith.addf %269, %270 : vector<8x32xf32>
    %cst_120 = arith.constant 0.000000e+00 : f32
    %272 = vector.broadcast %cst_120 : f32 to vector<8x32xf32>
    %273 = arith.subf %272, %271 : vector<8x32xf32>
    %274 = math.exp %273 : vector<8x32xf32>
    %cst_121 = arith.constant 1.000000e+00 : f32
    %275 = vector.broadcast %cst_121 : f32 to vector<8x32xf32>
    %276 = arith.addf %275, %274 : vector<8x32xf32>
    %cst_122 = arith.constant 1.000000e+00 : f32
    %277 = vector.broadcast %cst_122 : f32 to vector<8x32xf32>
    %278 = arith.divf %277, %276 : vector<8x32xf32>
    %279 = vector.extract_strided_slice %24 {offsets = [48, 0], sizes = [8, 32], strides = [1, 1]} : vector<64x32xf32> to vector<8x32xf32>
    %cst_123 = arith.constant dense<0.000000e+00> : vector<8x32xf32>
    %280 = tpu.matmul %268, %1, %cst_123 {dimension_numbers = #tpu.dot_dimension_numbers<[1], [0], [0], [1], [0, 0, 1, 1], [], []>} : vector<8x32xf32>, vector<32x32xf32>, vector<8x32xf32> -> vector<8x32xf32>
    %281 = arith.addf %279, %280 : vector<8x32xf32>
    %cst_124 = arith.constant 0.000000e+00 : f32
    %282 = vector.broadcast %cst_124 : f32 to vector<8x32xf32>
    %283 = arith.subf %282, %281 : vector<8x32xf32>
    %284 = math.exp %283 : vector<8x32xf32>
    %cst_125 = arith.constant 1.000000e+00 : f32
    %285 = vector.broadcast %cst_125 : f32 to vector<8x32xf32>
    %286 = arith.addf %285, %284 : vector<8x32xf32>
    %cst_126 = arith.constant 1.000000e+00 : f32
    %287 = vector.broadcast %cst_126 : f32 to vector<8x32xf32>
    %288 = arith.divf %287, %286 : vector<8x32xf32>
    %289 = vector.extract_strided_slice %28 {offsets = [48, 0], sizes = [8, 32], strides = [1, 1]} : vector<64x32xf32> to vector<8x32xf32>
    %cst_127 = arith.constant dense<0.000000e+00> : vector<8x32xf32>
    %290 = tpu.matmul %268, %2, %cst_127 {dimension_numbers = #tpu.dot_dimension_numbers<[1], [0], [0], [1], [0, 0, 1, 1], [], []>} : vector<8x32xf32>, vector<32x32xf32>, vector<8x32xf32> -> vector<8x32xf32>
    %291 = arith.addf %289, %290 : vector<8x32xf32>
    %292 = math.tanh %291 : vector<8x32xf32>
    %293 = vector.extract_strided_slice %32 {offsets = [48, 0], sizes = [8, 32], strides = [1, 1]} : vector<64x32xf32> to vector<8x32xf32>
    %cst_128 = arith.constant dense<0.000000e+00> : vector<8x32xf32>
    %294 = tpu.matmul %268, %3, %cst_128 {dimension_numbers = #tpu.dot_dimension_numbers<[1], [0], [0], [1], [0, 0, 1, 1], [], []>} : vector<8x32xf32>, vector<32x32xf32>, vector<8x32xf32> -> vector<8x32xf32>
    %295 = arith.addf %293, %294 : vector<8x32xf32>
    %cst_129 = arith.constant 0.000000e+00 : f32
    %296 = vector.broadcast %cst_129 : f32 to vector<8x32xf32>
    %297 = arith.subf %296, %295 : vector<8x32xf32>
    %298 = math.exp %297 : vector<8x32xf32>
    %cst_130 = arith.constant 1.000000e+00 : f32
    %299 = vector.broadcast %cst_130 : f32 to vector<8x32xf32>
    %300 = arith.addf %299, %298 : vector<8x32xf32>
    %cst_131 = arith.constant 1.000000e+00 : f32
    %301 = vector.broadcast %cst_131 : f32 to vector<8x32xf32>
    %302 = arith.divf %301, %300 : vector<8x32xf32>
    %303 = arith.mulf %288, %266 : vector<8x32xf32>
    %304 = arith.mulf %278, %292 : vector<8x32xf32>
    %305 = arith.addf %303, %304 : vector<8x32xf32>
    %306 = math.tanh %305 : vector<8x32xf32>
    %307 = arith.mulf %302, %306 : vector<8x32xf32>
    %308 = vector.extract_strided_slice %20 {offsets = [56, 0], sizes = [8, 32], strides = [1, 1]} : vector<64x32xf32> to vector<8x32xf32>
    %cst_132 = arith.constant dense<0.000000e+00> : vector<8x32xf32>
    %309 = tpu.matmul %307, %0, %cst_132 {dimension_numbers = #tpu.dot_dimension_numbers<[1], [0], [0], [1], [0, 0, 1, 1], [], []>} : vector<8x32xf32>, vector<32x32xf32>, vector<8x32xf32> -> vector<8x32xf32>
    %310 = arith.addf %308, %309 : vector<8x32xf32>
    %cst_133 = arith.constant 0.000000e+00 : f32
    %311 = vector.broadcast %cst_133 : f32 to vector<8x32xf32>
    %312 = arith.subf %311, %310 : vector<8x32xf32>
    %313 = math.exp %312 : vector<8x32xf32>
    %cst_134 = arith.constant 1.000000e+00 : f32
    %314 = vector.broadcast %cst_134 : f32 to vector<8x32xf32>
    %315 = arith.addf %314, %313 : vector<8x32xf32>
    %cst_135 = arith.constant 1.000000e+00 : f32
    %316 = vector.broadcast %cst_135 : f32 to vector<8x32xf32>
    %317 = arith.divf %316, %315 : vector<8x32xf32>
    %318 = vector.extract_strided_slice %24 {offsets = [56, 0], sizes = [8, 32], strides = [1, 1]} : vector<64x32xf32> to vector<8x32xf32>
    %cst_136 = arith.constant dense<0.000000e+00> : vector<8x32xf32>
    %319 = tpu.matmul %307, %1, %cst_136 {dimension_numbers = #tpu.dot_dimension_numbers<[1], [0], [0], [1], [0, 0, 1, 1], [], []>} : vector<8x32xf32>, vector<32x32xf32>, vector<8x32xf32> -> vector<8x32xf32>
    %320 = arith.addf %318, %319 : vector<8x32xf32>
    %cst_137 = arith.constant 0.000000e+00 : f32
    %321 = vector.broadcast %cst_137 : f32 to vector<8x32xf32>
    %322 = arith.subf %321, %320 : vector<8x32xf32>
    %323 = math.exp %322 : vector<8x32xf32>
    %cst_138 = arith.constant 1.000000e+00 : f32
    %324 = vector.broadcast %cst_138 : f32 to vector<8x32xf32>
    %325 = arith.addf %324, %323 : vector<8x32xf32>
    %cst_139 = arith.constant 1.000000e+00 : f32
    %326 = vector.broadcast %cst_139 : f32 to vector<8x32xf32>
    %327 = arith.divf %326, %325 : vector<8x32xf32>
    %328 = vector.extract_strided_slice %28 {offsets = [56, 0], sizes = [8, 32], strides = [1, 1]} : vector<64x32xf32> to vector<8x32xf32>
    %cst_140 = arith.constant dense<0.000000e+00> : vector<8x32xf32>
    %329 = tpu.matmul %307, %2, %cst_140 {dimension_numbers = #tpu.dot_dimension_numbers<[1], [0], [0], [1], [0, 0, 1, 1], [], []>} : vector<8x32xf32>, vector<32x32xf32>, vector<8x32xf32> -> vector<8x32xf32>
    %330 = arith.addf %328, %329 : vector<8x32xf32>
    %331 = math.tanh %330 : vector<8x32xf32>
    %332 = arith.mulf %327, %305 : vector<8x32xf32>
    %333 = arith.mulf %317, %331 : vector<8x32xf32>
    %334 = arith.addf %332, %333 : vector<8x32xf32>
    %cst_141 = arith.constant dense<0.000000e+00> : vector<8x64xf32>
    %335 = tpu.matmul %334, %4, %cst_141 {dimension_numbers = #tpu.dot_dimension_numbers<[1], [0], [0], [1], [0, 0, 1, 1], [], []>} : vector<8x32xf32>, vector<32x64xf32>, vector<8x64xf32> -> vector<8x64xf32>
    %336 = vector.broadcast %5 : vector<1x64xf32> to vector<8x64xf32>
    %337 = arith.addf %335, %336 : vector<8x64xf32>
    %cst_142 = arith.constant 0.000000e+00 : f32
    %338 = vector.broadcast %cst_142 : f32 to vector<8x64xf32>
    %339 = arith.cmpf ogt, %337, %338 : vector<8x64xf32>
    %cst_143 = arith.constant 0.000000e+00 : f32
    %340 = vector.broadcast %cst_143 : f32 to vector<8x64xf32>
    %341 = arith.minimumf %337, %340 : vector<8x64xf32>
    %342 = math.exp %341 : vector<8x64xf32>
    %cst_144 = arith.constant 1.000000e+00 : f32
    %343 = vector.broadcast %cst_144 : f32 to vector<8x64xf32>
    %344 = arith.subf %342, %343 : vector<8x64xf32>
    %345 = arith.select %339, %337, %344 : vector<8x64xi1>, vector<8x64xf32>
    %cst_145 = arith.constant dense<0.000000e+00> : vector<8x64xf32>
    %346 = tpu.matmul %345, %6, %cst_145 {dimension_numbers = #tpu.dot_dimension_numbers<[1], [0], [0], [1], [0, 0, 1, 1], [], []>} : vector<8x64xf32>, vector<64x64xf32>, vector<8x64xf32> -> vector<8x64xf32>
    %347 = vector.broadcast %7 : vector<1x64xf32> to vector<8x64xf32>
    %348 = arith.addf %346, %347 : vector<8x64xf32>
    %cst_146 = arith.constant 0.000000e+00 : f32
    %349 = vector.broadcast %cst_146 : f32 to vector<8x64xf32>
    %350 = arith.cmpf ogt, %348, %349 : vector<8x64xf32>
    %cst_147 = arith.constant 0.000000e+00 : f32
    %351 = vector.broadcast %cst_147 : f32 to vector<8x64xf32>
    %352 = arith.minimumf %348, %351 : vector<8x64xf32>
    %353 = math.exp %352 : vector<8x64xf32>
    %cst_148 = arith.constant 1.000000e+00 : f32
    %354 = vector.broadcast %cst_148 : f32 to vector<8x64xf32>
    %355 = arith.subf %353, %354 : vector<8x64xf32>
    %356 = arith.select %350, %348, %355 : vector<8x64xi1>, vector<8x64xf32>
    %cst_149 = arith.constant dense<0.000000e+00> : vector<8x32xf32>
    %357 = tpu.matmul %356, %8, %cst_149 {dimension_numbers = #tpu.dot_dimension_numbers<[1], [0], [0], [1], [0, 0, 1, 1], [], []>} : vector<8x64xf32>, vector<64x32xf32>, vector<8x32xf32> -> vector<8x32xf32>
    %358 = vector.broadcast %9 : vector<1x32xf32> to vector<8x32xf32>
    %359 = arith.addf %357, %358 : vector<8x32xf32>
    %cst_150 = arith.constant 0.0416666679 : f32
    %360 = vector.broadcast %cst_150 : f32 to vector<8x32xf32>
    %361 = arith.mulf %360, %359 : vector<8x32xf32>
    %362 = arith.addf %334, %361 : vector<8x32xf32>
    %cst_151 = arith.constant dense<0.000000e+00> : vector<8x64xf32>
    %363 = tpu.matmul %362, %4, %cst_151 {dimension_numbers = #tpu.dot_dimension_numbers<[1], [0], [0], [1], [0, 0, 1, 1], [], []>} : vector<8x32xf32>, vector<32x64xf32>, vector<8x64xf32> -> vector<8x64xf32>
    %364 = vector.broadcast %5 : vector<1x64xf32> to vector<8x64xf32>
    %365 = arith.addf %363, %364 : vector<8x64xf32>
    %cst_152 = arith.constant 0.000000e+00 : f32
    %366 = vector.broadcast %cst_152 : f32 to vector<8x64xf32>
    %367 = arith.cmpf ogt, %365, %366 : vector<8x64xf32>
    %cst_153 = arith.constant 0.000000e+00 : f32
    %368 = vector.broadcast %cst_153 : f32 to vector<8x64xf32>
    %369 = arith.minimumf %365, %368 : vector<8x64xf32>
    %370 = math.exp %369 : vector<8x64xf32>
    %cst_154 = arith.constant 1.000000e+00 : f32
    %371 = vector.broadcast %cst_154 : f32 to vector<8x64xf32>
    %372 = arith.subf %370, %371 : vector<8x64xf32>
    %373 = arith.select %367, %365, %372 : vector<8x64xi1>, vector<8x64xf32>
    %cst_155 = arith.constant dense<0.000000e+00> : vector<8x64xf32>
    %374 = tpu.matmul %373, %6, %cst_155 {dimension_numbers = #tpu.dot_dimension_numbers<[1], [0], [0], [1], [0, 0, 1, 1], [], []>} : vector<8x64xf32>, vector<64x64xf32>, vector<8x64xf32> -> vector<8x64xf32>
    %375 = vector.broadcast %7 : vector<1x64xf32> to vector<8x64xf32>
    %376 = arith.addf %374, %375 : vector<8x64xf32>
    %cst_156 = arith.constant 0.000000e+00 : f32
    %377 = vector.broadcast %cst_156 : f32 to vector<8x64xf32>
    %378 = arith.cmpf ogt, %376, %377 : vector<8x64xf32>
    %cst_157 = arith.constant 0.000000e+00 : f32
    %379 = vector.broadcast %cst_157 : f32 to vector<8x64xf32>
    %380 = arith.minimumf %376, %379 : vector<8x64xf32>
    %381 = math.exp %380 : vector<8x64xf32>
    %cst_158 = arith.constant 1.000000e+00 : f32
    %382 = vector.broadcast %cst_158 : f32 to vector<8x64xf32>
    %383 = arith.subf %381, %382 : vector<8x64xf32>
    %384 = arith.select %378, %376, %383 : vector<8x64xi1>, vector<8x64xf32>
    %cst_159 = arith.constant dense<0.000000e+00> : vector<8x32xf32>
    %385 = tpu.matmul %384, %8, %cst_159 {dimension_numbers = #tpu.dot_dimension_numbers<[1], [0], [0], [1], [0, 0, 1, 1], [], []>} : vector<8x64xf32>, vector<64x32xf32>, vector<8x32xf32> -> vector<8x32xf32>
    %386 = vector.broadcast %9 : vector<1x32xf32> to vector<8x32xf32>
    %387 = arith.addf %385, %386 : vector<8x32xf32>
    %cst_160 = arith.constant 0.0416666679 : f32
    %388 = vector.broadcast %cst_160 : f32 to vector<8x32xf32>
    %389 = arith.mulf %388, %387 : vector<8x32xf32>
    %390 = arith.addf %334, %389 : vector<8x32xf32>
    %cst_161 = arith.constant dense<0.000000e+00> : vector<8x64xf32>
    %391 = tpu.matmul %390, %4, %cst_161 {dimension_numbers = #tpu.dot_dimension_numbers<[1], [0], [0], [1], [0, 0, 1, 1], [], []>} : vector<8x32xf32>, vector<32x64xf32>, vector<8x64xf32> -> vector<8x64xf32>
    %392 = vector.broadcast %5 : vector<1x64xf32> to vector<8x64xf32>
    %393 = arith.addf %391, %392 : vector<8x64xf32>
    %cst_162 = arith.constant 0.000000e+00 : f32
    %394 = vector.broadcast %cst_162 : f32 to vector<8x64xf32>
    %395 = arith.cmpf ogt, %393, %394 : vector<8x64xf32>
    %cst_163 = arith.constant 0.000000e+00 : f32
    %396 = vector.broadcast %cst_163 : f32 to vector<8x64xf32>
    %397 = arith.minimumf %393, %396 : vector<8x64xf32>
    %398 = math.exp %397 : vector<8x64xf32>
    %cst_164 = arith.constant 1.000000e+00 : f32
    %399 = vector.broadcast %cst_164 : f32 to vector<8x64xf32>
    %400 = arith.subf %398, %399 : vector<8x64xf32>
    %401 = arith.select %395, %393, %400 : vector<8x64xi1>, vector<8x64xf32>
    %cst_165 = arith.constant dense<0.000000e+00> : vector<8x64xf32>
    %402 = tpu.matmul %401, %6, %cst_165 {dimension_numbers = #tpu.dot_dimension_numbers<[1], [0], [0], [1], [0, 0, 1, 1], [], []>} : vector<8x64xf32>, vector<64x64xf32>, vector<8x64xf32> -> vector<8x64xf32>
    %403 = vector.broadcast %7 : vector<1x64xf32> to vector<8x64xf32>
    %404 = arith.addf %402, %403 : vector<8x64xf32>
    %cst_166 = arith.constant 0.000000e+00 : f32
    %405 = vector.broadcast %cst_166 : f32 to vector<8x64xf32>
    %406 = arith.cmpf ogt, %404, %405 : vector<8x64xf32>
    %cst_167 = arith.constant 0.000000e+00 : f32
    %407 = vector.broadcast %cst_167 : f32 to vector<8x64xf32>
    %408 = arith.minimumf %404, %407 : vector<8x64xf32>
    %409 = math.exp %408 : vector<8x64xf32>
    %cst_168 = arith.constant 1.000000e+00 : f32
    %410 = vector.broadcast %cst_168 : f32 to vector<8x64xf32>
    %411 = arith.subf %409, %410 : vector<8x64xf32>
    %412 = arith.select %406, %404, %411 : vector<8x64xi1>, vector<8x64xf32>
    %cst_169 = arith.constant dense<0.000000e+00> : vector<8x32xf32>
    %413 = tpu.matmul %412, %8, %cst_169 {dimension_numbers = #tpu.dot_dimension_numbers<[1], [0], [0], [1], [0, 0, 1, 1], [], []>} : vector<8x64xf32>, vector<64x32xf32>, vector<8x32xf32> -> vector<8x32xf32>
    %414 = vector.broadcast %9 : vector<1x32xf32> to vector<8x32xf32>
    %415 = arith.addf %413, %414 : vector<8x32xf32>
    %cst_170 = arith.constant 0.0833333358 : f32
    %416 = vector.broadcast %cst_170 : f32 to vector<8x32xf32>
    %417 = arith.mulf %416, %415 : vector<8x32xf32>
    %418 = arith.addf %334, %417 : vector<8x32xf32>
    %cst_171 = arith.constant dense<0.000000e+00> : vector<8x64xf32>
    %419 = tpu.matmul %418, %4, %cst_171 {dimension_numbers = #tpu.dot_dimension_numbers<[1], [0], [0], [1], [0, 0, 1, 1], [], []>} : vector<8x32xf32>, vector<32x64xf32>, vector<8x64xf32> -> vector<8x64xf32>
    %420 = vector.broadcast %5 : vector<1x64xf32> to vector<8x64xf32>
    %421 = arith.addf %419, %420 : vector<8x64xf32>
    %cst_172 = arith.constant 0.000000e+00 : f32
    %422 = vector.broadcast %cst_172 : f32 to vector<8x64xf32>
    %423 = arith.cmpf ogt, %421, %422 : vector<8x64xf32>
    %cst_173 = arith.constant 0.000000e+00 : f32
    %424 = vector.broadcast %cst_173 : f32 to vector<8x64xf32>
    %425 = arith.minimumf %421, %424 : vector<8x64xf32>
    %426 = math.exp %425 : vector<8x64xf32>
    %cst_174 = arith.constant 1.000000e+00 : f32
    %427 = vector.broadcast %cst_174 : f32 to vector<8x64xf32>
    %428 = arith.subf %426, %427 : vector<8x64xf32>
    %429 = arith.select %423, %421, %428 : vector<8x64xi1>, vector<8x64xf32>
    %cst_175 = arith.constant dense<0.000000e+00> : vector<8x64xf32>
    %430 = tpu.matmul %429, %6, %cst_175 {dimension_numbers = #tpu.dot_dimension_numbers<[1], [0], [0], [1], [0, 0, 1, 1], [], []>} : vector<8x64xf32>, vector<64x64xf32>, vector<8x64xf32> -> vector<8x64xf32>
    %431 = vector.broadcast %7 : vector<1x64xf32> to vector<8x64xf32>
    %432 = arith.addf %430, %431 : vector<8x64xf32>
    %cst_176 = arith.constant 0.000000e+00 : f32
    %433 = vector.broadcast %cst_176 : f32 to vector<8x64xf32>
    %434 = arith.cmpf ogt, %432, %433 : vector<8x64xf32>
    %cst_177 = arith.constant 0.000000e+00 : f32
    %435 = vector.broadcast %cst_177 : f32 to vector<8x64xf32>
    %436 = arith.minimumf %432, %435 : vector<8x64xf32>
    %437 = math.exp %436 : vector<8x64xf32>
    %cst_178 = arith.constant 1.000000e+00 : f32
    %438 = vector.broadcast %cst_178 : f32 to vector<8x64xf32>
    %439 = arith.subf %437, %438 : vector<8x64xf32>
    %440 = arith.select %434, %432, %439 : vector<8x64xi1>, vector<8x64xf32>
    %cst_179 = arith.constant dense<0.000000e+00> : vector<8x32xf32>
    %441 = tpu.matmul %440, %8, %cst_179 {dimension_numbers = #tpu.dot_dimension_numbers<[1], [0], [0], [1], [0, 0, 1, 1], [], []>} : vector<8x64xf32>, vector<64x32xf32>, vector<8x32xf32> -> vector<8x32xf32>
    %442 = vector.broadcast %9 : vector<1x32xf32> to vector<8x32xf32>
    %443 = arith.addf %441, %442 : vector<8x32xf32>
    %cst_180 = arith.constant 2.000000e+00 : f32
    %444 = vector.broadcast %cst_180 : f32 to vector<8x32xf32>
    %445 = arith.mulf %444, %387 : vector<8x32xf32>
    %446 = arith.addf %359, %445 : vector<8x32xf32>
    %cst_181 = arith.constant 2.000000e+00 : f32
    %447 = vector.broadcast %cst_181 : f32 to vector<8x32xf32>
    %448 = arith.mulf %447, %415 : vector<8x32xf32>
    %449 = arith.addf %446, %448 : vector<8x32xf32>
    %450 = arith.addf %449, %443 : vector<8x32xf32>
    %cst_182 = arith.constant 0.013888889 : f32
    %451 = vector.broadcast %cst_182 : f32 to vector<8x32xf32>
    %452 = arith.mulf %451, %450 : vector<8x32xf32>
    %453 = arith.addf %334, %452 : vector<8x32xf32>
    %cst_183 = arith.constant dense<0.000000e+00> : vector<8x64xf32>
    %454 = tpu.matmul %453, %4, %cst_183 {dimension_numbers = #tpu.dot_dimension_numbers<[1], [0], [0], [1], [0, 0, 1, 1], [], []>} : vector<8x32xf32>, vector<32x64xf32>, vector<8x64xf32> -> vector<8x64xf32>
    %455 = vector.broadcast %5 : vector<1x64xf32> to vector<8x64xf32>
    %456 = arith.addf %454, %455 : vector<8x64xf32>
    %cst_184 = arith.constant 0.000000e+00 : f32
    %457 = vector.broadcast %cst_184 : f32 to vector<8x64xf32>
    %458 = arith.cmpf ogt, %456, %457 : vector<8x64xf32>
    %cst_185 = arith.constant 0.000000e+00 : f32
    %459 = vector.broadcast %cst_185 : f32 to vector<8x64xf32>
    %460 = arith.minimumf %456, %459 : vector<8x64xf32>
    %461 = math.exp %460 : vector<8x64xf32>
    %cst_186 = arith.constant 1.000000e+00 : f32
    %462 = vector.broadcast %cst_186 : f32 to vector<8x64xf32>
    %463 = arith.subf %461, %462 : vector<8x64xf32>
    %464 = arith.select %458, %456, %463 : vector<8x64xi1>, vector<8x64xf32>
    %cst_187 = arith.constant dense<0.000000e+00> : vector<8x64xf32>
    %465 = tpu.matmul %464, %6, %cst_187 {dimension_numbers = #tpu.dot_dimension_numbers<[1], [0], [0], [1], [0, 0, 1, 1], [], []>} : vector<8x64xf32>, vector<64x64xf32>, vector<8x64xf32> -> vector<8x64xf32>
    %466 = vector.broadcast %7 : vector<1x64xf32> to vector<8x64xf32>
    %467 = arith.addf %465, %466 : vector<8x64xf32>
    %cst_188 = arith.constant 0.000000e+00 : f32
    %468 = vector.broadcast %cst_188 : f32 to vector<8x64xf32>
    %469 = arith.cmpf ogt, %467, %468 : vector<8x64xf32>
    %cst_189 = arith.constant 0.000000e+00 : f32
    %470 = vector.broadcast %cst_189 : f32 to vector<8x64xf32>
    %471 = arith.minimumf %467, %470 : vector<8x64xf32>
    %472 = math.exp %471 : vector<8x64xf32>
    %cst_190 = arith.constant 1.000000e+00 : f32
    %473 = vector.broadcast %cst_190 : f32 to vector<8x64xf32>
    %474 = arith.subf %472, %473 : vector<8x64xf32>
    %475 = arith.select %469, %467, %474 : vector<8x64xi1>, vector<8x64xf32>
    %cst_191 = arith.constant dense<0.000000e+00> : vector<8x32xf32>
    %476 = tpu.matmul %475, %8, %cst_191 {dimension_numbers = #tpu.dot_dimension_numbers<[1], [0], [0], [1], [0, 0, 1, 1], [], []>} : vector<8x64xf32>, vector<64x32xf32>, vector<8x32xf32> -> vector<8x32xf32>
    %477 = vector.broadcast %9 : vector<1x32xf32> to vector<8x32xf32>
    %478 = arith.addf %476, %477 : vector<8x32xf32>
    %cst_192 = arith.constant 0.0416666679 : f32
    %479 = vector.broadcast %cst_192 : f32 to vector<8x32xf32>
    %480 = arith.mulf %479, %478 : vector<8x32xf32>
    %481 = arith.addf %453, %480 : vector<8x32xf32>
    %cst_193 = arith.constant dense<0.000000e+00> : vector<8x64xf32>
    %482 = tpu.matmul %481, %4, %cst_193 {dimension_numbers = #tpu.dot_dimension_numbers<[1], [0], [0], [1], [0, 0, 1, 1], [], []>} : vector<8x32xf32>, vector<32x64xf32>, vector<8x64xf32> -> vector<8x64xf32>
    %483 = vector.broadcast %5 : vector<1x64xf32> to vector<8x64xf32>
    %484 = arith.addf %482, %483 : vector<8x64xf32>
    %cst_194 = arith.constant 0.000000e+00 : f32
    %485 = vector.broadcast %cst_194 : f32 to vector<8x64xf32>
    %486 = arith.cmpf ogt, %484, %485 : vector<8x64xf32>
    %cst_195 = arith.constant 0.000000e+00 : f32
    %487 = vector.broadcast %cst_195 : f32 to vector<8x64xf32>
    %488 = arith.minimumf %484, %487 : vector<8x64xf32>
    %489 = math.exp %488 : vector<8x64xf32>
    %cst_196 = arith.constant 1.000000e+00 : f32
    %490 = vector.broadcast %cst_196 : f32 to vector<8x64xf32>
    %491 = arith.subf %489, %490 : vector<8x64xf32>
    %492 = arith.select %486, %484, %491 : vector<8x64xi1>, vector<8x64xf32>
    %cst_197 = arith.constant dense<0.000000e+00> : vector<8x64xf32>
    %493 = tpu.matmul %492, %6, %cst_197 {dimension_numbers = #tpu.dot_dimension_numbers<[1], [0], [0], [1], [0, 0, 1, 1], [], []>} : vector<8x64xf32>, vector<64x64xf32>, vector<8x64xf32> -> vector<8x64xf32>
    %494 = vector.broadcast %7 : vector<1x64xf32> to vector<8x64xf32>
    %495 = arith.addf %493, %494 : vector<8x64xf32>
    %cst_198 = arith.constant 0.000000e+00 : f32
    %496 = vector.broadcast %cst_198 : f32 to vector<8x64xf32>
    %497 = arith.cmpf ogt, %495, %496 : vector<8x64xf32>
    %cst_199 = arith.constant 0.000000e+00 : f32
    %498 = vector.broadcast %cst_199 : f32 to vector<8x64xf32>
    %499 = arith.minimumf %495, %498 : vector<8x64xf32>
    %500 = math.exp %499 : vector<8x64xf32>
    %cst_200 = arith.constant 1.000000e+00 : f32
    %501 = vector.broadcast %cst_200 : f32 to vector<8x64xf32>
    %502 = arith.subf %500, %501 : vector<8x64xf32>
    %503 = arith.select %497, %495, %502 : vector<8x64xi1>, vector<8x64xf32>
    %cst_201 = arith.constant dense<0.000000e+00> : vector<8x32xf32>
    %504 = tpu.matmul %503, %8, %cst_201 {dimension_numbers = #tpu.dot_dimension_numbers<[1], [0], [0], [1], [0, 0, 1, 1], [], []>} : vector<8x64xf32>, vector<64x32xf32>, vector<8x32xf32> -> vector<8x32xf32>
    %505 = vector.broadcast %9 : vector<1x32xf32> to vector<8x32xf32>
    %506 = arith.addf %504, %505 : vector<8x32xf32>
    %cst_202 = arith.constant 0.0416666679 : f32
    %507 = vector.broadcast %cst_202 : f32 to vector<8x32xf32>
    %508 = arith.mulf %507, %506 : vector<8x32xf32>
    %509 = arith.addf %453, %508 : vector<8x32xf32>
    %cst_203 = arith.constant dense<0.000000e+00> : vector<8x64xf32>
    %510 = tpu.matmul %509, %4, %cst_203 {dimension_numbers = #tpu.dot_dimension_numbers<[1], [0], [0], [1], [0, 0, 1, 1], [], []>} : vector<8x32xf32>, vector<32x64xf32>, vector<8x64xf32> -> vector<8x64xf32>
    %511 = vector.broadcast %5 : vector<1x64xf32> to vector<8x64xf32>
    %512 = arith.addf %510, %511 : vector<8x64xf32>
    %cst_204 = arith.constant 0.000000e+00 : f32
    %513 = vector.broadcast %cst_204 : f32 to vector<8x64xf32>
    %514 = arith.cmpf ogt, %512, %513 : vector<8x64xf32>
    %cst_205 = arith.constant 0.000000e+00 : f32
    %515 = vector.broadcast %cst_205 : f32 to vector<8x64xf32>
    %516 = arith.minimumf %512, %515 : vector<8x64xf32>
    %517 = math.exp %516 : vector<8x64xf32>
    %cst_206 = arith.constant 1.000000e+00 : f32
    %518 = vector.broadcast %cst_206 : f32 to vector<8x64xf32>
    %519 = arith.subf %517, %518 : vector<8x64xf32>
    %520 = arith.select %514, %512, %519 : vector<8x64xi1>, vector<8x64xf32>
    %cst_207 = arith.constant dense<0.000000e+00> : vector<8x64xf32>
    %521 = tpu.matmul %520, %6, %cst_207 {dimension_numbers = #tpu.dot_dimension_numbers<[1], [0], [0], [1], [0, 0, 1, 1], [], []>} : vector<8x64xf32>, vector<64x64xf32>, vector<8x64xf32> -> vector<8x64xf32>
    %522 = vector.broadcast %7 : vector<1x64xf32> to vector<8x64xf32>
    %523 = arith.addf %521, %522 : vector<8x64xf32>
    %cst_208 = arith.constant 0.000000e+00 : f32
    %524 = vector.broadcast %cst_208 : f32 to vector<8x64xf32>
    %525 = arith.cmpf ogt, %523, %524 : vector<8x64xf32>
    %cst_209 = arith.constant 0.000000e+00 : f32
    %526 = vector.broadcast %cst_209 : f32 to vector<8x64xf32>
    %527 = arith.minimumf %523, %526 : vector<8x64xf32>
    %528 = math.exp %527 : vector<8x64xf32>
    %cst_210 = arith.constant 1.000000e+00 : f32
    %529 = vector.broadcast %cst_210 : f32 to vector<8x64xf32>
    %530 = arith.subf %528, %529 : vector<8x64xf32>
    %531 = arith.select %525, %523, %530 : vector<8x64xi1>, vector<8x64xf32>
    %cst_211 = arith.constant dense<0.000000e+00> : vector<8x32xf32>
    %532 = tpu.matmul %531, %8, %cst_211 {dimension_numbers = #tpu.dot_dimension_numbers<[1], [0], [0], [1], [0, 0, 1, 1], [], []>} : vector<8x64xf32>, vector<64x32xf32>, vector<8x32xf32> -> vector<8x32xf32>
    %533 = vector.broadcast %9 : vector<1x32xf32> to vector<8x32xf32>
    %534 = arith.addf %532, %533 : vector<8x32xf32>
    %cst_212 = arith.constant 0.0833333358 : f32
    %535 = vector.broadcast %cst_212 : f32 to vector<8x32xf32>
    %536 = arith.mulf %535, %534 : vector<8x32xf32>
    %537 = arith.addf %453, %536 : vector<8x32xf32>
    %cst_213 = arith.constant dense<0.000000e+00> : vector<8x64xf32>
    %538 = tpu.matmul %537, %4, %cst_213 {dimension_numbers = #tpu.dot_dimension_numbers<[1], [0], [0], [1], [0, 0, 1, 1], [], []>} : vector<8x32xf32>, vector<32x64xf32>, vector<8x64xf32> -> vector<8x64xf32>
    %539 = vector.broadcast %5 : vector<1x64xf32> to vector<8x64xf32>
    %540 = arith.addf %538, %539 : vector<8x64xf32>
    %cst_214 = arith.constant 0.000000e+00 : f32
    %541 = vector.broadcast %cst_214 : f32 to vector<8x64xf32>
    %542 = arith.cmpf ogt, %540, %541 : vector<8x64xf32>
    %cst_215 = arith.constant 0.000000e+00 : f32
    %543 = vector.broadcast %cst_215 : f32 to vector<8x64xf32>
    %544 = arith.minimumf %540, %543 : vector<8x64xf32>
    %545 = math.exp %544 : vector<8x64xf32>
    %cst_216 = arith.constant 1.000000e+00 : f32
    %546 = vector.broadcast %cst_216 : f32 to vector<8x64xf32>
    %547 = arith.subf %545, %546 : vector<8x64xf32>
    %548 = arith.select %542, %540, %547 : vector<8x64xi1>, vector<8x64xf32>
    %cst_217 = arith.constant dense<0.000000e+00> : vector<8x64xf32>
    %549 = tpu.matmul %548, %6, %cst_217 {dimension_numbers = #tpu.dot_dimension_numbers<[1], [0], [0], [1], [0, 0, 1, 1], [], []>} : vector<8x64xf32>, vector<64x64xf32>, vector<8x64xf32> -> vector<8x64xf32>
    %550 = vector.broadcast %7 : vector<1x64xf32> to vector<8x64xf32>
    %551 = arith.addf %549, %550 : vector<8x64xf32>
    %cst_218 = arith.constant 0.000000e+00 : f32
    %552 = vector.broadcast %cst_218 : f32 to vector<8x64xf32>
    %553 = arith.cmpf ogt, %551, %552 : vector<8x64xf32>
    %cst_219 = arith.constant 0.000000e+00 : f32
    %554 = vector.broadcast %cst_219 : f32 to vector<8x64xf32>
    %555 = arith.minimumf %551, %554 : vector<8x64xf32>
    %556 = math.exp %555 : vector<8x64xf32>
    %cst_220 = arith.constant 1.000000e+00 : f32
    %557 = vector.broadcast %cst_220 : f32 to vector<8x64xf32>
    %558 = arith.subf %556, %557 : vector<8x64xf32>
    %559 = arith.select %553, %551, %558 : vector<8x64xi1>, vector<8x64xf32>
    %cst_221 = arith.constant dense<0.000000e+00> : vector<8x32xf32>
    %560 = tpu.matmul %559, %8, %cst_221 {dimension_numbers = #tpu.dot_dimension_numbers<[1], [0], [0], [1], [0, 0, 1, 1], [], []>} : vector<8x64xf32>, vector<64x32xf32>, vector<8x32xf32> -> vector<8x32xf32>
    %561 = vector.broadcast %9 : vector<1x32xf32> to vector<8x32xf32>
    %562 = arith.addf %560, %561 : vector<8x32xf32>
    %cst_222 = arith.constant 2.000000e+00 : f32
    %563 = vector.broadcast %cst_222 : f32 to vector<8x32xf32>
    %564 = arith.mulf %563, %506 : vector<8x32xf32>
    %565 = arith.addf %478, %564 : vector<8x32xf32>
    %cst_223 = arith.constant 2.000000e+00 : f32
    %566 = vector.broadcast %cst_223 : f32 to vector<8x32xf32>
    %567 = arith.mulf %566, %534 : vector<8x32xf32>
    %568 = arith.addf %565, %567 : vector<8x32xf32>
    %569 = arith.addf %568, %562 : vector<8x32xf32>
    %cst_224 = arith.constant 0.013888889 : f32
    %570 = vector.broadcast %cst_224 : f32 to vector<8x32xf32>
    %571 = arith.mulf %570, %569 : vector<8x32xf32>
    %572 = arith.addf %453, %571 : vector<8x32xf32>
    %cst_225 = arith.constant dense<0.000000e+00> : vector<8x64xf32>
    %573 = tpu.matmul %572, %4, %cst_225 {dimension_numbers = #tpu.dot_dimension_numbers<[1], [0], [0], [1], [0, 0, 1, 1], [], []>} : vector<8x32xf32>, vector<32x64xf32>, vector<8x64xf32> -> vector<8x64xf32>
    %574 = vector.broadcast %5 : vector<1x64xf32> to vector<8x64xf32>
    %575 = arith.addf %573, %574 : vector<8x64xf32>
    %cst_226 = arith.constant 0.000000e+00 : f32
    %576 = vector.broadcast %cst_226 : f32 to vector<8x64xf32>
    %577 = arith.cmpf ogt, %575, %576 : vector<8x64xf32>
    %cst_227 = arith.constant 0.000000e+00 : f32
    %578 = vector.broadcast %cst_227 : f32 to vector<8x64xf32>
    %579 = arith.minimumf %575, %578 : vector<8x64xf32>
    %580 = math.exp %579 : vector<8x64xf32>
    %cst_228 = arith.constant 1.000000e+00 : f32
    %581 = vector.broadcast %cst_228 : f32 to vector<8x64xf32>
    %582 = arith.subf %580, %581 : vector<8x64xf32>
    %583 = arith.select %577, %575, %582 : vector<8x64xi1>, vector<8x64xf32>
    %cst_229 = arith.constant dense<0.000000e+00> : vector<8x64xf32>
    %584 = tpu.matmul %583, %6, %cst_229 {dimension_numbers = #tpu.dot_dimension_numbers<[1], [0], [0], [1], [0, 0, 1, 1], [], []>} : vector<8x64xf32>, vector<64x64xf32>, vector<8x64xf32> -> vector<8x64xf32>
    %585 = vector.broadcast %7 : vector<1x64xf32> to vector<8x64xf32>
    %586 = arith.addf %584, %585 : vector<8x64xf32>
    %cst_230 = arith.constant 0.000000e+00 : f32
    %587 = vector.broadcast %cst_230 : f32 to vector<8x64xf32>
    %588 = arith.cmpf ogt, %586, %587 : vector<8x64xf32>
    %cst_231 = arith.constant 0.000000e+00 : f32
    %589 = vector.broadcast %cst_231 : f32 to vector<8x64xf32>
    %590 = arith.minimumf %586, %589 : vector<8x64xf32>
    %591 = math.exp %590 : vector<8x64xf32>
    %cst_232 = arith.constant 1.000000e+00 : f32
    %592 = vector.broadcast %cst_232 : f32 to vector<8x64xf32>
    %593 = arith.subf %591, %592 : vector<8x64xf32>
    %594 = arith.select %588, %586, %593 : vector<8x64xi1>, vector<8x64xf32>
    %cst_233 = arith.constant dense<0.000000e+00> : vector<8x32xf32>
    %595 = tpu.matmul %594, %8, %cst_233 {dimension_numbers = #tpu.dot_dimension_numbers<[1], [0], [0], [1], [0, 0, 1, 1], [], []>} : vector<8x64xf32>, vector<64x32xf32>, vector<8x32xf32> -> vector<8x32xf32>
    %596 = vector.broadcast %9 : vector<1x32xf32> to vector<8x32xf32>
    %597 = arith.addf %595, %596 : vector<8x32xf32>
    %cst_234 = arith.constant 0.0416666679 : f32
    %598 = vector.broadcast %cst_234 : f32 to vector<8x32xf32>
    %599 = arith.mulf %598, %597 : vector<8x32xf32>
    %600 = arith.addf %572, %599 : vector<8x32xf32>
    %cst_235 = arith.constant dense<0.000000e+00> : vector<8x64xf32>
    %601 = tpu.matmul %600, %4, %cst_235 {dimension_numbers = #tpu.dot_dimension_numbers<[1], [0], [0], [1], [0, 0, 1, 1], [], []>} : vector<8x32xf32>, vector<32x64xf32>, vector<8x64xf32> -> vector<8x64xf32>
    %602 = vector.broadcast %5 : vector<1x64xf32> to vector<8x64xf32>
    %603 = arith.addf %601, %602 : vector<8x64xf32>
    %cst_236 = arith.constant 0.000000e+00 : f32
    %604 = vector.broadcast %cst_236 : f32 to vector<8x64xf32>
    %605 = arith.cmpf ogt, %603, %604 : vector<8x64xf32>
    %cst_237 = arith.constant 0.000000e+00 : f32
    %606 = vector.broadcast %cst_237 : f32 to vector<8x64xf32>
    %607 = arith.minimumf %603, %606 : vector<8x64xf32>
    %608 = math.exp %607 : vector<8x64xf32>
    %cst_238 = arith.constant 1.000000e+00 : f32
    %609 = vector.broadcast %cst_238 : f32 to vector<8x64xf32>
    %610 = arith.subf %608, %609 : vector<8x64xf32>
    %611 = arith.select %605, %603, %610 : vector<8x64xi1>, vector<8x64xf32>
    %cst_239 = arith.constant dense<0.000000e+00> : vector<8x64xf32>
    %612 = tpu.matmul %611, %6, %cst_239 {dimension_numbers = #tpu.dot_dimension_numbers<[1], [0], [0], [1], [0, 0, 1, 1], [], []>} : vector<8x64xf32>, vector<64x64xf32>, vector<8x64xf32> -> vector<8x64xf32>
    %613 = vector.broadcast %7 : vector<1x64xf32> to vector<8x64xf32>
    %614 = arith.addf %612, %613 : vector<8x64xf32>
    %cst_240 = arith.constant 0.000000e+00 : f32
    %615 = vector.broadcast %cst_240 : f32 to vector<8x64xf32>
    %616 = arith.cmpf ogt, %614, %615 : vector<8x64xf32>
    %cst_241 = arith.constant 0.000000e+00 : f32
    %617 = vector.broadcast %cst_241 : f32 to vector<8x64xf32>
    %618 = arith.minimumf %614, %617 : vector<8x64xf32>
    %619 = math.exp %618 : vector<8x64xf32>
    %cst_242 = arith.constant 1.000000e+00 : f32
    %620 = vector.broadcast %cst_242 : f32 to vector<8x64xf32>
    %621 = arith.subf %619, %620 : vector<8x64xf32>
    %622 = arith.select %616, %614, %621 : vector<8x64xi1>, vector<8x64xf32>
    %cst_243 = arith.constant dense<0.000000e+00> : vector<8x32xf32>
    %623 = tpu.matmul %622, %8, %cst_243 {dimension_numbers = #tpu.dot_dimension_numbers<[1], [0], [0], [1], [0, 0, 1, 1], [], []>} : vector<8x64xf32>, vector<64x32xf32>, vector<8x32xf32> -> vector<8x32xf32>
    %624 = vector.broadcast %9 : vector<1x32xf32> to vector<8x32xf32>
    %625 = arith.addf %623, %624 : vector<8x32xf32>
    %cst_244 = arith.constant 0.0416666679 : f32
    %626 = vector.broadcast %cst_244 : f32 to vector<8x32xf32>
    %627 = arith.mulf %626, %625 : vector<8x32xf32>
    %628 = arith.addf %572, %627 : vector<8x32xf32>
    %cst_245 = arith.constant dense<0.000000e+00> : vector<8x64xf32>
    %629 = tpu.matmul %628, %4, %cst_245 {dimension_numbers = #tpu.dot_dimension_numbers<[1], [0], [0], [1], [0, 0, 1, 1], [], []>} : vector<8x32xf32>, vector<32x64xf32>, vector<8x64xf32> -> vector<8x64xf32>
    %630 = vector.broadcast %5 : vector<1x64xf32> to vector<8x64xf32>
    %631 = arith.addf %629, %630 : vector<8x64xf32>
    %cst_246 = arith.constant 0.000000e+00 : f32
    %632 = vector.broadcast %cst_246 : f32 to vector<8x64xf32>
    %633 = arith.cmpf ogt, %631, %632 : vector<8x64xf32>
    %cst_247 = arith.constant 0.000000e+00 : f32
    %634 = vector.broadcast %cst_247 : f32 to vector<8x64xf32>
    %635 = arith.minimumf %631, %634 : vector<8x64xf32>
    %636 = math.exp %635 : vector<8x64xf32>
    %cst_248 = arith.constant 1.000000e+00 : f32
    %637 = vector.broadcast %cst_248 : f32 to vector<8x64xf32>
    %638 = arith.subf %636, %637 : vector<8x64xf32>
    %639 = arith.select %633, %631, %638 : vector<8x64xi1>, vector<8x64xf32>
    %cst_249 = arith.constant dense<0.000000e+00> : vector<8x64xf32>
    %640 = tpu.matmul %639, %6, %cst_249 {dimension_numbers = #tpu.dot_dimension_numbers<[1], [0], [0], [1], [0, 0, 1, 1], [], []>} : vector<8x64xf32>, vector<64x64xf32>, vector<8x64xf32> -> vector<8x64xf32>
    %641 = vector.broadcast %7 : vector<1x64xf32> to vector<8x64xf32>
    %642 = arith.addf %640, %641 : vector<8x64xf32>
    %cst_250 = arith.constant 0.000000e+00 : f32
    %643 = vector.broadcast %cst_250 : f32 to vector<8x64xf32>
    %644 = arith.cmpf ogt, %642, %643 : vector<8x64xf32>
    %cst_251 = arith.constant 0.000000e+00 : f32
    %645 = vector.broadcast %cst_251 : f32 to vector<8x64xf32>
    %646 = arith.minimumf %642, %645 : vector<8x64xf32>
    %647 = math.exp %646 : vector<8x64xf32>
    %cst_252 = arith.constant 1.000000e+00 : f32
    %648 = vector.broadcast %cst_252 : f32 to vector<8x64xf32>
    %649 = arith.subf %647, %648 : vector<8x64xf32>
    %650 = arith.select %644, %642, %649 : vector<8x64xi1>, vector<8x64xf32>
    %cst_253 = arith.constant dense<0.000000e+00> : vector<8x32xf32>
    %651 = tpu.matmul %650, %8, %cst_253 {dimension_numbers = #tpu.dot_dimension_numbers<[1], [0], [0], [1], [0, 0, 1, 1], [], []>} : vector<8x64xf32>, vector<64x32xf32>, vector<8x32xf32> -> vector<8x32xf32>
    %652 = vector.broadcast %9 : vector<1x32xf32> to vector<8x32xf32>
    %653 = arith.addf %651, %652 : vector<8x32xf32>
    %cst_254 = arith.constant 0.0833333358 : f32
    %654 = vector.broadcast %cst_254 : f32 to vector<8x32xf32>
    %655 = arith.mulf %654, %653 : vector<8x32xf32>
    %656 = arith.addf %572, %655 : vector<8x32xf32>
    %cst_255 = arith.constant dense<0.000000e+00> : vector<8x64xf32>
    %657 = tpu.matmul %656, %4, %cst_255 {dimension_numbers = #tpu.dot_dimension_numbers<[1], [0], [0], [1], [0, 0, 1, 1], [], []>} : vector<8x32xf32>, vector<32x64xf32>, vector<8x64xf32> -> vector<8x64xf32>
    %658 = vector.broadcast %5 : vector<1x64xf32> to vector<8x64xf32>
    %659 = arith.addf %657, %658 : vector<8x64xf32>
    %cst_256 = arith.constant 0.000000e+00 : f32
    %660 = vector.broadcast %cst_256 : f32 to vector<8x64xf32>
    %661 = arith.cmpf ogt, %659, %660 : vector<8x64xf32>
    %cst_257 = arith.constant 0.000000e+00 : f32
    %662 = vector.broadcast %cst_257 : f32 to vector<8x64xf32>
    %663 = arith.minimumf %659, %662 : vector<8x64xf32>
    %664 = math.exp %663 : vector<8x64xf32>
    %cst_258 = arith.constant 1.000000e+00 : f32
    %665 = vector.broadcast %cst_258 : f32 to vector<8x64xf32>
    %666 = arith.subf %664, %665 : vector<8x64xf32>
    %667 = arith.select %661, %659, %666 : vector<8x64xi1>, vector<8x64xf32>
    %cst_259 = arith.constant dense<0.000000e+00> : vector<8x64xf32>
    %668 = tpu.matmul %667, %6, %cst_259 {dimension_numbers = #tpu.dot_dimension_numbers<[1], [0], [0], [1], [0, 0, 1, 1], [], []>} : vector<8x64xf32>, vector<64x64xf32>, vector<8x64xf32> -> vector<8x64xf32>
    %669 = vector.broadcast %7 : vector<1x64xf32> to vector<8x64xf32>
    %670 = arith.addf %668, %669 : vector<8x64xf32>
    %cst_260 = arith.constant 0.000000e+00 : f32
    %671 = vector.broadcast %cst_260 : f32 to vector<8x64xf32>
    %672 = arith.cmpf ogt, %670, %671 : vector<8x64xf32>
    %cst_261 = arith.constant 0.000000e+00 : f32
    %673 = vector.broadcast %cst_261 : f32 to vector<8x64xf32>
    %674 = arith.minimumf %670, %673 : vector<8x64xf32>
    %675 = math.exp %674 : vector<8x64xf32>
    %cst_262 = arith.constant 1.000000e+00 : f32
    %676 = vector.broadcast %cst_262 : f32 to vector<8x64xf32>
    %677 = arith.subf %675, %676 : vector<8x64xf32>
    %678 = arith.select %672, %670, %677 : vector<8x64xi1>, vector<8x64xf32>
    %cst_263 = arith.constant dense<0.000000e+00> : vector<8x32xf32>
    %679 = tpu.matmul %678, %8, %cst_263 {dimension_numbers = #tpu.dot_dimension_numbers<[1], [0], [0], [1], [0, 0, 1, 1], [], []>} : vector<8x64xf32>, vector<64x32xf32>, vector<8x32xf32> -> vector<8x32xf32>
    %680 = vector.broadcast %9 : vector<1x32xf32> to vector<8x32xf32>
    %681 = arith.addf %679, %680 : vector<8x32xf32>
    %cst_264 = arith.constant 2.000000e+00 : f32
    %682 = vector.broadcast %cst_264 : f32 to vector<8x32xf32>
    %683 = arith.mulf %682, %625 : vector<8x32xf32>
    %684 = arith.addf %597, %683 : vector<8x32xf32>
    %cst_265 = arith.constant 2.000000e+00 : f32
    %685 = vector.broadcast %cst_265 : f32 to vector<8x32xf32>
    %686 = arith.mulf %685, %653 : vector<8x32xf32>
    %687 = arith.addf %684, %686 : vector<8x32xf32>
    %688 = arith.addf %687, %681 : vector<8x32xf32>
    %cst_266 = arith.constant 0.013888889 : f32
    %689 = vector.broadcast %cst_266 : f32 to vector<8x32xf32>
    %690 = arith.mulf %689, %688 : vector<8x32xf32>
    %691 = arith.addf %572, %690 : vector<8x32xf32>
    %cst_267 = arith.constant dense<0.000000e+00> : vector<8x64xf32>
    %692 = tpu.matmul %691, %4, %cst_267 {dimension_numbers = #tpu.dot_dimension_numbers<[1], [0], [0], [1], [0, 0, 1, 1], [], []>} : vector<8x32xf32>, vector<32x64xf32>, vector<8x64xf32> -> vector<8x64xf32>
    %693 = vector.broadcast %5 : vector<1x64xf32> to vector<8x64xf32>
    %694 = arith.addf %692, %693 : vector<8x64xf32>
    %cst_268 = arith.constant 0.000000e+00 : f32
    %695 = vector.broadcast %cst_268 : f32 to vector<8x64xf32>
    %696 = arith.cmpf ogt, %694, %695 : vector<8x64xf32>
    %cst_269 = arith.constant 0.000000e+00 : f32
    %697 = vector.broadcast %cst_269 : f32 to vector<8x64xf32>
    %698 = arith.minimumf %694, %697 : vector<8x64xf32>
    %699 = math.exp %698 : vector<8x64xf32>
    %cst_270 = arith.constant 1.000000e+00 : f32
    %700 = vector.broadcast %cst_270 : f32 to vector<8x64xf32>
    %701 = arith.subf %699, %700 : vector<8x64xf32>
    %702 = arith.select %696, %694, %701 : vector<8x64xi1>, vector<8x64xf32>
    %cst_271 = arith.constant dense<0.000000e+00> : vector<8x64xf32>
    %703 = tpu.matmul %702, %6, %cst_271 {dimension_numbers = #tpu.dot_dimension_numbers<[1], [0], [0], [1], [0, 0, 1, 1], [], []>} : vector<8x64xf32>, vector<64x64xf32>, vector<8x64xf32> -> vector<8x64xf32>
    %704 = vector.broadcast %7 : vector<1x64xf32> to vector<8x64xf32>
    %705 = arith.addf %703, %704 : vector<8x64xf32>
    %cst_272 = arith.constant 0.000000e+00 : f32
    %706 = vector.broadcast %cst_272 : f32 to vector<8x64xf32>
    %707 = arith.cmpf ogt, %705, %706 : vector<8x64xf32>
    %cst_273 = arith.constant 0.000000e+00 : f32
    %708 = vector.broadcast %cst_273 : f32 to vector<8x64xf32>
    %709 = arith.minimumf %705, %708 : vector<8x64xf32>
    %710 = math.exp %709 : vector<8x64xf32>
    %cst_274 = arith.constant 1.000000e+00 : f32
    %711 = vector.broadcast %cst_274 : f32 to vector<8x64xf32>
    %712 = arith.subf %710, %711 : vector<8x64xf32>
    %713 = arith.select %707, %705, %712 : vector<8x64xi1>, vector<8x64xf32>
    %cst_275 = arith.constant dense<0.000000e+00> : vector<8x32xf32>
    %714 = tpu.matmul %713, %8, %cst_275 {dimension_numbers = #tpu.dot_dimension_numbers<[1], [0], [0], [1], [0, 0, 1, 1], [], []>} : vector<8x64xf32>, vector<64x32xf32>, vector<8x32xf32> -> vector<8x32xf32>
    %715 = vector.broadcast %9 : vector<1x32xf32> to vector<8x32xf32>
    %716 = arith.addf %714, %715 : vector<8x32xf32>
    %cst_276 = arith.constant 0.0416666679 : f32
    %717 = vector.broadcast %cst_276 : f32 to vector<8x32xf32>
    %718 = arith.mulf %717, %716 : vector<8x32xf32>
    %719 = arith.addf %691, %718 : vector<8x32xf32>
    %cst_277 = arith.constant dense<0.000000e+00> : vector<8x64xf32>
    %720 = tpu.matmul %719, %4, %cst_277 {dimension_numbers = #tpu.dot_dimension_numbers<[1], [0], [0], [1], [0, 0, 1, 1], [], []>} : vector<8x32xf32>, vector<32x64xf32>, vector<8x64xf32> -> vector<8x64xf32>
    %721 = vector.broadcast %5 : vector<1x64xf32> to vector<8x64xf32>
    %722 = arith.addf %720, %721 : vector<8x64xf32>
    %cst_278 = arith.constant 0.000000e+00 : f32
    %723 = vector.broadcast %cst_278 : f32 to vector<8x64xf32>
    %724 = arith.cmpf ogt, %722, %723 : vector<8x64xf32>
    %cst_279 = arith.constant 0.000000e+00 : f32
    %725 = vector.broadcast %cst_279 : f32 to vector<8x64xf32>
    %726 = arith.minimumf %722, %725 : vector<8x64xf32>
    %727 = math.exp %726 : vector<8x64xf32>
    %cst_280 = arith.constant 1.000000e+00 : f32
    %728 = vector.broadcast %cst_280 : f32 to vector<8x64xf32>
    %729 = arith.subf %727, %728 : vector<8x64xf32>
    %730 = arith.select %724, %722, %729 : vector<8x64xi1>, vector<8x64xf32>
    %cst_281 = arith.constant dense<0.000000e+00> : vector<8x64xf32>
    %731 = tpu.matmul %730, %6, %cst_281 {dimension_numbers = #tpu.dot_dimension_numbers<[1], [0], [0], [1], [0, 0, 1, 1], [], []>} : vector<8x64xf32>, vector<64x64xf32>, vector<8x64xf32> -> vector<8x64xf32>
    %732 = vector.broadcast %7 : vector<1x64xf32> to vector<8x64xf32>
    %733 = arith.addf %731, %732 : vector<8x64xf32>
    %cst_282 = arith.constant 0.000000e+00 : f32
    %734 = vector.broadcast %cst_282 : f32 to vector<8x64xf32>
    %735 = arith.cmpf ogt, %733, %734 : vector<8x64xf32>
    %cst_283 = arith.constant 0.000000e+00 : f32
    %736 = vector.broadcast %cst_283 : f32 to vector<8x64xf32>
    %737 = arith.minimumf %733, %736 : vector<8x64xf32>
    %738 = math.exp %737 : vector<8x64xf32>
    %cst_284 = arith.constant 1.000000e+00 : f32
    %739 = vector.broadcast %cst_284 : f32 to vector<8x64xf32>
    %740 = arith.subf %738, %739 : vector<8x64xf32>
    %741 = arith.select %735, %733, %740 : vector<8x64xi1>, vector<8x64xf32>
    %cst_285 = arith.constant dense<0.000000e+00> : vector<8x32xf32>
    %742 = tpu.matmul %741, %8, %cst_285 {dimension_numbers = #tpu.dot_dimension_numbers<[1], [0], [0], [1], [0, 0, 1, 1], [], []>} : vector<8x64xf32>, vector<64x32xf32>, vector<8x32xf32> -> vector<8x32xf32>
    %743 = vector.broadcast %9 : vector<1x32xf32> to vector<8x32xf32>
    %744 = arith.addf %742, %743 : vector<8x32xf32>
    %cst_286 = arith.constant 0.0416666679 : f32
    %745 = vector.broadcast %cst_286 : f32 to vector<8x32xf32>
    %746 = arith.mulf %745, %744 : vector<8x32xf32>
    %747 = arith.addf %691, %746 : vector<8x32xf32>
    %cst_287 = arith.constant dense<0.000000e+00> : vector<8x64xf32>
    %748 = tpu.matmul %747, %4, %cst_287 {dimension_numbers = #tpu.dot_dimension_numbers<[1], [0], [0], [1], [0, 0, 1, 1], [], []>} : vector<8x32xf32>, vector<32x64xf32>, vector<8x64xf32> -> vector<8x64xf32>
    %749 = vector.broadcast %5 : vector<1x64xf32> to vector<8x64xf32>
    %750 = arith.addf %748, %749 : vector<8x64xf32>
    %cst_288 = arith.constant 0.000000e+00 : f32
    %751 = vector.broadcast %cst_288 : f32 to vector<8x64xf32>
    %752 = arith.cmpf ogt, %750, %751 : vector<8x64xf32>
    %cst_289 = arith.constant 0.000000e+00 : f32
    %753 = vector.broadcast %cst_289 : f32 to vector<8x64xf32>
    %754 = arith.minimumf %750, %753 : vector<8x64xf32>
    %755 = math.exp %754 : vector<8x64xf32>
    %cst_290 = arith.constant 1.000000e+00 : f32
    %756 = vector.broadcast %cst_290 : f32 to vector<8x64xf32>
    %757 = arith.subf %755, %756 : vector<8x64xf32>
    %758 = arith.select %752, %750, %757 : vector<8x64xi1>, vector<8x64xf32>
    %cst_291 = arith.constant dense<0.000000e+00> : vector<8x64xf32>
    %759 = tpu.matmul %758, %6, %cst_291 {dimension_numbers = #tpu.dot_dimension_numbers<[1], [0], [0], [1], [0, 0, 1, 1], [], []>} : vector<8x64xf32>, vector<64x64xf32>, vector<8x64xf32> -> vector<8x64xf32>
    %760 = vector.broadcast %7 : vector<1x64xf32> to vector<8x64xf32>
    %761 = arith.addf %759, %760 : vector<8x64xf32>
    %cst_292 = arith.constant 0.000000e+00 : f32
    %762 = vector.broadcast %cst_292 : f32 to vector<8x64xf32>
    %763 = arith.cmpf ogt, %761, %762 : vector<8x64xf32>
    %cst_293 = arith.constant 0.000000e+00 : f32
    %764 = vector.broadcast %cst_293 : f32 to vector<8x64xf32>
    %765 = arith.minimumf %761, %764 : vector<8x64xf32>
    %766 = math.exp %765 : vector<8x64xf32>
    %cst_294 = arith.constant 1.000000e+00 : f32
    %767 = vector.broadcast %cst_294 : f32 to vector<8x64xf32>
    %768 = arith.subf %766, %767 : vector<8x64xf32>
    %769 = arith.select %763, %761, %768 : vector<8x64xi1>, vector<8x64xf32>
    %cst_295 = arith.constant dense<0.000000e+00> : vector<8x32xf32>
    %770 = tpu.matmul %769, %8, %cst_295 {dimension_numbers = #tpu.dot_dimension_numbers<[1], [0], [0], [1], [0, 0, 1, 1], [], []>} : vector<8x64xf32>, vector<64x32xf32>, vector<8x32xf32> -> vector<8x32xf32>
    %771 = vector.broadcast %9 : vector<1x32xf32> to vector<8x32xf32>
    %772 = arith.addf %770, %771 : vector<8x32xf32>
    %cst_296 = arith.constant 0.0833333358 : f32
    %773 = vector.broadcast %cst_296 : f32 to vector<8x32xf32>
    %774 = arith.mulf %773, %772 : vector<8x32xf32>
    %775 = arith.addf %691, %774 : vector<8x32xf32>
    %cst_297 = arith.constant dense<0.000000e+00> : vector<8x64xf32>
    %776 = tpu.matmul %775, %4, %cst_297 {dimension_numbers = #tpu.dot_dimension_numbers<[1], [0], [0], [1], [0, 0, 1, 1], [], []>} : vector<8x32xf32>, vector<32x64xf32>, vector<8x64xf32> -> vector<8x64xf32>
    %777 = vector.broadcast %5 : vector<1x64xf32> to vector<8x64xf32>
    %778 = arith.addf %776, %777 : vector<8x64xf32>
    %cst_298 = arith.constant 0.000000e+00 : f32
    %779 = vector.broadcast %cst_298 : f32 to vector<8x64xf32>
    %780 = arith.cmpf ogt, %778, %779 : vector<8x64xf32>
    %cst_299 = arith.constant 0.000000e+00 : f32
    %781 = vector.broadcast %cst_299 : f32 to vector<8x64xf32>
    %782 = arith.minimumf %778, %781 : vector<8x64xf32>
    %783 = math.exp %782 : vector<8x64xf32>
    %cst_300 = arith.constant 1.000000e+00 : f32
    %784 = vector.broadcast %cst_300 : f32 to vector<8x64xf32>
    %785 = arith.subf %783, %784 : vector<8x64xf32>
    %786 = arith.select %780, %778, %785 : vector<8x64xi1>, vector<8x64xf32>
    %cst_301 = arith.constant dense<0.000000e+00> : vector<8x64xf32>
    %787 = tpu.matmul %786, %6, %cst_301 {dimension_numbers = #tpu.dot_dimension_numbers<[1], [0], [0], [1], [0, 0, 1, 1], [], []>} : vector<8x64xf32>, vector<64x64xf32>, vector<8x64xf32> -> vector<8x64xf32>
    %788 = vector.broadcast %7 : vector<1x64xf32> to vector<8x64xf32>
    %789 = arith.addf %787, %788 : vector<8x64xf32>
    %cst_302 = arith.constant 0.000000e+00 : f32
    %790 = vector.broadcast %cst_302 : f32 to vector<8x64xf32>
    %791 = arith.cmpf ogt, %789, %790 : vector<8x64xf32>
    %cst_303 = arith.constant 0.000000e+00 : f32
    %792 = vector.broadcast %cst_303 : f32 to vector<8x64xf32>
    %793 = arith.minimumf %789, %792 : vector<8x64xf32>
    %794 = math.exp %793 : vector<8x64xf32>
    %cst_304 = arith.constant 1.000000e+00 : f32
    %795 = vector.broadcast %cst_304 : f32 to vector<8x64xf32>
    %796 = arith.subf %794, %795 : vector<8x64xf32>
    %797 = arith.select %791, %789, %796 : vector<8x64xi1>, vector<8x64xf32>
    %cst_305 = arith.constant dense<0.000000e+00> : vector<8x32xf32>
    %798 = tpu.matmul %797, %8, %cst_305 {dimension_numbers = #tpu.dot_dimension_numbers<[1], [0], [0], [1], [0, 0, 1, 1], [], []>} : vector<8x64xf32>, vector<64x32xf32>, vector<8x32xf32> -> vector<8x32xf32>
    %799 = vector.broadcast %9 : vector<1x32xf32> to vector<8x32xf32>
    %800 = arith.addf %798, %799 : vector<8x32xf32>
    %cst_306 = arith.constant 2.000000e+00 : f32
    %801 = vector.broadcast %cst_306 : f32 to vector<8x32xf32>
    %802 = arith.mulf %801, %744 : vector<8x32xf32>
    %803 = arith.addf %716, %802 : vector<8x32xf32>
    %cst_307 = arith.constant 2.000000e+00 : f32
    %804 = vector.broadcast %cst_307 : f32 to vector<8x32xf32>
    %805 = arith.mulf %804, %772 : vector<8x32xf32>
    %806 = arith.addf %803, %805 : vector<8x32xf32>
    %807 = arith.addf %806, %800 : vector<8x32xf32>
    %cst_308 = arith.constant 0.013888889 : f32
    %808 = vector.broadcast %cst_308 : f32 to vector<8x32xf32>
    %809 = arith.mulf %808, %807 : vector<8x32xf32>
    %810 = arith.addf %691, %809 : vector<8x32xf32>
    %811 = tpu.concatenate %334, %453, %572, %691, %810 in 0 : vector<8x32xf32>, vector<8x32xf32>, vector<8x32xf32>, vector<8x32xf32>, vector<8x32xf32> -> vector<40x32xf32>
    %cst_309 = arith.constant dense<0.000000e+00> : vector<40x64xf32>
    %812 = tpu.matmul %811, %10, %cst_309 {dimension_numbers = #tpu.dot_dimension_numbers<[1], [0], [0], [1], [0, 0, 1, 1], [], []>} : vector<40x32xf32>, vector<32x64xf32>, vector<40x64xf32> -> vector<40x64xf32>
    %813 = vector.broadcast %11 : vector<1x64xf32> to vector<40x64xf32>
    %814 = arith.addf %812, %813 : vector<40x64xf32>
    %cst_310 = arith.constant 0.000000e+00 : f32
    %815 = vector.broadcast %cst_310 : f32 to vector<40x64xf32>
    %816 = arith.maximumf %814, %815 : vector<40x64xf32>
    %cst_311 = arith.constant dense<0.000000e+00> : vector<40x16xf32>
    %817 = tpu.matmul %816, %12, %cst_311 {dimension_numbers = #tpu.dot_dimension_numbers<[1], [0], [0], [1], [0, 0, 1, 1], [], []>} : vector<40x64xf32>, vector<64x16xf32>, vector<40x16xf32> -> vector<40x16xf32>
    %818 = vector.broadcast %13 : vector<1x16xf32> to vector<40x16xf32>
    %819 = arith.addf %817, %818 : vector<40x16xf32>
    %c0_312 = arith.constant 0 : index
    %c0_313 = arith.constant 0 : index
    %820 = vector.load %arg20[%c0_312, %c0_313] : memref<40x16xf32, #tpu.memory_space<vmem>>, vector<40x16xf32>
    tpu.vector_store %arg20[%c0_312, %c0_313], %819 {strides = array<i32>} : memref<40x16xf32, #tpu.memory_space<vmem>>, vector<40x16xf32>,
    return
  }
}

</mosaic_0001>

<bundles_post_ra>
// kernel: tpu_custom_call.1
= control target key start
LH: loop header
LB: loop body
LE: loop exit
PB: predicated region body
PF: predicated region fallthrough
CT: control target
= control target key end

     0   :  { %s11491_s0 = inlined_call_operand.vmem [shape: f32[64,16], index: 0, kind: input, shape index: {}]   ;;  %s11492_s1 = inlined_call_operand.hbm [shape: f32[16,128], index: 1, kind: input, shape index: {}]   ;;  %s11493_s2 = inlined_call_operand.vmem [shape: f32[32,32], index: 2, kind: input, shape index: {}]   ;;  %s11494_s3 = inlined_call_operand.vmem [shape: f32[32,32], index: 3, kind: input, shape index: {}]   ;;  %s11495_s4 = inlined_call_operand.vmem [shape: f32[32,32], index: 4, kind: input, shape index: {}]   ;;  %s11496_s5 = inlined_call_operand.vmem [shape: f32[32,32], index: 5, kind: input, shape index: {}]   ;;  %s11497_s6 = inlined_call_operand.vmem [shape: f32[1,32], index: 6, kind: input, shape index: {}]   ;;  %s11498_s7 = inlined_call_operand.hbm [shape: f32[1,32], index: 7, kind: input, shape index: {}]   ;;  %s11499_s8 = inlined_call_operand.hbm [shape: f32[1,32], index: 8, kind: input, shape index: {}]   ;;  %s11500_s9 = inlined_call_operand.hbm [shape: f32[1,32], index: 9, kind: input, shape index: {}]   ;;  %s11501_s10 = inlined_call_operand.vmem [shape: f32[32,64], index: 10, kind: input, shape index: {}]   ;;  %s11502_s11 = inlined_call_operand.hbm [shape: f32[1,64], index: 11, kind: input, shape index: {}]   ;;  %s11503_s12 = inlined_call_operand.vmem [shape: f32[64,64], index: 12, kind: input, shape index: {}]   ;;  %s11504_s13 = inlined_call_operand.hbm [shape: f32[1,64], index: 13, kind: input, shape index: {}]   ;;  %s11505_s14 = inlined_call_operand.vmem [shape: f32[64,32], index: 14, kind: input, shape index: {}]   ;;  %s11506_s15 = inlined_call_operand.vmem [shape: f32[1,32], index: 15, kind: input, shape index: {}]   ;;  %s11507_s16 = inlined_call_operand.vmem [shape: f32[32,64], index: 16, kind: input, shape index: {}]   ;;  %s11508_s17 = inlined_call_operand.vmem [shape: f32[1,64], index: 17, kind: input, shape index: {}]   ;;  %s11509_s18 = inlined_call_operand.vmem [shape: f32[64,16], index: 18, kind: input, shape index: {}]   ;;  %s11510_s19 = inlined_call_operand.vmem [shape: f32[1,16], index: 19, kind: input, shape index: {}]   ;;  %s11511_s20 = inlined_call_operand.vmem [shape: f32[40,16], index: 20, kind: output, shape index: {}]  }
   0x1   :  { %11517 = sst [smem:[#allocation16_spill]] %s11491_s0 }
   0x2   :  { %11518 = sst [smem:[#allocation17_spill]] %s11492_s1 }
   0x3   :  { %11519 = sst [smem:[#allocation18_spill]] %s11493_s2 }
   0x4   :  { %11520 = sst [smem:[#allocation19_spill]] %s11494_s3 }
   0x5   :  { %11521 = sst [smem:[#allocation20_spill]] %s11495_s4 }
   0x6   :  { %25 = vsyncpa [#allocation3], 0 }
   0x7   :  { %26 = vsyncpa [#allocation5], 0 }
   0x8   :  { %27 = vsyncpa [#allocation8], 0 }
   0x9   :  { %28 = vsyncpa [#allocation11], 0  ;;  %s10014_s1 = smov [#allocation4]   ;;  %s10015_s23 = smov [#allocation7]  }
   0xa   :  { %s59_s22 = sshll.u32 %s10014_s1, 4  ;;  %s79_s24 = sshll.u32 %s10015_s23, 4  ;;  %s60_s22 = int_to_ptr.vmem [resolvable:$true] %s59_s22  ;;  %s80_s24 = int_to_ptr.vmem [resolvable:$true] %s79_s24 }
   0xb   :  { %s9874_s3 = scalar_lea.hbm %s11498_s7, 16 }
   0xc   :  { %p9875_p0 = scmp.ne.s32.totalorder %s11498_s7, %s9874_s3  ;;  %p9878_p1 = scmp.lt.u32.totalorder %s9874_s3, %s11498_s7 }
   0xe   :  { %p9880_p2 = pnand %p9878_p1, %p9875_p0 }
  0x10   :  { %9883 = shalt.err (!%p9880_p2)
}
  0x11   :  { %s9884_s29 = scalar_lea.vmem %s60_s22, 16  ;;  %s9888_s30 = scalar_lea.vmem %s60_s22, 32 }
  0x12   :  { %p9885_p3 = scmp.ne.s32.totalorder %s60_s22, %s9884_s29  ;;  %p9889_p4 = scmp.lt.s32.totalorder %s60_s22, %s60_s22 }
  0x13   :  { %p9890_p5 = scmp.lt.s32.totalorder %s9888_s30, %s9884_s29 }
  0x15   :  { %p9891_p6 = por %p9890_p5, %p9889_p4 }
  0x17   :  { %p9892_p7 = pnand %p9891_p6, %p9885_p3 }
  0x19   :  { %9895 = shalt.err (!%p9892_p7)
}
  0x1a   :  { %62 = dma.hbm_to_vmem [thread:$0]  %s11498_s7, 16, %s60_s22, [#allocation5]  }
  0x1b   :  { %s9896_s2 = scalar_lea.hbm %s11500_s9, 16 }
  0x1c   :  { %p9897_p8 = scmp.ne.s32.totalorder %s11500_s9, %s9896_s2  ;;  %p9900_p9 = scmp.lt.u32.totalorder %s9896_s2, %s11500_s9 }
  0x1e   :  { %p9902_p10 = pnand %p9900_p9, %p9897_p8 }
  0x20   :  { %9905 = shalt.err (!%p9902_p10)
}
  0x21   :  { %s9906_s28 = scalar_lea.vmem %s80_s24, 16  ;;  %s9910_s4 = scalar_lea.vmem %s80_s24, 32 }
  0x22   :  { %p9907_p11 = scmp.ne.s32.totalorder %s80_s24, %s9906_s28  ;;  %p9911_p12 = scmp.lt.s32.totalorder %s80_s24, %s80_s24 }
  0x23   :  { %p9912_p13 = scmp.lt.s32.totalorder %s9910_s4, %s9906_s28 }
  0x25   :  { %p9913_p0 = por %p9912_p13, %p9911_p12 }
  0x27   :  { %p9914_p1 = pnand %p9913_p0, %p9907_p11 }
  0x29   :  { %9917 = shalt.err (!%p9914_p1)
}
  0x2a   :  { %82 = dma.hbm_to_vmem [thread:$0]  %s11500_s9, 16, %s80_s24, [#allocation8]  }
  0x2b   :  { %s10016_s29 = smov [#allocation2]   ;;  %s11522_s1 = sld [smem:[#allocation17_spill]] }
  0x2c   :  { %s36_s30 = sshll.u32 %s10016_s29, 4  ;;  %s37_s30 = int_to_ptr.vmem [resolvable:$true] %s36_s30 }
  0x31   :  { %s9918_s23 = scalar_lea.hbm %s11522_s1, 256 }
  0x32   :  { %p9919_p2 = scmp.ne.s32.totalorder %s11522_s1, %s9918_s23  ;;  %p9922_p3 = scmp.lt.u32.totalorder %s9918_s23, %s11522_s1 }
  0x34   :  { %p9924_p4 = pnand %p9922_p3, %p9919_p2 }
  0x36   :  { %9927 = shalt.err (!%p9924_p4)
}
  0x37   :  { %s9928_s27 = scalar_lea.vmem %s37_s30, 256  ;;  %p9933_p6 = scmp.lt.s32.totalorder %s37_s30, %s37_s30 }
  0x38   :  { %p9929_p5 = scmp.ne.s32.totalorder %s37_s30, %s9928_s27  ;;  %p9934_p7 = scmp.lt.s32.totalorder %s9928_s27, %s9928_s27 }
  0x3a   :  { %p9935_p8 = por %p9934_p7, %p9933_p6 }
  0x3c   :  { %p9936_p9 = pnand %p9935_p8, %p9929_p5 }
  0x3e   :  { %9939 = shalt.err (!%p9936_p9)
}
  0x3f   :  { %s10017_s9 = smov 128   ;;  %s10018_s24 = smov 8  }
  0x40   :  { %42 = dma.hbm_to_vmem [thread:$0]  %s11522_s1, 256, %s37_s30, [#allocation3], %s10017_s9, %s10017_s9, %s10018_s24  }
  0x41   :  { %s10019_s7 = smov [#allocation6]   ;;  %s10020_s29 = smov [#allocation9]  }
  0x42   :  { %s69_s22 = sshll.u32 %s10019_s7, 4  ;;  %s91_s0 = sshll.u32 %s10020_s29, 4  ;;  %s70_s22 = int_to_ptr.vmem [resolvable:$true] %s69_s22  ;;  %s92_s0 = int_to_ptr.vmem [resolvable:$true] %s91_s0 }
  0x43   :  { %s9940_s2 = scalar_lea.hbm %s11499_s8, 16 }
  0x44   :  { %p9941_p10 = scmp.ne.s32.totalorder %s11499_s8, %s9940_s2  ;;  %p9944_p11 = scmp.lt.u32.totalorder %s9940_s2, %s11499_s8 }
  0x46   :  { %p9946_p12 = pnand %p9944_p11, %p9941_p10 }
  0x48   :  { %9949 = shalt.err (!%p9946_p12)
}
  0x49   :  { %s9950_s30 = scalar_lea.vmem %s70_s22, 16  ;;  %s9954_s1 = scalar_lea.vmem %s70_s22, 32 }
  0x4a   :  { %p9951_p13 = scmp.ne.s32.totalorder %s70_s22, %s9950_s30  ;;  %p9955_p0 = scmp.lt.s32.totalorder %s70_s22, %s70_s22 }
  0x4b   :  { %p9956_p1 = scmp.lt.s32.totalorder %s9954_s1, %s9950_s30 }
  0x4d   :  { %p9957_p2 = por %p9956_p1, %p9955_p0 }
  0x4f   :  { %p9958_p3 = pnand %p9957_p2, %p9951_p13 }
  0x51   :  { %9961 = shalt.err (!%p9958_p3)
}
  0x52   :  { %72 = dma.hbm_to_vmem [thread:$0]  %s11499_s8, 16, %s70_s22, [#allocation5]  }
  0x53   :  { %s9962_s7 = scalar_lea.hbm %s11502_s11, 16 }
  0x54   :  { %p9963_p4 = scmp.ne.s32.totalorder %s11502_s11, %s9962_s7  ;;  %p9966_p5 = scmp.lt.u32.totalorder %s9962_s7, %s11502_s11 }
  0x56   :  { %p9968_p6 = pnand %p9966_p5, %p9963_p4 }
  0x58   :  { %9971 = shalt.err (!%p9968_p6)
}
  0x59   :  { %s9972_s25 = scalar_lea.vmem %s92_s0, 16  ;;  %s9976_s3 = scalar_lea.vmem %s92_s0, 32 }
  0x5a   :  { %p9973_p7 = scmp.ne.s32.totalorder %s92_s0, %s9972_s25  ;;  %p9977_p8 = scmp.lt.s32.totalorder %s92_s0, %s92_s0 }
  0x5b   :  { %p9978_p9 = scmp.lt.s32.totalorder %s9976_s3, %s9972_s25 }
  0x5d   :  { %p9979_p10 = por %p9978_p9, %p9977_p8 }
  0x5f   :  { %p9980_p11 = pnand %p9979_p10, %p9973_p7 }
  0x61   :  { %9983 = shalt.err (!%p9980_p11)
}
  0x62   :  { %94 = dma.hbm_to_vmem [thread:$0]  %s11502_s11, 16, %s92_s0, [#allocation8]  }
  0x63   :  { %s10021_s26 = smov [#allocation10]   ;;  %s9984_s9 = scalar_lea.hbm %s11504_s13, 16 }
  0x64   :  { %s103_s27 = sshll.u32 %s10021_s26, 4  ;;  %p9985_p12 = scmp.ne.s32.totalorder %s11504_s13, %s9984_s9  ;;  %s104_s27 = int_to_ptr.vmem [resolvable:$true] %s103_s27 }
  0x65   :  { %p9988_p13 = scmp.lt.u32.totalorder %s9984_s9, %s11504_s13 }
  0x67   :  { %p9990_p0 = pnand %p9988_p13, %p9985_p12 }
  0x69   :  { %9993 = shalt.err (!%p9990_p0)
}
  0x6a   :  { %s9994_s29 = scalar_lea.vmem %s104_s27, 16  ;;  %s9998_s11 = scalar_lea.vmem %s104_s27, 32 }
  0x6b   :  { %p9995_p1 = scmp.ne.s32.totalorder %s104_s27, %s9994_s29  ;;  %p9999_p2 = scmp.lt.s32.totalorder %s104_s27, %s104_s27 }
  0x6c   :  { %p10000_p3 = scmp.lt.s32.totalorder %s9998_s11, %s9994_s29 }
  0x6e   :  { %p10001_p4 = por %p10000_p3, %p9999_p2 }
  0x70   :  { %p10002_p5 = pnand %p10001_p4, %p9995_p1 }
  0x72   :  { %10005 = shalt.err (!%p10002_p5)
}
  0x73   :  { %106 = dma.hbm_to_vmem [thread:$0]  %s11504_s13, 16, %s104_s27, [#allocation11]  }
  0x74   :  { %10006 = dma.done.wait [#allocation3], 256  }
  0x75   :  { %10007 = vsyncadd [#allocation3], 4294967040 }
  0x76   :  { %10008 = dma.done.wait [#allocation5], 32  }
  0x77   :  { %10009 = vsyncadd [#allocation5], 4294967264 }
  0x78   :  { %10010 = dma.done.wait [#allocation8], 32  }
  0x79   :  { %10011 = vsyncadd [#allocation8], 4294967264 }
  0x7a   :  { %10012 = dma.done.wait [#allocation11], 16  }
  0x7b   :  { %10013 = vsyncadd [#allocation11], 4294967280  ;;  %vm200_vm0 = vcmask 130048   ;;  %v198_v0 = vld [vmem:[#allocation2] sm:$0xff]  ;;  %v199_v1 = vld [vmem:[#allocation2 + $0x8] sm:$0xff]  ;;  %s11523_s25 = sld [smem:[#allocation16_spill]] }
  0x7c   :  { %v8980_v3 = vpack.c.bf16 %v199_v1, %v198_v0  ;;  %s11524_s26 = sld [smem:[#allocation18_spill]]  ;;  %s11525_s24 = sld [smem:[#allocation20_spill]]  ;;  %v10022_v14 = vmov 0.0|0.0   ;;  %v7106_v26 = vld [vmem:[#allocation6] ss:$0 sm:$0xff]  ;;  %vm10023_vm1 = vmmov 0  }
  0x7d   :  { %s11526_s0 = sld [smem:[#allocation19_spill]]  ;;  %v10024_v28 = vmov 0.0   ;;  %s10025_s8 = smov 64   ;;  %v149_v32 = vld [vmem:[%s11496_s5] sm:$0xff]  ;;  %v150_v33 = vld [vmem:[%s11496_s5 + $0x8] sm:$0xff]  ;;  %v151_v34 = vld [vmem:[%s11496_s5 + $0x10] sm:$0xff] }
  0x7e   :  { %8981 = vmatprep.subr.bf16.mxu0 %v8980_v3  ;;  %9668 = vmatprep.subr.bf16.mxu1 %v8980_v3  ;;  %v10326_v35 = vpack.c.bf16 %v150_v33, %v149_v32  ;;  %v152_v36 = vld [vmem:[%s11496_s5 + $0x18] sm:$0xff]  ;;  %v10357_v44 = vld [vmem:[%s11497_s6] ss:$0 sm:$0xff]  ;;  %s10026_s7 = smov 32   ;;  %v7107_v55 = vld [vmem:[#allocation7] ss:$0 sm:$0xff] }
  0x7f   :  { %8983 = vmatpush3.bf16.msra.mxu0 %v8980_v3  ;;  %9669 = vmatpush3.bf16.msra.mxu1 %v8980_v3  ;;  %v10332_v37 = vpack.c.bf16 %v152_v36, %v151_v34  ;;  %s10027_s29 = smov 96   ;;  %v7105_v63 = vld [vmem:[#allocation4] ss:$0 sm:$0xff]  ;;  %vm395_vm2 = vcmask 261120   ;;  %vm3096_vm3 = vcmask 523264  }
  0x80   :  { %8984 = vmatprep.subr.bf16.mxu1 %v10022_v14  ;;  %8996 = vmatprep.subr.bf16.mxu0 %v10022_v14 }
  0x81   :  { %v190_v2 = vld [vmem:[%s11523_s25] sm:$0xff]  ;;  %v191_v9 = vld [vmem:[%s11523_s25 + $0x8] sm:$0xff]  ;;  %v192_v18 = vld [vmem:[%s11523_s25 + $0x10] sm:$0xff]  ;;  %368 = vrot.lane.b32.xlu0 %v7106_v26, %s10025_s8 }
  0x82   :  { %7789 = vmatprep.mubr.msk.f32.mxu0 %vm200_vm0, %v190_v2  ;;  %v194_v4 = vld [vmem:[%s11523_s25 + $0x20] sm:$0xff]  ;;  %v138_v6 = vld [vmem:[%s11524_s26 + $0x8] sm:$0xff]  ;;  %v139_v13 = vld [vmem:[%s11524_s26 + $0x10] sm:$0xff] }
  0x83   :  { %7795 = vmatprep.mubr.msk.f32.mxu1 %vm200_vm0, %v194_v4  ;;  %v137_v5 = vld [vmem:[%s11524_s26] sm:$0xff]  ;;  %v146_v8 = vld [vmem:[%s11525_s24 + $0x8] sm:$0xff]  ;;  %v140_v15 = vld [vmem:[%s11524_s26 + $0x18] sm:$0xff]  ;;  %7790 = vmatmul.mubr.msk.f32.vlgmr.msra.gmra.mrb[0].mxu0 %vm200_vm0, %v191_v9 }
  0x84   :  { %v145_v7 = vld [vmem:[%s11525_s24] sm:$0xff]  ;;  %v195_v10 = vld [vmem:[%s11523_s25 + $0x28] sm:$0xff]  ;;  %v10231_v11 = vpack.c.bf16 %v138_v6, %v137_v5  ;;  %v147_v16 = vld [vmem:[%s11525_s24 + $0x10] sm:$0xff]  ;;  %v10265_v22 = vpack.c.bf16 %v140_v15, %v139_v13  ;;  %7792 = vmatprep.mubr.msk.f32.mxu0 %vm200_vm0, %v192_v18 }
  0x85   :  { %v10233_v12 = vpack.c.bf16 %v146_v8, %v145_v7  ;;  %v148_v17 = vld [vmem:[%s11525_s24 + $0x18] sm:$0xff]  ;;  %v196_v19 = vld [vmem:[%s11523_s25 + $0x30] sm:$0xff]  ;;  %7796 = vmatmul.mubr.msk.f32.vlgmr.msra.gmra.mrb[0].mxu1 %vm200_vm0, %v195_v10  ;;  %v141_v24 = vld [vmem:[%s11526_s0] sm:$0xff] }
  0x86   :  { %8986 = vmatpush3.bf16.msra.mxu1 %v10231_v11  ;;  %v193_v20 = vld [vmem:[%s11523_s25 + $0x18] sm:$0xff]  ;;  %v10267_v23 = vpack.c.bf16 %v148_v17, %v147_v16  ;;  %7798 = vmatprep.mubr.msk.f32.mxu1 %vm200_vm0, %v196_v19  ;;  %v142_v25 = vld [vmem:[%s11526_s0 + $0x8] sm:$0xff]  ;;  %v143_v29 = vld [vmem:[%s11526_s0 + $0x10] sm:$0xff] }
  0x87   :  { %8998 = vmatpush3.bf16.msra.mxu0 %v10233_v12  ;;  %v197_v21 = vld [vmem:[%s11523_s25 + $0x38] sm:$0xff]  ;;  %8987 = vmatprep.subr.bf16.mxu1 %v10022_v14  ;;  %v10283_v27 = vpack.c.bf16 %v142_v25, %v141_v24 }
  0x88   :  { %8999 = vmatprep.subr.bf16.mxu0 %v10022_v14  ;;  %7793 = vmatmul.mubr.msk.f32.gmra.mrb[2].mxu0 %vm200_vm0, %v193_v20  ;;  %v144_v30 = vld [vmem:[%s11526_s0 + $0x18] sm:$0xff] }
  0x89   :  { %7799 = vmatmul.mubr.msk.f32.gmra.mrb[2].mxu1 %vm200_vm0, %v197_v21  ;;  %7831 = vmatprep.mubr.msk.f32.mxu0 %vm10023_vm1, %v10024_v28  ;;  %v10300_v31 = vpack.c.bf16 %v144_v30, %v143_v29 }
  0x8a   :  { %8989 = vmatpush3.bf16.msra.mxu1 %v10265_v22  ;;  %7809 = vmatprep.mubr.msk.f32.mxu1 %vm10023_vm1, %v10024_v28 }
  0x8b   :  { %9001 = vmatpush3.bf16.msra.mxu0 %v10267_v23  ;;  %8990 = vmatprep.subr.bf16.mxu1 %v10022_v14 }
  0x8c   :  { %9008 = vmatprep.subr.bf16.mxu0 %v10022_v14 }
  0x8d   :  { %7810 = vmatmul.mubr.f32.vlgmr.msra.gmra.mrb[4].mxu1 %v10024_v28 }
  0x8e   :  { %7832 = vmatmul.mubr.f32.vlgmr.msra.gmra.mrb[4].mxu0 %v10024_v28  ;;  %8992 = vmatpush3.bf16.msra.mxu1 %v10283_v27 }
  0x8f   :  { %7820 = vmatprep.mubr.msk.f32.mxu1 %vm10023_vm1, %v10024_v28  ;;  %8993 = vmatprep.subr.bf16.mxu1 %v10022_v14 }
  0x90   :  { %9010 = vmatpush3.bf16.msra.mxu0 %v10231_v11  ;;  %7853 = vmatprep.mubr.msk.f32.mxu0 %vm10023_vm1, %v10024_v28 }
  0x91   :  { %9011 = vmatprep.subr.bf16.mxu0 %v10022_v14 }
  0x92   :  { %8995 = vmatpush3.bf16.msra.mxu1 %v10300_v31 }
  0x93   :  { %9002 = vmatprep.subr.bf16.mxu1 %v10022_v14 }
  0x94   :  { %9013 = vmatpush3.bf16.msra.mxu0 %v10265_v22 }
  0x95   :  { %7821 = vmatmul.mubr.f32.vlgmr.msra.gmra.mrb[6].mxu1 %v10024_v28  ;;  %9020 = vmatprep.subr.bf16.mxu0 %v10022_v14 }
  0x96   :  { %7842 = vmatprep.mubr.msk.f32.mxu1 %vm10023_vm1, %v10024_v28  ;;  %9004 = vmatpush3.bf16.msra.mxu1 %v10326_v35 }
  0x97   :  { %9005 = vmatprep.subr.bf16.mxu1 %v10022_v14 }
  0x9a   :  { %9007 = vmatpush3.bf16.msra.mxu1 %v10332_v37 }
  0x9b   :  { %9014 = vmatprep.subr.bf16.mxu1 %v10022_v14 }
  0x9d   :  { %7843 = vmatmul.mubr.f32.vlgmr.msra.gmra.mrb[8].mxu1 %v10024_v28 }
  0x9e   :  { %9016 = vmatpush3.bf16.msra.mxu1 %v10283_v27  ;;  %7864 = vmatprep.mubr.msk.f32.mxu1 %vm10023_vm1, %v10024_v28 }
  0x9f   :  { %9017 = vmatprep.subr.bf16.mxu1 %v10022_v14 }
  0xa2   :  { %9019 = vmatpush3.bf16.msra.mxu1 %v10300_v31 }
  0xa3   :  { %9026 = vmatprep.subr.bf16.mxu1 %v10022_v14 }
  0xf3   :  { %v10367_v56 = vpop.permute.xlu0 %368 }
 0x156   :  { %v10344_v38 = vpop.f32.mrb[0].mxu0 }
 0x157   :  { %v291_v40 = vpop.f32.mrb[1].mxu0 }
 0x158   :  { %v10346_v39 = vpop.f32.mrb[0].mxu1  ;;  %v337_v47 = vadd.f32 %v10357_v44, %v291_v40  ;;  %v371_v57 = vadd.f32 %v10367_v56, %v291_v40 }
 0x159   :  { %v10348_v41 = vpop.f32.mrb[1].mxu1 }
 0x15b   :  { %v10350_v42 = vpop.f32.mrb[2].mxu0 }
 0x15c   :  { %v10352_v43 = vpop.f32.mrb[2].mxu1  ;;  %v10359_v45 = vpop.f32.mrb[3].mxu0 }
 0x15d   :  { %v10361_v46 = vpop.f32.mrb[3].mxu1 }
 0x160   :  { %v465_v48 = vpop.f32.mrb[4].mxu1 }
 0x161   :  { %v623_v49 = vpop.f32.mrb[4].mxu0  ;;  %v469_v50 = vadd.f32 %v465_v48, %v337_v47  ;;  %v7811_v52 = vpop.f32.mrb[5].mxu1 }
 0x162   :  { %628 = vrot.lane.b32.xlu0 %v623_v49, %s10025_s8  ;;  %v7833_v51 = vpop.f32.mrb[5].mxu0 }
 0x163   :  { %v470_v0 = vsub.f32 0.0, %v469_v50 }
 0x165   :  { %v471_v1 = vmul.f32 1.442695, %v470_v0 }
 0x168   :  { %v542_v53 = vpop.f32.mrb[6].mxu1 }
 0x169   :  { %547 = vrot.lane.b32.xlu0 %v542_v53, %s10026_s7  ;;  %v7822_v54 = vpop.f32.mrb[7].mxu1 }
 0x16d   :  { %385 = vrot.lane.b32.xlu0 %v7107_v55, %s10027_s29 }
 0x170   :  { %v699_v60 = vpop.f32.mrb[8].mxu1 }
 0x171   :  { %v7844_v61 = vpop.f32.mrb[9].mxu1 }
 0x172   :  { %v372_v61 = vadd.f32 %v10344_v38, %v10367_v56 }
 0x1d4   :  { %v629_v58 = vpop.permute.xlu0 %628 }
 0x1d5   :  { %v631_v59 = vadd.f32 %v629_v58, %v371_v57 }
 0x1d7   :  { %9684 = vtanh.f32 %v631_v59 }
 0x1d8   :  { %9686 = vpow2.f32 %v471_v1 }
 0x1db   :  { %v548_v9 = vpop.permute.xlu0 %547 }
 0x1df   :  { %v10381_v25 = vpop.permute.xlu0 %385 }
 0x1e0   :  { %v388_v29 = vadd.f32 %v10381_v25, %v291_v40 }
 0x1e1   :  { %v9685_v62 = vpop.eup %9684 }
 0x1e2   :  { %716 = vrot.lane.b32.xlu1 %v9685_v62, %s10025_s8  ;;  %v9687_v2 = vpop.eup %9686 }
 0x1e3   :  { %v473_v3 = vadd.f32 1.0, %v9687_v2 }
 0x1e5   :  { %9688 = vrcp.f32 %v473_v3 }
 0x1e6   :  { %351 = vrot.lane.b32.xlu1 %v7105_v63, %s10026_s7 }
 0x1ef   :  { %v9689_v4 = vpop.eup %9688 }
 0x254   :  { %v717_v5 = vpop.permute.xlu1 %716 }
 0x255   :  { %v719_v6 = vmul.f32 %v9689_v4, %v717_v5 }
 0x257   :  { %721 = vrot.lane.b32.xlu1 %v719_v6, %s10026_s7 }
 0x258   :  { %v10374_v7 = vpop.permute.xlu1 %351 }
 0x259   :  { %v354_v8 = vadd.f32 %v10374_v7, %v291_v40  ;;  %v338_v40 = vadd.f32 %v10344_v38, %v10357_v44 }
 0x25b   :  { %704 = vrot.lane.b32.xlu1 %v699_v60, %s10027_s29  ;;  %v550_v10 = vadd.f32 %v548_v9, %v354_v8 }
 0x25d   :  { %v551_v13 = vsub.f32 0.0, %v550_v10  ;;  %v355_v10 = vadd.f32 %v10344_v38, %v10374_v7 }
 0x25f   :  { %v552_v15 = vmul.f32 1.442695, %v551_v13 }
 0x261   :  { %9690 = vpow2.f32 %v552_v15 }
 0x26b   :  { %v9691_v16 = vpop.eup %9690 }
 0x26c   :  { %v554_v17 = vadd.f32 1.0, %v9691_v16 }
 0x26e   :  { %9692 = vrcp.f32 %v554_v17 }
 0x278   :  { %v9693_v18 = vpop.eup %9692 }
 0x279   :  { %v714_v19 = vmul.f32 0.0, %v9693_v18 }
 0x2c9   :  { %v722_v20 = vpop.permute.xlu1 %721 }
 0x2ca   :  { %v10377_v21 = vadd.f32 %v722_v20, %v714_v19 }
 0x2cc   :  { %9694 = vtanh.f32 %v10377_v21 }
 0x2cd   :  { %v705_v26 = vpop.permute.xlu1 %704 }
 0x2ce   :  { %v707_v30 = vadd.f32 %v705_v26, %v388_v29 }
 0x2d0   :  { %v708_v32 = vsub.f32 0.0, %v707_v30 }
 0x2d2   :  { %v709_v33 = vmul.f32 1.442695, %v708_v32  ;;  %v389_v32 = vadd.f32 %v10344_v38, %v10381_v25  ;;  %v339_v38 = vadd.f32 %v10357_v44, %v10359_v45 }
 0x2d4   :  { %9696 = vpow2.f32 %v709_v33 }
 0x2d6   :  { %v9695_v24 = vpop.eup %9694 }
 0x2d7   :  { %727 = vrot.lane.b32.xlu0 %v9695_v24, %s10025_s8 }
 0x2de   :  { %v9697_v34 = vpop.eup %9696 }
 0x2df   :  { %v711_v36 = vadd.f32 1.0, %v9697_v34 }
 0x2e1   :  { %9698 = vrcp.f32 %v711_v36 }
 0x2eb   :  { %v9699_v47 = vpop.eup %9698 }
 0x349   :  { %v728_v48 = vpop.permute.xlu0 %727 }
 0x34a   :  { %v730_v49 = vmul.f32 %v9699_v47, %v728_v48 }
 0x34c   :  { %732 = vrot.lane.b32.xlu1 %v730_v49, %s10026_s7 }
 0x3be   :  { %v733_v50 = vpop.permute.xlu1 %732 }
 0x3bf   :  { %7854 = vmatmul.mubr.msk.f32.vlgmr.msra.gmra.mrb[6].mxu0 %vm395_vm2, %v733_v50  ;;  %7865 = vmatmul.mubr.msk.f32.vlgmr.msra.gmra.mrb[10].mxu1 %vm395_vm2, %v733_v50 }
 0x3c0   :  { %9022 = vmatpush3.bf16.msra.mxu0 %v10233_v12  ;;  %9028 = vmatpush3.bf16.msra.mxu1 %v10326_v35 }
 0x3c1   :  { %9023 = vmatprep.subr.bf16.mxu0 %v10022_v14  ;;  %9029 = vmatprep.subr.bf16.mxu1 %v10022_v14 }
 0x3c2   :  { %7875 = vmatprep.mubr.msk.f32.mxu0 %vm10023_vm1, %v10024_v28  ;;  %7886 = vmatprep.mubr.msk.f32.mxu1 %vm10023_vm1, %v10024_v28 }
 0x3c4   :  { %9025 = vmatpush3.bf16.msra.mxu0 %v10267_v23  ;;  %9031 = vmatpush3.bf16.msra.mxu1 %v10332_v37 }
 0x3c5   :  { %9032 = vmatprep.subr.bf16.mxu0 %v10022_v14  ;;  %9038 = vmatprep.subr.bf16.mxu1 %v10022_v14 }
 0x3c7   :  { %7876 = vmatmul.mubr.msk.f32.vlgmr.msra.gmra.mrb[8].mxu0 %vm395_vm2, %v733_v50  ;;  %7887 = vmatmul.mubr.msk.f32.vlgmr.msra.gmra.mrb[12].mxu1 %vm395_vm2, %v733_v50 }
 0x3c8   :  { %9034 = vmatpush3.bf16.msra.mxu0 %v10231_v11  ;;  %9040 = vmatpush3.bf16.msra.mxu1 %v10283_v27 }
 0x3c9   :  { %9035 = vmatprep.subr.bf16.mxu0 %v10022_v14  ;;  %9041 = vmatprep.subr.bf16.mxu1 %v10022_v14 }
 0x3ca   :  { %7897 = vmatprep.mubr.msk.f32.mxu0 %vm10023_vm1, %v10024_v28  ;;  %7908 = vmatprep.mubr.msk.f32.mxu1 %vm10023_vm1, %v10024_v28 }
 0x3cc   :  { %9037 = vmatpush3.bf16.msra.mxu0 %v10265_v22  ;;  %9043 = vmatpush3.bf16.msra.mxu1 %v10300_v31 }
 0x3cd   :  { %9044 = vmatprep.subr.bf16.mxu0 %v10022_v14  ;;  %9050 = vmatprep.subr.bf16.mxu1 %v10022_v14 }
 0x492   :  { %v802_v51 = vpop.f32.mrb[6].mxu0  ;;  %v879_v52 = vpop.f32.mrb[10].mxu1 }
 0x493   :  { %v806_v53 = vadd.f32 %v802_v51, %v338_v40  ;;  %v7855_v54 = vpop.f32.mrb[7].mxu0  ;;  %v7866_v55 = vpop.f32.mrb[11].mxu1 }
 0x495   :  { %v807_v1 = vsub.f32 0.0, %v806_v53 }
 0x497   :  { %v808_v2 = vmul.f32 1.442695, %v807_v1 }
 0x49a   :  { %v960_v57 = vpop.f32.mrb[8].mxu0  ;;  %v1036_v58 = vpop.f32.mrb[12].mxu1 }
 0x49b   :  { %965 = vrot.lane.b32.xlu0 %v960_v57, %s10025_s8  ;;  %v7877_v59 = vpop.f32.mrb[9].mxu0  ;;  %v7888_v60 = vpop.f32.mrb[13].mxu1 }
 0x49f   :  { %884 = vrot.lane.b32.xlu0 %v879_v52, %s10026_s7 }
 0x4a3   :  { %1041 = vrot.lane.b32.xlu0 %v1036_v58, %s10027_s29 }
 0x50d   :  { %v966_v62 = vpop.permute.xlu0 %965 }
 0x50e   :  { %v968_v63 = vadd.f32 %v966_v62, %v372_v61  ;;  %v373_v61 = vadd.f32 %v10367_v56, %v10359_v45 }
 0x510   :  { %9700 = vtanh.f32 %v968_v63 }
 0x511   :  { %9702 = vpow2.f32 %v808_v2  ;;  %v885_v9 = vpop.permute.xlu0 %884 }
 0x512   :  { %v887_v13 = vadd.f32 %v885_v9, %v355_v10  ;;  %v356_v10 = vadd.f32 %v10374_v7, %v10359_v45 }
 0x514   :  { %v888_v15 = vsub.f32 0.0, %v887_v13 }
 0x515   :  { %v1042_v30 = vpop.permute.xlu0 %1041 }
 0x516   :  { %v889_v16 = vmul.f32 1.442695, %v888_v15  ;;  %v1044_v33 = vadd.f32 %v1042_v30, %v389_v32 }
 0x518   :  { %v1045_v34 = vsub.f32 0.0, %v1044_v33  ;;  %v390_v33 = vadd.f32 %v10381_v25, %v10359_v45  ;;  %v340_v45 = vadd.f32 %v10350_v42, %v10357_v44 }
 0x51a   :  { %v9701_v0 = vpop.eup %9700  ;;  %v1046_v36 = vmul.f32 1.442695, %v1045_v34 }
 0x51b   :  { %1053 = vrot.lane.b32.xlu1 %v9701_v0, %s10025_s8  ;;  %v9703_v3 = vpop.eup %9702 }
 0x51c   :  { %v810_v4 = vadd.f32 1.0, %v9703_v3 }
 0x51e   :  { %9704 = vrcp.f32 %v810_v4 }
 0x51f   :  { %9706 = vpow2.f32 %v889_v16 }
 0x528   :  { %v9705_v5 = vpop.eup %9704 }
 0x529   :  { %v9707_v17 = vpop.eup %9706 }
 0x52a   :  { %v891_v18 = vadd.f32 1.0, %v9707_v17 }
 0x52c   :  { %9708 = vrcp.f32 %v891_v18 }
 0x536   :  { %v9709_v19 = vpop.eup %9708 }
 0x537   :  { %v1051_v20 = vmul.f32 %v9709_v19, %v10377_v21 }
 0x58d   :  { %v1054_v6 = vpop.permute.xlu1 %1053 }
 0x58e   :  { %v1056_v8 = vmul.f32 %v9705_v5, %v1054_v6 }
 0x590   :  { %1058 = vrot.lane.b32.xlu1 %v1056_v8, %s10026_s7 }
 0x602   :  { %v1059_v24 = vpop.permute.xlu1 %1058 }
 0x603   :  { %v10425_v26 = vadd.f32 %v1059_v24, %v1051_v20 }
 0x605   :  { %9710 = vtanh.f32 %v10425_v26 }
 0x606   :  { %9712 = vpow2.f32 %v1046_v36 }
 0x60f   :  { %v9711_v29 = vpop.eup %9710 }
 0x610   :  { %1064 = vrot.lane.b32.xlu1 %v9711_v29, %s10025_s8  ;;  %v9713_v47 = vpop.eup %9712 }
 0x611   :  { %v1048_v48 = vadd.f32 1.0, %v9713_v47 }
 0x613   :  { %9714 = vrcp.f32 %v1048_v48 }
 0x61d   :  { %v9715_v21 = vpop.eup %9714 }
 0x682   :  { %v1065_v49 = vpop.permute.xlu1 %1064 }
 0x683   :  { %v1067_v50 = vmul.f32 %v9715_v21, %v1065_v49 }
 0x685   :  { %1069 = vrot.lane.b32.xlu0 %v1067_v50, %s10026_s7 }
 0x6f7   :  { %v1070_v40 = vpop.permute.xlu0 %1069 }
 0x6f8   :  { %7898 = vmatmul.mubr.msk.f32.vlgmr.msra.gmra.mrb[10].mxu0 %vm395_vm2, %v1070_v40  ;;  %7909 = vmatmul.mubr.msk.f32.vlgmr.msra.gmra.mrb[14].mxu1 %vm395_vm2, %v1070_v40 }
 0x6f9   :  { %9046 = vmatpush3.bf16.msra.mxu0 %v10233_v12  ;;  %9052 = vmatpush3.bf16.msra.mxu1 %v10326_v35 }
 0x6fa   :  { %9047 = vmatprep.subr.bf16.mxu0 %v10022_v14  ;;  %9053 = vmatprep.subr.bf16.mxu1 %v10022_v14 }
 0x6fb   :  { %7919 = vmatprep.mubr.msk.f32.mxu0 %vm10023_vm1, %v10024_v28  ;;  %7930 = vmatprep.mubr.msk.f32.mxu1 %vm10023_vm1, %v10024_v28 }
 0x6fd   :  { %9049 = vmatpush3.bf16.msra.mxu0 %v10267_v23  ;;  %9055 = vmatpush3.bf16.msra.mxu1 %v10332_v37 }
 0x6fe   :  { %9056 = vmatprep.subr.bf16.mxu0 %v10022_v14  ;;  %9062 = vmatprep.subr.bf16.mxu1 %v10022_v14 }
 0x700   :  { %7920 = vmatmul.mubr.msk.f32.vlgmr.msra.gmra.mrb[12].mxu0 %vm395_vm2, %v1070_v40  ;;  %7931 = vmatmul.mubr.msk.f32.vlgmr.msra.gmra.mrb[16].mxu1 %vm395_vm2, %v1070_v40 }
 0x701   :  { %9058 = vmatpush3.bf16.msra.mxu0 %v10231_v11  ;;  %9064 = vmatpush3.bf16.msra.mxu1 %v10283_v27 }
 0x702   :  { %9059 = vmatprep.subr.bf16.mxu0 %v10022_v14  ;;  %9065 = vmatprep.subr.bf16.mxu1 %v10022_v14 }
 0x703   :  { %7941 = vmatprep.mubr.msk.f32.mxu0 %vm10023_vm1, %v10024_v28  ;;  %7952 = vmatprep.mubr.msk.f32.mxu1 %vm10023_vm1, %v10024_v28 }
 0x705   :  { %9061 = vmatpush3.bf16.msra.mxu0 %v10265_v22  ;;  %9067 = vmatpush3.bf16.msra.mxu1 %v10300_v31 }
 0x706   :  { %9068 = vmatprep.subr.bf16.mxu0 %v10022_v14  ;;  %9074 = vmatprep.subr.bf16.mxu1 %v10022_v14 }
 0x7cb   :  { %v1139_v51 = vpop.f32.mrb[10].mxu0  ;;  %v1216_v52 = vpop.f32.mrb[14].mxu1 }
 0x7cc   :  { %v1143_v53 = vadd.f32 %v1139_v51, %v339_v38  ;;  %v7899_v54 = vpop.f32.mrb[11].mxu0  ;;  %v7910_v55 = vpop.f32.mrb[15].mxu1 }
 0x7ce   :  { %v1144_v1 = vsub.f32 0.0, %v1143_v53 }
 0x7d0   :  { %v1145_v2 = vmul.f32 1.442695, %v1144_v1 }
 0x7d3   :  { %v1297_v57 = vpop.f32.mrb[12].mxu0  ;;  %v1373_v58 = vpop.f32.mrb[16].mxu1 }
 0x7d4   :  { %1302 = vrot.lane.b32.xlu1 %v1297_v57, %s10025_s8  ;;  %v7921_v59 = vpop.f32.mrb[13].mxu0  ;;  %v7932_v60 = vpop.f32.mrb[17].mxu1 }
 0x7d5   :  { %v374_v60 = vadd.f32 %v10350_v42, %v10367_v56 }
 0x7d8   :  { %1221 = vrot.lane.b32.xlu1 %v1216_v52, %s10026_s7 }
 0x7dc   :  { %1378 = vrot.lane.b32.xlu1 %v1373_v58, %s10027_s29 }
 0x846   :  { %v1303_v62 = vpop.permute.xlu1 %1302 }
 0x847   :  { %v1305_v63 = vadd.f32 %v1303_v62, %v373_v61 }
 0x849   :  { %9716 = vtanh.f32 %v1305_v63 }
 0x84a   :  { %9718 = vpow2.f32 %v1145_v2  ;;  %v1222_v9 = vpop.permute.xlu1 %1221 }
 0x84b   :  { %v1224_v13 = vadd.f32 %v1222_v9, %v356_v10  ;;  %v357_v9 = vadd.f32 %v10350_v42, %v10374_v7 }
 0x84d   :  { %v1225_v15 = vsub.f32 0.0, %v1224_v13 }
 0x84e   :  { %v1379_v32 = vpop.permute.xlu1 %1378 }
 0x84f   :  { %v1226_v16 = vmul.f32 1.442695, %v1225_v15  ;;  %v1381_v34 = vadd.f32 %v1379_v32, %v390_v33  ;;  %v391_v33 = vadd.f32 %v10350_v42, %v10381_v25  ;;  %v341_v42 = vadd.f32 %v10357_v44, %v10348_v41 }
 0x851   :  { %v1382_v36 = vsub.f32 0.0, %v1381_v34 }
 0x853   :  { %v9717_v0 = vpop.eup %9716  ;;  %v1383_v47 = vmul.f32 1.442695, %v1382_v36 }
 0x854   :  { %1390 = vrot.lane.b32.xlu0 %v9717_v0, %s10025_s8  ;;  %v9719_v3 = vpop.eup %9718 }
 0x855   :  { %v1147_v4 = vadd.f32 1.0, %v9719_v3 }
 0x857   :  { %9720 = vrcp.f32 %v1147_v4 }
 0x858   :  { %9722 = vpow2.f32 %v1226_v16 }
 0x861   :  { %v9721_v5 = vpop.eup %9720 }
 0x862   :  { %v9723_v17 = vpop.eup %9722 }
 0x863   :  { %v1228_v18 = vadd.f32 1.0, %v9723_v17 }
 0x865   :  { %9724 = vrcp.f32 %v1228_v18 }
 0x86f   :  { %v9725_v19 = vpop.eup %9724 }
 0x870   :  { %v1388_v20 = vmul.f32 %v9725_v19, %v10425_v26 }
 0x8c6   :  { %v1391_v6 = vpop.permute.xlu0 %1390 }
 0x8c7   :  { %v1393_v8 = vmul.f32 %v9721_v5, %v1391_v6 }
 0x8c9   :  { %1395 = vrot.lane.b32.xlu0 %v1393_v8, %s10026_s7 }
 0x93b   :  { %v1396_v24 = vpop.permute.xlu0 %1395 }
 0x93c   :  { %v10472_v29 = vadd.f32 %v1396_v24, %v1388_v20 }
 0x93e   :  { %9726 = vtanh.f32 %v10472_v29 }
 0x93f   :  { %9728 = vpow2.f32 %v1383_v47 }
 0x948   :  { %v9727_v30 = vpop.eup %9726 }
 0x949   :  { %1401 = vrot.lane.b32.xlu0 %v9727_v30, %s10025_s8  ;;  %v9729_v48 = vpop.eup %9728 }
 0x94a   :  { %v1385_v21 = vadd.f32 1.0, %v9729_v48 }
 0x94c   :  { %9730 = vrcp.f32 %v1385_v21 }
 0x956   :  { %v9731_v26 = vpop.eup %9730 }
 0x9bb   :  { %v1402_v49 = vpop.permute.xlu0 %1401 }
 0x9bc   :  { %v1404_v50 = vmul.f32 %v9731_v26, %v1402_v49 }
 0x9be   :  { %1406 = vrot.lane.b32.xlu1 %v1404_v50, %s10026_s7 }
 0xa30   :  { %v1407_v40 = vpop.permute.xlu1 %1406 }
 0xa31   :  { %7942 = vmatmul.mubr.msk.f32.vlgmr.msra.gmra.mrb[14].mxu0 %vm395_vm2, %v1407_v40  ;;  %7953 = vmatmul.mubr.msk.f32.vlgmr.msra.gmra.mrb[18].mxu1 %vm395_vm2, %v1407_v40 }
 0xa32   :  { %9070 = vmatpush3.bf16.msra.mxu0 %v10233_v12  ;;  %9076 = vmatpush3.bf16.msra.mxu1 %v10326_v35 }
 0xa33   :  { %9071 = vmatprep.subr.bf16.mxu0 %v10022_v14  ;;  %9077 = vmatprep.subr.bf16.mxu1 %v10022_v14 }
 0xa34   :  { %7963 = vmatprep.mubr.msk.f32.mxu0 %vm10023_vm1, %v10024_v28  ;;  %7974 = vmatprep.mubr.msk.f32.mxu1 %vm10023_vm1, %v10024_v28 }
 0xa36   :  { %9073 = vmatpush3.bf16.msra.mxu0 %v10267_v23  ;;  %9079 = vmatpush3.bf16.msra.mxu1 %v10332_v37 }
 0xa37   :  { %9080 = vmatprep.subr.bf16.mxu0 %v10022_v14  ;;  %9086 = vmatprep.subr.bf16.mxu1 %v10022_v14 }
 0xa39   :  { %7964 = vmatmul.mubr.msk.f32.vlgmr.msra.gmra.mrb[16].mxu0 %vm395_vm2, %v1407_v40  ;;  %7975 = vmatmul.mubr.msk.f32.vlgmr.msra.gmra.mrb[20].mxu1 %vm395_vm2, %v1407_v40 }
 0xa3a   :  { %9082 = vmatpush3.bf16.msra.mxu0 %v10231_v11  ;;  %9088 = vmatpush3.bf16.msra.mxu1 %v10283_v27 }
 0xa3b   :  { %9083 = vmatprep.subr.bf16.mxu0 %v10022_v14  ;;  %9089 = vmatprep.subr.bf16.mxu1 %v10022_v14 }
 0xa3c   :  { %7985 = vmatprep.mubr.msk.f32.mxu0 %vm10023_vm1, %v10024_v28  ;;  %7996 = vmatprep.mubr.msk.f32.mxu1 %vm10023_vm1, %v10024_v28 }
 0xa3e   :  { %9085 = vmatpush3.bf16.msra.mxu0 %v10265_v22  ;;  %9091 = vmatpush3.bf16.msra.mxu1 %v10300_v31 }
 0xa3f   :  { %9092 = vmatprep.subr.bf16.mxu0 %v10022_v14  ;;  %9098 = vmatprep.subr.bf16.mxu1 %v10022_v14 }
 0xb04   :  { %v1476_v38 = vpop.f32.mrb[14].mxu0  ;;  %v1553_v51 = vpop.f32.mrb[18].mxu1 }
 0xb05   :  { %v1480_v52 = vadd.f32 %v1476_v38, %v340_v45  ;;  %v7943_v53 = vpop.f32.mrb[15].mxu0  ;;  %v7954_v54 = vpop.f32.mrb[19].mxu1 }
 0xb07   :  { %v1481_v0 = vsub.f32 0.0, %v1480_v52 }
 0xb09   :  { %v1482_v1 = vmul.f32 1.442695, %v1481_v0 }
 0xb0c   :  { %v1634_v55 = vpop.f32.mrb[16].mxu0  ;;  %v1710_v57 = vpop.f32.mrb[20].mxu1 }
 0xb0d   :  { %1639 = vrot.lane.b32.xlu0 %v1634_v55, %s10025_s8  ;;  %v7965_v58 = vpop.f32.mrb[17].mxu0  ;;  %v7976_v59 = vpop.f32.mrb[21].mxu1 }
 0xb0e   :  { %v375_v58 = vadd.f32 %v10367_v56, %v10348_v41 }
 0xb11   :  { %1558 = vrot.lane.b32.xlu0 %v1553_v51, %s10026_s7 }
 0xb15   :  { %1715 = vrot.lane.b32.xlu0 %v1710_v57, %s10027_s29 }
 0xb7f   :  { %v1640_v61 = vpop.permute.xlu0 %1639 }
 0xb80   :  { %v1642_v62 = vadd.f32 %v1640_v61, %v374_v60 }
 0xb82   :  { %9732 = vtanh.f32 %v1642_v62 }
 0xb83   :  { %9734 = vpow2.f32 %v1482_v1  ;;  %v1559_v8 = vpop.permute.xlu0 %1558 }
 0xb84   :  { %v1561_v10 = vadd.f32 %v1559_v8, %v357_v9 }
 0xb86   :  { %v1562_v13 = vsub.f32 0.0, %v1561_v10 }
 0xb87   :  { %v1716_v32 = vpop.permute.xlu0 %1715 }
 0xb88   :  { %v1563_v15 = vmul.f32 1.442695, %v1562_v13  ;;  %v1718_v34 = vadd.f32 %v1716_v32, %v391_v33  ;;  %v392_v32 = vadd.f32 %v10381_v25, %v10348_v41 }
 0xb8a   :  { %v1719_v36 = vsub.f32 0.0, %v1718_v34 }
 0xb8c   :  { %v9733_v63 = vpop.eup %9732  ;;  %v1720_v47 = vmul.f32 1.442695, %v1719_v36 }
 0xb8d   :  { %1727 = vrot.lane.b32.xlu1 %v9733_v63, %s10025_s8  ;;  %v9735_v2 = vpop.eup %9734 }
 0xb8e   :  { %v1484_v3 = vadd.f32 1.0, %v9735_v2 }
 0xb90   :  { %9736 = vrcp.f32 %v1484_v3 }
 0xb91   :  { %9738 = vpow2.f32 %v1563_v15 }
 0xb9a   :  { %v9737_v4 = vpop.eup %9736 }
 0xb9b   :  { %v9739_v16 = vpop.eup %9738 }
 0xb9c   :  { %v1565_v17 = vadd.f32 1.0, %v9739_v16 }
 0xb9e   :  { %9740 = vrcp.f32 %v1565_v17 }
 0xba8   :  { %v9741_v18 = vpop.eup %9740 }
 0xba9   :  { %v1725_v19 = vmul.f32 %v9741_v18, %v10472_v29 }
 0xbff   :  { %v1728_v5 = vpop.permute.xlu1 %1727 }
 0xc00   :  { %v1730_v6 = vmul.f32 %v9737_v4, %v1728_v5 }
 0xc02   :  { %1732 = vrot.lane.b32.xlu1 %v1730_v6, %s10026_s7  ;;  %v358_v6 = vadd.f32 %v10374_v7, %v10348_v41  ;;  %v342_v41 = vadd.f32 %v10346_v39, %v10357_v44 }
 0xc74   :  { %v1733_v20 = vpop.permute.xlu1 %1732 }
 0xc75   :  { %v10519_v24 = vadd.f32 %v1733_v20, %v1725_v19 }
 0xc77   :  { %9742 = vtanh.f32 %v10519_v24 }
 0xc78   :  { %9744 = vpow2.f32 %v1720_v47 }
 0xc81   :  { %v9743_v30 = vpop.eup %9742 }
 0xc82   :  { %1738 = vrot.lane.b32.xlu1 %v9743_v30, %s10025_s8  ;;  %v9745_v48 = vpop.eup %9744 }
 0xc83   :  { %v1722_v21 = vadd.f32 1.0, %v9745_v48 }
 0xc85   :  { %9746 = vrcp.f32 %v1722_v21 }
 0xc8f   :  { %v9747_v29 = vpop.eup %9746 }
 0xcf4   :  { %v1739_v26 = vpop.permute.xlu1 %1738 }
 0xcf5   :  { %v1741_v49 = vmul.f32 %v9747_v29, %v1739_v26 }
 0xcf7   :  { %1743 = vrot.lane.b32.xlu0 %v1741_v49, %s10026_s7 }
 0xd69   :  { %v1744_v50 = vpop.permute.xlu0 %1743 }
 0xd6a   :  { %7986 = vmatmul.mubr.msk.f32.vlgmr.msra.gmra.mrb[18].mxu0 %vm395_vm2, %v1744_v50  ;;  %7997 = vmatmul.mubr.msk.f32.vlgmr.msra.gmra.mrb[22].mxu1 %vm395_vm2, %v1744_v50 }
 0xd6b   :  { %9094 = vmatpush3.bf16.msra.mxu0 %v10233_v12  ;;  %9100 = vmatpush3.bf16.msra.mxu1 %v10326_v35 }
 0xd6c   :  { %9095 = vmatprep.subr.bf16.mxu0 %v10022_v14  ;;  %9101 = vmatprep.subr.bf16.mxu1 %v10022_v14 }
 0xd6d   :  { %8007 = vmatprep.mubr.msk.f32.mxu0 %vm10023_vm1, %v10024_v28  ;;  %8018 = vmatprep.mubr.msk.f32.mxu1 %vm10023_vm1, %v10024_v28 }
 0xd6f   :  { %9097 = vmatpush3.bf16.msra.mxu0 %v10267_v23  ;;  %9103 = vmatpush3.bf16.msra.mxu1 %v10332_v37 }
 0xd70   :  { %9104 = vmatprep.subr.bf16.mxu0 %v10022_v14  ;;  %9110 = vmatprep.subr.bf16.mxu1 %v10022_v14 }
 0xd72   :  { %8008 = vmatmul.mubr.msk.f32.vlgmr.msra.gmra.mrb[20].mxu0 %vm395_vm2, %v1744_v50  ;;  %8019 = vmatmul.mubr.msk.f32.vlgmr.msra.gmra.mrb[24].mxu1 %vm395_vm2, %v1744_v50 }
 0xd73   :  { %9106 = vmatpush3.bf16.msra.mxu0 %v10231_v11  ;;  %9112 = vmatpush3.bf16.msra.mxu1 %v10283_v27 }
 0xd74   :  { %9107 = vmatprep.subr.bf16.mxu0 %v10022_v14  ;;  %9113 = vmatprep.subr.bf16.mxu1 %v10022_v14 }
 0xd75   :  { %8029 = vmatprep.mubr.msk.f32.mxu0 %vm10023_vm1, %v10024_v28  ;;  %8040 = vmatprep.mubr.msk.f32.mxu1 %vm10023_vm1, %v10024_v28 }
 0xd77   :  { %9109 = vmatpush3.bf16.msra.mxu0 %v10265_v22  ;;  %9115 = vmatpush3.bf16.msra.mxu1 %v10300_v31 }
 0xd78   :  { %9116 = vmatprep.subr.bf16.mxu0 %v10022_v14  ;;  %9122 = vmatprep.subr.bf16.mxu1 %v10022_v14 }
 0xe3d   :  { %v1813_v40 = vpop.f32.mrb[18].mxu0  ;;  %v1890_v45 = vpop.f32.mrb[22].mxu1 }
 0xe3e   :  { %v1817_v38 = vadd.f32 %v1813_v40, %v341_v42  ;;  %v7987_v51 = vpop.f32.mrb[19].mxu0  ;;  %v7998_v52 = vpop.f32.mrb[23].mxu1 }
 0xe40   :  { %v1818_v62 = vsub.f32 0.0, %v1817_v38 }
 0xe42   :  { %v1819_v63 = vmul.f32 1.442695, %v1818_v62 }
 0xe45   :  { %v1971_v53 = vpop.f32.mrb[20].mxu0  ;;  %v2047_v54 = vpop.f32.mrb[24].mxu1 }
 0xe46   :  { %1976 = vrot.lane.b32.xlu1 %v1971_v53, %s10025_s8  ;;  %v8009_v55 = vpop.f32.mrb[21].mxu0  ;;  %v8020_v57 = vpop.f32.mrb[25].mxu1 }
 0xe4a   :  { %1895 = vrot.lane.b32.xlu1 %v1890_v45, %s10026_s7 }
 0xe4e   :  { %2052 = vrot.lane.b32.xlu1 %v2047_v54, %s10027_s29  ;;  %v376_v54 = vadd.f32 %v10346_v39, %v10367_v56 }
 0xeb8   :  { %v1977_v59 = vpop.permute.xlu1 %1976 }
 0xeb9   :  { %v1979_v60 = vadd.f32 %v1977_v59, %v375_v58 }
 0xebb   :  { %9748 = vtanh.f32 %v1979_v60 }
 0xebc   :  { %9750 = vpow2.f32 %v1819_v63  ;;  %v1896_v5 = vpop.permute.xlu1 %1895 }
 0xebd   :  { %v1898_v8 = vadd.f32 %v1896_v5, %v358_v6 }
 0xebf   :  { %v1899_v9 = vsub.f32 0.0, %v1898_v8 }
 0xec0   :  { %v2053_v30 = vpop.permute.xlu1 %2052 }
 0xec1   :  { %v1900_v10 = vmul.f32 1.442695, %v1899_v9  ;;  %v2055_v33 = vadd.f32 %v2053_v30, %v392_v32 }
 0xec3   :  { %v2056_v34 = vsub.f32 0.0, %v2055_v33 }
 0xec5   :  { %v9749_v61 = vpop.eup %9748  ;;  %v2057_v36 = vmul.f32 1.442695, %v2056_v34 }
 0xec6   :  { %2064 = vrot.lane.b32.xlu0 %v9749_v61, %s10025_s8  ;;  %v9751_v0 = vpop.eup %9750 }
 0xec7   :  { %v1821_v1 = vadd.f32 1.0, %v9751_v0 }
 0xec9   :  { %9752 = vrcp.f32 %v1821_v1 }
 0xeca   :  { %9754 = vpow2.f32 %v1900_v10 }
 0xed3   :  { %v9753_v2 = vpop.eup %9752 }
 0xed4   :  { %v9755_v13 = vpop.eup %9754 }
 0xed5   :  { %v1902_v15 = vadd.f32 1.0, %v9755_v13 }
 0xed7   :  { %9756 = vrcp.f32 %v1902_v15 }
 0xee1   :  { %v9757_v16 = vpop.eup %9756 }
 0xee2   :  { %v2062_v17 = vmul.f32 %v9757_v16, %v10519_v24 }
 0xf38   :  { %v2065_v3 = vpop.permute.xlu0 %2064 }
 0xf39   :  { %v2067_v4 = vmul.f32 %v9753_v2, %v2065_v3  ;;  %v359_v3 = vadd.f32 %v10346_v39, %v10374_v7 }
 0xf3b   :  { %2069 = vrot.lane.b32.xlu0 %v2067_v4, %s10026_s7 }
 0xfad   :  { %v2070_v18 = vpop.permute.xlu0 %2069 }
 0xfae   :  { %v10566_v19 = vadd.f32 %v2070_v18, %v2062_v17 }
 0xfb0   :  { %9758 = vtanh.f32 %v10566_v19 }
 0xfb1   :  { %9760 = vpow2.f32 %v2057_v36 }
 0xfba   :  { %v9759_v20 = vpop.eup %9758 }
 0xfbb   :  { %2075 = vrot.lane.b32.xlu0 %v9759_v20, %s10025_s8  ;;  %v9761_v47 = vpop.eup %9760  ;;  %v393_v20 = vadd.f32 %v10346_v39, %v10381_v25 }
 0xfbc   :  { %v2059_v48 = vadd.f32 1.0, %v9761_v47 }
 0xfbe   :  { %9762 = vrcp.f32 %v2059_v48 }
 0xfc8   :  { %v9763_v24 = vpop.eup %9762 }
0x102d   :  { %v2076_v21 = vpop.permute.xlu0 %2075 }
0x102e   :  { %v2078_v29 = vmul.f32 %v9763_v24, %v2076_v21 }
0x1030   :  { %2080 = vrot.lane.b32.xlu1 %v2078_v29, %s10026_s7 }
0x10a2   :  { %v2081_v26 = vpop.permute.xlu1 %2080 }
0x10a3   :  { %8030 = vmatmul.mubr.msk.f32.vlgmr.msra.gmra.mrb[22].mxu0 %vm395_vm2, %v2081_v26  ;;  %8041 = vmatmul.mubr.msk.f32.vlgmr.msra.gmra.mrb[26].mxu1 %vm395_vm2, %v2081_v26 }
0x10a4   :  { %9118 = vmatpush3.bf16.msra.mxu0 %v10233_v12  ;;  %9124 = vmatpush3.bf16.msra.mxu1 %v10326_v35 }
0x10a5   :  { %9119 = vmatprep.subr.bf16.mxu0 %v10022_v14  ;;  %9125 = vmatprep.subr.bf16.mxu1 %v10022_v14 }
0x10a6   :  { %8051 = vmatprep.mubr.msk.f32.mxu0 %vm10023_vm1, %v10024_v28  ;;  %8062 = vmatprep.mubr.msk.f32.mxu1 %vm10023_vm1, %v10024_v28 }
0x10a8   :  { %9121 = vmatpush3.bf16.msra.mxu0 %v10267_v23  ;;  %9127 = vmatpush3.bf16.msra.mxu1 %v10332_v37 }
0x10a9   :  { %9128 = vmatprep.subr.bf16.mxu0 %v10022_v14  ;;  %9134 = vmatprep.subr.bf16.mxu1 %v10022_v14 }
0x10ab   :  { %8052 = vmatmul.mubr.msk.f32.vlgmr.msra.gmra.mrb[24].mxu0 %vm395_vm2, %v2081_v26  ;;  %8063 = vmatmul.mubr.msk.f32.vlgmr.msra.gmra.mrb[28].mxu1 %vm395_vm2, %v2081_v26 }
0x10ac   :  { %9130 = vmatpush3.bf16.msra.mxu0 %v10231_v11  ;;  %9136 = vmatpush3.bf16.msra.mxu1 %v10283_v27 }
0x10ad   :  { %9131 = vmatprep.subr.bf16.mxu0 %v10022_v14  ;;  %9137 = vmatprep.subr.bf16.mxu1 %v10022_v14 }
0x10ae   :  { %8073 = vmatprep.mubr.msk.f32.mxu0 %vm10023_vm1, %v10024_v28  ;;  %8084 = vmatprep.mubr.msk.f32.mxu1 %vm10023_vm1, %v10024_v28 }
0x10b0   :  { %9133 = vmatpush3.bf16.msra.mxu0 %v10265_v22  ;;  %9139 = vmatpush3.bf16.msra.mxu1 %v10300_v31 }
0x10b1   :  { %9140 = vmatprep.subr.bf16.mxu0 %v10022_v14  ;;  %9146 = vmatprep.subr.bf16.mxu1 %v10022_v14 }
0x1176   :  { %v2150_v49 = vpop.f32.mrb[22].mxu0  ;;  %v2227_v50 = vpop.f32.mrb[26].mxu1 }
0x1177   :  { %v2154_v42 = vadd.f32 %v2150_v49, %v342_v41  ;;  %v8031_v40 = vpop.f32.mrb[23].mxu0  ;;  %v8042_v45 = vpop.f32.mrb[27].mxu1 }
0x1179   :  { %v2155_v59 = vsub.f32 0.0, %v2154_v42 }
0x117b   :  { %v2156_v60 = vmul.f32 1.442695, %v2155_v59 }
0x117e   :  { %v2308_v38 = vpop.f32.mrb[24].mxu0  ;;  %v2384_v51 = vpop.f32.mrb[28].mxu1 }
0x117f   :  { %2313 = vrot.lane.b32.xlu0 %v2308_v38, %s10025_s8  ;;  %v8053_v52 = vpop.f32.mrb[25].mxu0  ;;  %v8064_v53 = vpop.f32.mrb[29].mxu1 }
0x1183   :  { %2232 = vrot.lane.b32.xlu0 %v2227_v50, %s10026_s7 }
0x1187   :  { %2389 = vrot.lane.b32.xlu0 %v2384_v51, %s10027_s29 }
0x11f1   :  { %v2314_v55 = vpop.permute.xlu0 %2313 }
0x11f2   :  { %v2316_v57 = vadd.f32 %v2314_v55, %v376_v54  ;;  %v360_v55 = vadd.f32 %v10374_v7, %v10361_v46 }
0x11f4   :  { %9764 = vtanh.f32 %v2316_v57 }
0x11f5   :  { %9766 = vpow2.f32 %v2156_v60  ;;  %v2233_v2 = vpop.permute.xlu0 %2232 }
0x11f6   :  { %v2235_v4 = vadd.f32 %v2233_v2, %v359_v3 }
0x11f8   :  { %v2236_v5 = vsub.f32 0.0, %v2235_v4  ;;  %v394_v4 = vadd.f32 %v10381_v25, %v10361_v46 }
0x11f9   :  { %v2390_v18 = vpop.permute.xlu0 %2389 }
0x11fa   :  { %v2237_v6 = vmul.f32 1.442695, %v2236_v5  ;;  %v2392_v30 = vadd.f32 %v2390_v18, %v393_v20 }
0x11fc   :  { %v2393_v32 = vsub.f32 0.0, %v2392_v30 }
0x11fe   :  { %v9765_v58 = vpop.eup %9764  ;;  %v2394_v33 = vmul.f32 1.442695, %v2393_v32 }
0x11ff   :  { %2401 = vrot.lane.b32.xlu1 %v9765_v58, %s10025_s8  ;;  %v9767_v61 = vpop.eup %9766 }
0x1200   :  { %v2158_v62 = vadd.f32 1.0, %v9767_v61 }
0x1202   :  { %9768 = vrcp.f32 %v2158_v62 }
0x1203   :  { %9770 = vpow2.f32 %v2237_v6 }
0x120c   :  { %v9769_v63 = vpop.eup %9768 }
0x120d   :  { %v9771_v8 = vpop.eup %9770 }
0x120e   :  { %v2239_v9 = vadd.f32 1.0, %v9771_v8 }
0x1210   :  { %9772 = vrcp.f32 %v2239_v9 }
0x121a   :  { %v9773_v10 = vpop.eup %9772 }
0x121b   :  { %v2399_v13 = vmul.f32 %v9773_v10, %v10566_v19 }
0x1271   :  { %v2402_v0 = vpop.permute.xlu1 %2401 }
0x1272   :  { %v2404_v1 = vmul.f32 %v9769_v63, %v2402_v0 }
0x1274   :  { %2406 = vrot.lane.b32.xlu1 %v2404_v1, %s10026_s7 }
0x12e6   :  { %v2407_v15 = vpop.permute.xlu1 %2406 }
0x12e7   :  { %v10613_v16 = vadd.f32 %v2407_v15, %v2399_v13 }
0x12e9   :  { %9774 = vtanh.f32 %v10613_v16 }
0x12ea   :  { %9776 = vpow2.f32 %v2394_v33 }
0x12f3   :  { %v9775_v17 = vpop.eup %9774 }
0x12f4   :  { %2412 = vrot.lane.b32.xlu1 %v9775_v17, %s10025_s8  ;;  %v9777_v34 = vpop.eup %9776 }
0x12f5   :  { %v2396_v36 = vadd.f32 1.0, %v9777_v34  ;;  %v378_v34 = vadd.f32 %v10352_v43, %v10367_v56 }
0x12f7   :  { %9778 = vrcp.f32 %v2396_v36 }
0x1301   :  { %v9779_v19 = vpop.eup %9778 }
0x1366   :  { %v2413_v47 = vpop.permute.xlu1 %2412 }
0x1367   :  { %v2415_v48 = vmul.f32 %v9779_v19, %v2413_v47 }
0x1369   :  { %2417 = vrot.lane.b32.xlu0 %v2415_v48, %s10026_s7 }
0x13db   :  { %v2418_v24 = vpop.permute.xlu0 %2417 }
0x13dc   :  { %8074 = vmatmul.mubr.msk.f32.vlgmr.msra.gmra.mrb[26].mxu0 %vm395_vm2, %v2418_v24  ;;  %8085 = vmatmul.mubr.msk.f32.vlgmr.msra.gmra.mrb[30].mxu1 %vm395_vm2, %v2418_v24 }
0x13dd   :  { %9142 = vmatpush3.bf16.msra.mxu0 %v10233_v12  ;;  %9148 = vmatpush3.bf16.msra.mxu1 %v10326_v35 }
0x13de   :  { %9143 = vmatprep.subr.bf16.mxu0 %v10022_v14  ;;  %9149 = vmatprep.subr.bf16.mxu1 %v10022_v14 }
0x13df   :  { %8095 = vmatprep.mubr.msk.f32.mxu0 %vm10023_vm1, %v10024_v28  ;;  %8106 = vmatprep.mubr.msk.f32.mxu1 %vm10023_vm1, %v10024_v28 }
0x13e1   :  { %9145 = vmatpush3.bf16.msra.mxu0 %v10267_v23  ;;  %9151 = vmatpush3.bf16.msra.mxu1 %v10332_v37 }
0x13e2   :  { %9152 = vmatprep.subr.bf16.mxu0 %v10022_v14  ;;  %9158 = vmatprep.subr.bf16.mxu1 %v10022_v14 }
0x13e4   :  { %8096 = vmatmul.mubr.msk.f32.vlgmr.msra.gmra.mrb[28].mxu0 %vm395_vm2, %v2418_v24  ;;  %8107 = vmatmul.mubr.msk.f32.vlgmr.msra.gmra.mrb[32].mxu1 %vm395_vm2, %v2418_v24 }
0x13e5   :  { %9154 = vmatpush3.bf16.msra.mxu0 %v10231_v11  ;;  %9160 = vmatpush3.bf16.msra.mxu1 %v10283_v27  ;;  %v343_v11 = vadd.f32 %v10357_v44, %v10361_v46 }
0x13e6   :  { %9155 = vmatprep.subr.bf16.mxu0 %v10022_v14  ;;  %9161 = vmatprep.subr.bf16.mxu1 %v10022_v14 }
0x13e7   :  { %8117 = vmatprep.mubr.msk.f32.mxu0 %vm10023_vm1, %v10024_v28  ;;  %8128 = vmatprep.mubr.msk.f32.mxu1 %vm10023_vm1, %v10024_v28 }
0x13e9   :  { %9157 = vmatpush3.bf16.msra.mxu0 %v10265_v22  ;;  %9163 = vmatpush3.bf16.msra.mxu1 %v10300_v31  ;;  %v377_v31 = vadd.f32 %v10367_v56, %v10361_v46  ;;  %v154_v56 = vld [vmem:[%s11501_s10 + $0x8] sm:$0xff] }
0x13ea   :  { %9164 = vmatprep.subr.bf16.mxu0 %v10022_v14  ;;  %9170 = vmatprep.subr.bf16.mxu1 %v10022_v14 }
0x14af   :  { %v2487_v27 = vpop.f32.mrb[26].mxu0  ;;  %v2564_v35 = vpop.f32.mrb[30].mxu1 }
0x14b0   :  { %v2491_v37 = vadd.f32 %v2487_v27, %v343_v11  ;;  %v8075_v39 = vpop.f32.mrb[27].mxu0  ;;  %v8086_v21 = vpop.f32.mrb[31].mxu1 }
0x14b1   :  { %v156_v21 = vld [vmem:[%s11501_s10 + $0x18] sm:$0xff] }
0x14b2   :  { %v2492_v42 = vsub.f32 0.0, %v2491_v37  ;;  %v155_v37 = vld [vmem:[%s11501_s10 + $0x10] sm:$0xff] }
0x14b4   :  { %v2493_v40 = vmul.f32 1.442695, %v2492_v42 }
0x14b7   :  { %v2645_v29 = vpop.f32.mrb[28].mxu0  ;;  %v2721_v26 = vpop.f32.mrb[32].mxu1 }
0x14b8   :  { %2650 = vrot.lane.b32.xlu1 %v2645_v29, %s10025_s8  ;;  %v8097_v41 = vpop.f32.mrb[29].mxu0  ;;  %v8108_v22 = vpop.f32.mrb[33].mxu1  ;;  %v10704_v29 = vpack.c.bf16 %v156_v21, %v155_v37 }
0x14bc   :  { %2569 = vrot.lane.b32.xlu1 %v2564_v35, %s10026_s7  ;;  %v153_v35 = vld [vmem:[%s11501_s10] sm:$0xff] }
0x14bd   :  { %v10698_v39 = vpack.c.bf16 %v154_v56, %v153_v35  ;;  %v10830_v56 = vld [vmem:[%s11506_s15] ss:$0 sm:$0xff] }
0x14c0   :  { %2726 = vrot.lane.b32.xlu1 %v2721_v26, %s10027_s29 }
0x152a   :  { %v2651_v49 = vpop.permute.xlu1 %2650 }
0x152b   :  { %v2653_v44 = vadd.f32 %v2651_v49, %v377_v31  ;;  %v361_v49 = vadd.f32 %v10352_v43, %v10374_v7  ;;  %v159_v7 = vld [vmem:[%s11503_s12 + $0x8] sm:$0xff] }
0x152d   :  { %9780 = vtanh.f32 %v2653_v44 }
0x152e   :  { %9782 = vpow2.f32 %v2493_v40  ;;  %v2570_v54 = vpop.permute.xlu1 %2569 }
0x152f   :  { %v2572_v57 = vadd.f32 %v2570_v54, %v360_v55 }
0x1531   :  { %v2573_v58 = vsub.f32 0.0, %v2572_v57  ;;  %v160_v57 = vld [vmem:[%s11503_s12 + $0x10] sm:$0xff] }
0x1532   :  { %v2727_v3 = vpop.permute.xlu1 %2726 }
0x1533   :  { %v2574_v59 = vmul.f32 1.442695, %v2573_v58  ;;  %v2729_v5 = vadd.f32 %v2727_v3, %v394_v4  ;;  %v161_v58 = vld [vmem:[%s11503_s12 + $0x18] sm:$0xff] }
0x1535   :  { %v2730_v6 = vsub.f32 0.0, %v2729_v5 }
0x1537   :  { %v9781_v50 = vpop.eup %9780  ;;  %v2731_v8 = vmul.f32 1.442695, %v2730_v6 }
0x1538   :  { %2738 = vrot.lane.b32.xlu0 %v9781_v50, %s10025_s8  ;;  %v9783_v45 = vpop.eup %9782 }
0x1539   :  { %v2495_v38 = vadd.f32 1.0, %v9783_v45 }
0x153b   :  { %9784 = vrcp.f32 %v2495_v38 }
0x153c   :  { %9786 = vpow2.f32 %v2574_v59  ;;  %v10739_v59 = vpack.c.bf16 %v161_v58, %v160_v57 }
0x1545   :  { %v9785_v51 = vpop.eup %9784 }
0x1546   :  { %v9787_v60 = vpop.eup %9786 }
0x1547   :  { %v2576_v61 = vadd.f32 1.0, %v9787_v60  ;;  %v162_v60 = vld [vmem:[%s11503_s12 + $0x20] sm:$0xff] }
0x1549   :  { %9788 = vrcp.f32 %v2576_v61  ;;  %v163_v61 = vld [vmem:[%s11503_s12 + $0x28] sm:$0xff] }
0x1553   :  { %v9789_v62 = vpop.eup %9788 }
0x1554   :  { %v2736_v63 = vmul.f32 %v9789_v62, %v10613_v16  ;;  %v10749_v62 = vpack.c.bf16 %v163_v61, %v162_v60 }
0x15aa   :  { %v2739_v52 = vpop.permute.xlu0 %2738 }
0x15ab   :  { %v2741_v53 = vmul.f32 %v9785_v51, %v2739_v52 }
0x15ad   :  { %2743 = vrot.lane.b32.xlu0 %v2741_v53, %s10026_s7 }
0x161f   :  { %v2744_v0 = vpop.permute.xlu0 %2743 }
0x1620   :  { %v10660_v1 = vadd.f32 %v2744_v0, %v2736_v63  ;;  %v164_v63 = vld [vmem:[%s11503_s12 + $0x30] sm:$0xff]  ;;  %v165_v0 = vld [vmem:[%s11503_s12 + $0x38] sm:$0xff] }
0x1622   :  { %9790 = vtanh.f32 %v10660_v1 }
0x1623   :  { %9792 = vpow2.f32 %v2731_v8 }
0x162c   :  { %v9791_v2 = vpop.eup %9790 }
0x162d   :  { %2749 = vrot.lane.b32.xlu0 %v9791_v2, %s10025_s8  ;;  %v9793_v9 = vpop.eup %9792  ;;  %v10763_v2 = vld [vmem:[#allocation9] ss:$0 sm:$0xff] }
0x162e   :  { %v2733_v10 = vadd.f32 1.0, %v9793_v9 }
0x1630   :  { %9794 = vrcp.f32 %v2733_v10 }
0x163a   :  { %v9795_v13 = vpop.eup %9794 }
0x169f   :  { %v2750_v15 = vpop.permute.xlu0 %2749 }
0x16a0   :  { %v2752_v16 = vmul.f32 %v9795_v13, %v2750_v15  ;;  %v167_v15 = vld [vmem:[%s11505_s14] sm:$0xff] }
0x16a2   :  { %2754 = vrot.lane.b32.xlu1 %v2752_v16, %s10026_s7  ;;  %v168_v16 = vld [vmem:[%s11505_s14 + $0x8] sm:$0xff] }
0x1714   :  { %v2755_v17 = vpop.permute.xlu1 %2754 }
0x1715   :  { %8118 = vmatmul.mubr.msk.f32.vlgmr.msra.gmra.mrb[30].mxu0 %vm395_vm2, %v2755_v17  ;;  %8129 = vmatmul.mubr.msk.f32.vlgmr.msra.gmra.mrb[34].mxu1 %vm395_vm2, %v2755_v17 }
0x1716   :  { %9166 = vmatpush3.bf16.msra.mxu0 %v10233_v12  ;;  %8139 = vmatprep.mubr.msk.f32.mxu0 %vm10023_vm1, %v10024_v28  ;;  %v9870_v12 = vld [vmem:[%s11497_s6] ss:$0 sm:$0xff] }
0x1717   :  { %9167 = vmatprep.subr.bf16.mxu0 %v10022_v14  ;;  %8150 = vmatprep.mubr.msk.f32.mxu1 %vm10023_vm1, %v10024_v28  ;;  %v344_v46 = vadd.f32 %v9870_v12, %v10352_v43  ;;  %v158_v43 = vld [vmem:[%s11503_s12] sm:$0xff]  ;;  %v169_v12 = vld [vmem:[%s11505_s14 + $0x10] sm:$0xff] }
0x1718   :  { %9172 = vmatpush3.bf16.msra.mxu1 %v10698_v39  ;;  %v10729_v55 = vpack.c.bf16 %v159_v7, %v158_v43 }
0x1719   :  { %9173 = vmatprep.subr.bf16.mxu1 %v10022_v14 }
0x171a   :  { %9169 = vmatpush3.bf16.msra.mxu0 %v10267_v23 }
0x171b   :  { %9176 = vmatprep.subr.bf16.mxu0 %v10022_v14 }
0x171c   :  { %9175 = vmatpush3.bf16.msra.mxu1 %v10704_v29 }
0x171d   :  { %8140 = vmatmul.mubr.msk.f32.vlgmr.msra.gmra.mrb[32].mxu0 %vm395_vm2, %v2755_v17  ;;  %9188 = vmatprep.subr.bf16.mxu1 %v10022_v14  ;;  %v10779_v17 = vpack.c.bf16 %v168_v16, %v167_v15 }
0x171e   :  { %8169 = vmatprep.mubr.msk.f32.mxu0 %vm10023_vm1, %v10024_v28  ;;  %9178 = vmatpush3.bf16.msra.mxu0 %v10729_v55 }
0x171f   :  { %9179 = vmatprep.subr.bf16.mxu0 %v10022_v14 }
0x1722   :  { %9181 = vmatpush3.bf16.msra.mxu0 %v10739_v59 }
0x1723   :  { %9182 = vmatprep.subr.bf16.mxu0 %v10022_v14 }
0x1726   :  { %9184 = vmatpush3.bf16.msra.mxu0 %v10749_v62 }
0x1727   :  { %9185 = vmatprep.subr.bf16.mxu0 %v10022_v14 }
0x17e8   :  { %v2824_v25 = vpop.f32.mrb[30].mxu0  ;;  %v2901_v18 = vpop.f32.mrb[34].mxu1 }
0x17e9   :  { %v2828_v20 = vadd.f32 %v2824_v25, %v344_v46  ;;  %v8119_v30 = vpop.f32.mrb[31].mxu0  ;;  %v8130_v32 = vpop.f32.mrb[35].mxu1  ;;  %v170_v46 = vld [vmem:[%s11505_s14 + $0x18] sm:$0xff] }
0x17ea   :  { %v10789_v25 = vpack.c.bf16 %v170_v46, %v169_v12  ;;  %v173_v32 = vld [vmem:[%s11505_s14 + $0x30] sm:$0xff] }
0x17eb   :  { %v2829_v48 = vsub.f32 0.0, %v2828_v20  ;;  %v172_v20 = vld [vmem:[%s11505_s14 + $0x28] sm:$0xff] }
0x17ed   :  { %v2830_v24 = vmul.f32 1.442695, %v2829_v48 }
0x17f0   :  { %v2982_v33 = vpop.f32.mrb[32].mxu0 }
0x17f1   :  { %2987 = vrot.lane.b32.xlu0 %v2982_v33, %s10025_s8  ;;  %v8141_v23 = vpop.f32.mrb[33].mxu0  ;;  %v174_v33 = vld [vmem:[%s11505_s14 + $0x38] sm:$0xff] }
0x17f2   :  { %v10809_v23 = vpack.c.bf16 %v174_v33, %v173_v32 }
0x17f5   :  { %2906 = vrot.lane.b32.xlu0 %v2901_v18, %s10026_s7  ;;  %v171_v18 = vld [vmem:[%s11505_s14 + $0x20] sm:$0xff] }
0x17f6   :  { %v10799_v30 = vpack.c.bf16 %v172_v20, %v171_v18 }
0x1863   :  { %v2988_v36 = vpop.permute.xlu0 %2987 }
0x1864   :  { %v2990_v19 = vadd.f32 %v2988_v36, %v378_v34  ;;  %v10813_v34 = vld [vmem:[#allocation10] ss:$0 sm:$0xff] }
0x1866   :  { %9796 = vtanh.f32 %v2990_v19 }
0x1867   :  { %9798 = vpow2.f32 %v2830_v24  ;;  %v2907_v31 = vpop.permute.xlu0 %2906 }
0x1868   :  { %v2909_v44 = vadd.f32 %v2907_v31, %v361_v49 }
0x186a   :  { %v2910_v50 = vsub.f32 0.0, %v2909_v44 }
0x186c   :  { %v2911_v42 = vmul.f32 1.442695, %v2910_v50 }
0x1870   :  { %v9797_v47 = vpop.eup %9796 }
0x1871   :  { %2994 = vrot.lane.b32.xlu1 %v9797_v47, %s10025_s8  ;;  %v9799_v11 = vpop.eup %9798 }
0x1872   :  { %v2832_v27 = vadd.f32 1.0, %v9799_v11 }
0x1874   :  { %9800 = vrcp.f32 %v2832_v27 }
0x1875   :  { %9802 = vpow2.f32 %v2911_v42 }
0x187e   :  { %v9801_v26 = vpop.eup %9800 }
0x187f   :  { %v9803_v40 = vpop.eup %9802 }
0x1880   :  { %v2913_v45 = vadd.f32 1.0, %v9803_v40 }
0x1882   :  { %9804 = vrcp.f32 %v2913_v45 }
0x188c   :  { %v9805_v38 = vpop.eup %9804 }
0x188d   :  { %v2992_v51 = vmul.f32 %v9805_v38, %v10660_v1  ;;  %v10759_v1 = vpack.c.bf16 %v165_v0, %v164_v63 }
0x188f   :  { %9187 = vmatpush3.bf16.msra.mxu0 %v10759_v1 }
0x1890   :  { %9200 = vmatprep.subr.bf16.mxu0 %v10022_v14 }
0x18e3   :  { %v2995_v41 = vpop.permute.xlu1 %2994 }
0x18e4   :  { %v2997_v22 = vmul.f32 %v9801_v26, %v2995_v41 }
0x18e6   :  { %2999 = vrot.lane.b32.xlu1 %v2997_v22, %s10026_s7 }
0x1958   :  { %v3000_v52 = vpop.permute.xlu1 %2999 }
0x1959   :  { %v10713_v53 = vadd.f32 %v3000_v52, %v2992_v51 }
0x195b   :  { %3010 = vrot.lane.b32.xlu0 %v10713_v53, %s10027_s29 }
0x19cd   :  { %v10717_v54 = vpop.permute.xlu0 %3010 }
0x19ce   :  { %8151 = vmatmul.mubr.msk.f32.vlgmr.msra.gmra.mrb[36].mxu1 %vm395_vm2, %v10717_v54 }
0x19cf   :  { %8188 = vmatprep.mubr.msk.f32.mxu1 %vm10023_vm1, %v10024_v28  ;;  %9190 = vmatpush3.bf16.msra.mxu1 %v10779_v17 }
0x19d0   :  { %9191 = vmatprep.subr.bf16.mxu1 %v10022_v14 }
0x19d3   :  { %9193 = vmatpush3.bf16.msra.mxu1 %v10789_v25 }
0x19d4   :  { %9194 = vmatprep.subr.bf16.mxu1 %v10022_v14 }
0x19d7   :  { %9196 = vmatpush3.bf16.msra.mxu1 %v10799_v30 }
0x19d8   :  { %9197 = vmatprep.subr.bf16.mxu1 %v10022_v14 }
0x19db   :  { %9199 = vmatpush3.bf16.msra.mxu1 %v10809_v23 }
0x19dc   :  { %9206 = vmatprep.subr.bf16.mxu1 %v10022_v14 }
0x1aa1   :  { %v3080_v3 = vpop.f32.mrb[36].mxu1 }
0x1aa2   :  { %v3081_v4 = vadd.f32 %v10763_v2, %v3080_v3  ;;  %v8152_v5 = vpop.f32.mrb[37].mxu1 }
0x1aa4   :  { %v3085_v6 = vmin.f32 %v3081_v4, 0.0  ;;  %vm3084_vm4 = vcmp.gt.f32.partialorder %v3081_v4, 0.0 }
0x1aa6   :  { %v3086_v8 = vmul.f32 1.442695, %v3085_v6 }
0x1aa8   :  { %9806 = vpow2.f32 %v3086_v8 }
0x1ab2   :  { %v9807_v9 = vpop.eup %9806 }
0x1ab3   :  { %v7137_v10 = vadd.f32 -1.0, %v9807_v9 }
0x1ab5   :  { %v3089_v13 = vsel %vm3084_vm4, %v3081_v4, %v7137_v10 }
0x1ab6   :  { %8170 = vmatmul.mubr.msk.f32.vlgmr.msra.gmra.mrb[34].mxu0 %vm3096_vm3, %v3089_v13 }
0x1ab7   :  { %9202 = vmatpush3.bf16.msra.mxu0 %v10698_v39  ;;  %8199 = vmatprep.mubr.msk.f32.mxu0 %vm10023_vm1, %v10024_v28 }
0x1ab8   :  { %9203 = vmatprep.subr.bf16.mxu0 %v10022_v14 }
0x1abb   :  { %9205 = vmatpush3.bf16.msra.mxu0 %v10704_v29 }
0x1abc   :  { %9218 = vmatprep.subr.bf16.mxu0 %v10022_v14 }
0x1b89   :  { %v3166_v36 = vpop.f32.mrb[34].mxu0 }
0x1b8a   :  { %v3167_v19 = vadd.f32 %v10813_v34, %v3166_v36  ;;  %v8171_v47 = vpop.f32.mrb[35].mxu0 }
0x1b8c   :  { %v3171_v48 = vmin.f32 %v3167_v19, 0.0  ;;  %vm3170_vm5 = vcmp.gt.f32.partialorder %v3167_v19, 0.0 }
0x1b8e   :  { %v3172_v24 = vmul.f32 1.442695, %v3171_v48 }
0x1b90   :  { %9808 = vpow2.f32 %v3172_v24 }
0x1b9a   :  { %v9809_v11 = vpop.eup %9808 }
0x1b9b   :  { %v7140_v27 = vadd.f32 -1.0, %v9809_v11 }
0x1b9d   :  { %v3175_v35 = vsel %vm3170_vm5, %v3167_v19, %v7140_v27 }
0x1b9e   :  { %8189 = vmatmul.mubr.msk.f32.vlgmr.msra.gmra.mrb[38].mxu1 %vm3096_vm3, %v3175_v35 }
0x1b9f   :  { %9208 = vmatpush3.bf16.msra.mxu1 %v10729_v55  ;;  %8218 = vmatprep.mubr.msk.f32.mxu1 %vm10023_vm1, %v10024_v28 }
0x1ba0   :  { %9209 = vmatprep.subr.bf16.mxu1 %v10022_v14 }
0x1ba3   :  { %9211 = vmatpush3.bf16.msra.mxu1 %v10739_v59 }
0x1ba4   :  { %9212 = vmatprep.subr.bf16.mxu1 %v10022_v14 }
0x1ba7   :  { %9214 = vmatpush3.bf16.msra.mxu1 %v10749_v62 }
0x1ba8   :  { %9215 = vmatprep.subr.bf16.mxu1 %v10022_v14 }
0x1bab   :  { %9217 = vmatpush3.bf16.msra.mxu1 %v10759_v1 }
0x1bac   :  { %9230 = vmatprep.subr.bf16.mxu1 %v10022_v14 }
0x1c71   :  { %v3251_v37 = vpop.f32.mrb[38].mxu1 }
0x1c72   :  { %v10833_v21 = vadd.f32 %v10830_v56, %v3251_v37  ;;  %v8190_v26 = vpop.f32.mrb[39].mxu1 }
0x1c74   :  { %v3255_v41 = vmul.f32 0.041666668, %v10833_v21 }
0x1c76   :  { %3257 = vrot.lane.b32.xlu1 %v3255_v41, %s10026_s7 }
0x1ce8   :  { %v3258_v22 = vpop.permute.xlu1 %3257 }
0x1ce9   :  { %v3260_v31 = vadd.f32 %v3258_v22, %v10713_v53 }
0x1ceb   :  { %3262 = vrot.lane.b32.xlu0 %v3260_v31, %s10027_s29 }
0x1d5d   :  { %v3263_v49 = vpop.permute.xlu0 %3262 }
0x1d5e   :  { %8200 = vmatmul.mubr.msk.f32.vlgmr.msra.gmra.mrb[36].mxu0 %vm395_vm2, %v3263_v49 }
0x1d5f   :  { %9220 = vmatpush3.bf16.msra.mxu0 %v10779_v17  ;;  %8237 = vmatprep.mubr.msk.f32.mxu0 %vm10023_vm1, %v10024_v28 }
0x1d60   :  { %9221 = vmatprep.subr.bf16.mxu0 %v10022_v14 }
0x1d63   :  { %9223 = vmatpush3.bf16.msra.mxu0 %v10789_v25 }
0x1d64   :  { %9224 = vmatprep.subr.bf16.mxu0 %v10022_v14 }
0x1d67   :  { %9226 = vmatpush3.bf16.msra.mxu0 %v10799_v30 }
0x1d68   :  { %9227 = vmatprep.subr.bf16.mxu0 %v10022_v14 }
0x1d6b   :  { %9229 = vmatpush3.bf16.msra.mxu0 %v10809_v23 }
0x1d6c   :  { %9236 = vmatprep.subr.bf16.mxu0 %v10022_v14 }
0x1e31   :  { %v3332_v44 = vpop.f32.mrb[36].mxu0 }
0x1e32   :  { %v3333_v50 = vadd.f32 %v10763_v2, %v3332_v44  ;;  %v8201_v42 = vpop.f32.mrb[37].mxu0 }
0x1e34   :  { %v3337_v40 = vmin.f32 %v3333_v50, 0.0  ;;  %vm3336_vm6 = vcmp.gt.f32.partialorder %v3333_v50, 0.0 }
0x1e36   :  { %v3338_v45 = vmul.f32 1.442695, %v3337_v40 }
0x1e38   :  { %9810 = vpow2.f32 %v3338_v45 }
0x1e42   :  { %v9811_v38 = vpop.eup %9810 }
0x1e43   :  { %v7144_v51 = vadd.f32 -1.0, %v9811_v38 }
0x1e45   :  { %v3341_v52 = vsel %vm3336_vm6, %v3333_v50, %v7144_v51 }
0x1e46   :  { %8219 = vmatmul.mubr.msk.f32.vlgmr.msra.gmra.mrb[40].mxu1 %vm3096_vm3, %v3341_v52 }
0x1e47   :  { %9232 = vmatpush3.bf16.msra.mxu1 %v10698_v39  ;;  %8248 = vmatprep.mubr.msk.f32.mxu1 %vm10023_vm1, %v10024_v28 }
0x1e48   :  { %9233 = vmatprep.subr.bf16.mxu1 %v10022_v14 }
0x1e4b   :  { %9235 = vmatpush3.bf16.msra.mxu1 %v10704_v29 }
0x1e4c   :  { %9248 = vmatprep.subr.bf16.mxu1 %v10022_v14 }
0x1f19   :  { %v3411_v43 = vpop.f32.mrb[40].mxu1 }
0x1f1a   :  { %v3412_v7 = vadd.f32 %v10813_v34, %v3411_v43  ;;  %v8220_v57 = vpop.f32.mrb[41].mxu1 }
0x1f1c   :  { %v3416_v58 = vmin.f32 %v3412_v7, 0.0  ;;  %vm3415_vm7 = vcmp.gt.f32.partialorder %v3412_v7, 0.0 }
0x1f1e   :  { %v3417_v60 = vmul.f32 1.442695, %v3416_v58 }
0x1f20   :  { %9812 = vpow2.f32 %v3417_v60 }
0x1f2a   :  { %v9813_v61 = vpop.eup %9812 }
0x1f2b   :  { %v7146_v63 = vadd.f32 -1.0, %v9813_v61 }
0x1f2d   :  { %v3420_v0 = vsel %vm3415_vm7, %v3412_v7, %v7146_v63 }
0x1f2e   :  { %8238 = vmatmul.mubr.msk.f32.vlgmr.msra.gmra.mrb[38].mxu0 %vm3096_vm3, %v3420_v0 }
0x1f2f   :  { %9238 = vmatpush3.bf16.msra.mxu0 %v10729_v55  ;;  %8267 = vmatprep.mubr.msk.f32.mxu0 %vm10023_vm1, %v10024_v28 }
0x1f30   :  { %9239 = vmatprep.subr.bf16.mxu0 %v10022_v14 }
0x1f33   :  { %9241 = vmatpush3.bf16.msra.mxu0 %v10739_v59 }
0x1f34   :  { %9242 = vmatprep.subr.bf16.mxu0 %v10022_v14 }
0x1f37   :  { %9244 = vmatpush3.bf16.msra.mxu0 %v10749_v62 }
0x1f38   :  { %9245 = vmatprep.subr.bf16.mxu0 %v10022_v14 }
0x1f3b   :  { %9247 = vmatpush3.bf16.msra.mxu0 %v10759_v1 }
0x1f3c   :  { %9260 = vmatprep.subr.bf16.mxu0 %v10022_v14 }
0x2001   :  { %v3490_v3 = vpop.f32.mrb[38].mxu0 }
0x2002   :  { %v3491_v4 = vadd.f32 %v10830_v56, %v3490_v3  ;;  %v8239_v5 = vpop.f32.mrb[39].mxu0 }
0x2004   :  { %v3494_v6 = vmul.f32 0.041666668, %v3491_v4  ;;  %v3972_v35 = vmul.f32 2.0, %v3491_v4 }
0x2006   :  { %3496 = vrot.lane.b32.xlu1 %v3494_v6, %s10026_s7  ;;  %v3973_v22 = vadd.f32 %v3972_v35, %v10833_v21 }
0x2078   :  { %v3497_v8 = vpop.permute.xlu1 %3496 }
0x2079   :  { %v3499_v9 = vadd.f32 %v3497_v8, %v10713_v53 }
0x207b   :  { %3501 = vrot.lane.b32.xlu0 %v3499_v9, %s10027_s29 }
0x20ed   :  { %v3502_v10 = vpop.permute.xlu0 %3501 }
0x20ee   :  { %8249 = vmatmul.mubr.msk.f32.vlgmr.msra.gmra.mrb[42].mxu1 %vm395_vm2, %v3502_v10 }
0x20ef   :  { %9250 = vmatpush3.bf16.msra.mxu1 %v10779_v17  ;;  %8286 = vmatprep.mubr.msk.f32.mxu1 %vm10023_vm1, %v10024_v28 }
0x20f0   :  { %9251 = vmatprep.subr.bf16.mxu1 %v10022_v14 }
0x20f3   :  { %9253 = vmatpush3.bf16.msra.mxu1 %v10789_v25 }
0x20f4   :  { %9254 = vmatprep.subr.bf16.mxu1 %v10022_v14 }
0x20f7   :  { %9256 = vmatpush3.bf16.msra.mxu1 %v10799_v30 }
0x20f8   :  { %9257 = vmatprep.subr.bf16.mxu1 %v10022_v14 }
0x20fb   :  { %9259 = vmatpush3.bf16.msra.mxu1 %v10809_v23 }
0x20fc   :  { %9266 = vmatprep.subr.bf16.mxu1 %v10022_v14 }
0x21c1   :  { %v3571_v13 = vpop.f32.mrb[42].mxu1 }
0x21c2   :  { %v3572_v15 = vadd.f32 %v10763_v2, %v3571_v13  ;;  %v8250_v16 = vpop.f32.mrb[43].mxu1 }
0x21c4   :  { %v3576_v12 = vmin.f32 %v3572_v15, 0.0  ;;  %vm3575_vm8 = vcmp.gt.f32.partialorder %v3572_v15, 0.0 }
0x21c6   :  { %v3577_v46 = vmul.f32 1.442695, %v3576_v12 }
0x21c8   :  { %9814 = vpow2.f32 %v3577_v46 }
0x21d2   :  { %v9815_v18 = vpop.eup %9814 }
0x21d3   :  { %v7149_v20 = vadd.f32 -1.0, %v9815_v18 }
0x21d5   :  { %v3580_v32 = vsel %vm3575_vm8, %v3572_v15, %v7149_v20 }
0x21d6   :  { %8268 = vmatmul.mubr.msk.f32.vlgmr.msra.gmra.mrb[40].mxu0 %vm3096_vm3, %v3580_v32 }
0x21d7   :  { %9262 = vmatpush3.bf16.msra.mxu0 %v10698_v39  ;;  %8297 = vmatprep.mubr.msk.f32.mxu0 %vm10023_vm1, %v10024_v28 }
0x21d8   :  { %9263 = vmatprep.subr.bf16.mxu0 %v10022_v14 }
0x21db   :  { %9265 = vmatpush3.bf16.msra.mxu0 %v10704_v29 }
0x21dc   :  { %9278 = vmatprep.subr.bf16.mxu0 %v10022_v14 }
0x22a9   :  { %v3650_v33 = vpop.f32.mrb[40].mxu0 }
0x22aa   :  { %v3651_v36 = vadd.f32 %v10813_v34, %v3650_v33  ;;  %v8269_v19 = vpop.f32.mrb[41].mxu0 }
0x22ac   :  { %v3655_v47 = vmin.f32 %v3651_v36, 0.0  ;;  %vm3654_vm9 = vcmp.gt.f32.partialorder %v3651_v36, 0.0 }
0x22ae   :  { %v3656_v48 = vmul.f32 1.442695, %v3655_v47 }
0x22b0   :  { %9816 = vpow2.f32 %v3656_v48 }
0x22ba   :  { %v9817_v24 = vpop.eup %9816 }
0x22bb   :  { %v7151_v11 = vadd.f32 -1.0, %v9817_v24 }
0x22bd   :  { %v3659_v27 = vsel %vm3654_vm9, %v3651_v36, %v7151_v11 }
0x22be   :  { %8287 = vmatmul.mubr.msk.f32.vlgmr.msra.gmra.mrb[44].mxu1 %vm3096_vm3, %v3659_v27 }
0x22bf   :  { %9268 = vmatpush3.bf16.msra.mxu1 %v10729_v55  ;;  %8316 = vmatprep.mubr.msk.f32.mxu1 %vm10023_vm1, %v10024_v28 }
0x22c0   :  { %9269 = vmatprep.subr.bf16.mxu1 %v10022_v14 }
0x22c3   :  { %9271 = vmatpush3.bf16.msra.mxu1 %v10739_v59 }
0x22c4   :  { %9272 = vmatprep.subr.bf16.mxu1 %v10022_v14 }
0x22c7   :  { %9274 = vmatpush3.bf16.msra.mxu1 %v10749_v62 }
0x22c8   :  { %9275 = vmatprep.subr.bf16.mxu1 %v10022_v14 }
0x22cb   :  { %9277 = vmatpush3.bf16.msra.mxu1 %v10759_v1 }
0x22cc   :  { %9290 = vmatprep.subr.bf16.mxu1 %v10022_v14 }
0x2391   :  { %v3729_v37 = vpop.f32.mrb[44].mxu1 }
0x2392   :  { %v3730_v26 = vadd.f32 %v10830_v56, %v3729_v37  ;;  %v8288_v41 = vpop.f32.mrb[45].mxu1 }
0x2394   :  { %v3733_v31 = vmul.f32 0.083333336, %v3730_v26  ;;  %v3974_v49 = vmul.f32 2.0, %v3730_v26 }
0x2396   :  { %3735 = vrot.lane.b32.xlu1 %v3733_v31, %s10026_s7  ;;  %v3975_v44 = vadd.f32 %v3974_v49, %v3973_v22 }
0x2408   :  { %v3736_v50 = vpop.permute.xlu1 %3735 }
0x2409   :  { %v3738_v42 = vadd.f32 %v3736_v50, %v10713_v53 }
0x240b   :  { %3740 = vrot.lane.b32.xlu0 %v3738_v42, %s10027_s29 }
0x247d   :  { %v3741_v40 = vpop.permute.xlu0 %3740 }
0x247e   :  { %8298 = vmatmul.mubr.msk.f32.vlgmr.msra.gmra.mrb[42].mxu0 %vm395_vm2, %v3741_v40 }
0x247f   :  { %9280 = vmatpush3.bf16.msra.mxu0 %v10779_v17  ;;  %8335 = vmatprep.mubr.msk.f32.mxu0 %vm10023_vm1, %v10024_v28 }
0x2480   :  { %9281 = vmatprep.subr.bf16.mxu0 %v10022_v14 }
0x2483   :  { %9283 = vmatpush3.bf16.msra.mxu0 %v10789_v25 }
0x2484   :  { %9284 = vmatprep.subr.bf16.mxu0 %v10022_v14 }
0x2487   :  { %9286 = vmatpush3.bf16.msra.mxu0 %v10799_v30 }
0x2488   :  { %9287 = vmatprep.subr.bf16.mxu0 %v10022_v14 }
0x248b   :  { %9289 = vmatpush3.bf16.msra.mxu0 %v10809_v23 }
0x248c   :  { %9296 = vmatprep.subr.bf16.mxu0 %v10022_v14 }
0x2551   :  { %v3810_v21 = vpop.f32.mrb[42].mxu0 }
0x2552   :  { %v3811_v45 = vadd.f32 %v10763_v2, %v3810_v21  ;;  %v8299_v38 = vpop.f32.mrb[43].mxu0 }
0x2554   :  { %v3815_v51 = vmin.f32 %v3811_v45, 0.0  ;;  %vm3814_vm10 = vcmp.gt.f32.partialorder %v3811_v45, 0.0 }
0x2556   :  { %v3816_v52 = vmul.f32 1.442695, %v3815_v51 }
0x2558   :  { %9818 = vpow2.f32 %v3816_v52 }
0x2562   :  { %v9819_v43 = vpop.eup %9818 }
0x2563   :  { %v7154_v7 = vadd.f32 -1.0, %v9819_v43 }
0x2565   :  { %v3819_v57 = vsel %vm3814_vm10, %v3811_v45, %v7154_v7 }
0x2566   :  { %8317 = vmatmul.mubr.msk.f32.vlgmr.msra.gmra.mrb[46].mxu1 %vm3096_vm3, %v3819_v57 }
0x2567   :  { %9292 = vmatpush3.bf16.msra.mxu1 %v10698_v39  ;;  %8346 = vmatprep.mubr.msk.f32.mxu1 %vm10023_vm1, %v10024_v28 }
0x2568   :  { %9293 = vmatprep.subr.bf16.mxu1 %v10022_v14 }
0x256b   :  { %9295 = vmatpush3.bf16.msra.mxu1 %v10704_v29 }
0x256c   :  { %9308 = vmatprep.subr.bf16.mxu1 %v10022_v14 }
0x2639   :  { %v3889_v58 = vpop.f32.mrb[46].mxu1 }
0x263a   :  { %v3890_v60 = vadd.f32 %v10813_v34, %v3889_v58  ;;  %v8318_v61 = vpop.f32.mrb[47].mxu1 }
0x263c   :  { %v3894_v63 = vmin.f32 %v3890_v60, 0.0  ;;  %vm3893_vm11 = vcmp.gt.f32.partialorder %v3890_v60, 0.0 }
0x263e   :  { %v3895_v0 = vmul.f32 1.442695, %v3894_v63 }
0x2640   :  { %9820 = vpow2.f32 %v3895_v0 }
0x264a   :  { %v9821_v3 = vpop.eup %9820 }
0x264b   :  { %v7156_v4 = vadd.f32 -1.0, %v9821_v3 }
0x264d   :  { %v3898_v5 = vsel %vm3893_vm11, %v3890_v60, %v7156_v4 }
0x264e   :  { %8336 = vmatmul.mubr.msk.f32.vlgmr.msra.gmra.mrb[44].mxu0 %vm3096_vm3, %v3898_v5 }
0x264f   :  { %9298 = vmatpush3.bf16.msra.mxu0 %v10729_v55  ;;  %8365 = vmatprep.mubr.msk.f32.mxu0 %vm10023_vm1, %v10024_v28 }
0x2650   :  { %9299 = vmatprep.subr.bf16.mxu0 %v10022_v14 }
0x2653   :  { %9301 = vmatpush3.bf16.msra.mxu0 %v10739_v59 }
0x2654   :  { %9302 = vmatprep.subr.bf16.mxu0 %v10022_v14 }
0x2657   :  { %9304 = vmatpush3.bf16.msra.mxu0 %v10749_v62 }
0x2658   :  { %9305 = vmatprep.subr.bf16.mxu0 %v10022_v14 }
0x265b   :  { %9307 = vmatpush3.bf16.msra.mxu0 %v10759_v1 }
0x265c   :  { %9320 = vmatprep.subr.bf16.mxu0 %v10022_v14 }
0x2721   :  { %v3968_v6 = vpop.f32.mrb[44].mxu0 }
0x2722   :  { %v3969_v8 = vadd.f32 %v10830_v56, %v3968_v6  ;;  %v8337_v9 = vpop.f32.mrb[45].mxu0 }
0x2724   :  { %v3976_v10 = vadd.f32 %v3975_v44, %v3969_v8 }
0x2726   :  { %v3977_v13 = vmul.f32 0.013888889, %v3976_v10 }
0x2728   :  { %3979 = vrot.lane.b32.xlu1 %v3977_v13, %s10026_s7 }
0x279a   :  { %v3980_v15 = vpop.permute.xlu1 %3979 }
0x279b   :  { %v10944_v16 = vadd.f32 %v3980_v15, %v10713_v53 }
0x279d   :  { %3984 = vrot.lane.b32.xlu0 %v10944_v16, %s10027_s29 }
0x280f   :  { %v10948_v12 = vpop.permute.xlu0 %3984 }
0x2810   :  { %8347 = vmatmul.mubr.msk.f32.vlgmr.msra.gmra.mrb[48].mxu1 %vm395_vm2, %v10948_v12 }
0x2811   :  { %9310 = vmatpush3.bf16.msra.mxu1 %v10779_v17  ;;  %8384 = vmatprep.mubr.msk.f32.mxu1 %vm10023_vm1, %v10024_v28 }
0x2812   :  { %9311 = vmatprep.subr.bf16.mxu1 %v10022_v14 }
0x2815   :  { %9313 = vmatpush3.bf16.msra.mxu1 %v10789_v25 }
0x2816   :  { %9314 = vmatprep.subr.bf16.mxu1 %v10022_v14 }
0x2819   :  { %9316 = vmatpush3.bf16.msra.mxu1 %v10799_v30 }
0x281a   :  { %9317 = vmatprep.subr.bf16.mxu1 %v10022_v14 }
0x281d   :  { %9319 = vmatpush3.bf16.msra.mxu1 %v10809_v23 }
0x281e   :  { %9326 = vmatprep.subr.bf16.mxu1 %v10022_v14 }
0x28e3   :  { %v4054_v53 = vpop.f32.mrb[48].mxu1 }
0x28e4   :  { %v4055_v46 = vadd.f32 %v10763_v2, %v4054_v53  ;;  %v8348_v18 = vpop.f32.mrb[49].mxu1 }
0x28e6   :  { %v4059_v20 = vmin.f32 %v4055_v46, 0.0  ;;  %vm4058_vm12 = vcmp.gt.f32.partialorder %v4055_v46, 0.0 }
0x28e8   :  { %v4060_v32 = vmul.f32 1.442695, %v4059_v20 }
0x28ea   :  { %9822 = vpow2.f32 %v4060_v32 }
0x28f4   :  { %v9823_v33 = vpop.eup %9822 }
0x28f5   :  { %v7159_v36 = vadd.f32 -1.0, %v9823_v33 }
0x28f7   :  { %v4063_v19 = vsel %vm4058_vm12, %v4055_v46, %v7159_v36 }
0x28f8   :  { %8366 = vmatmul.mubr.msk.f32.vlgmr.msra.gmra.mrb[46].mxu0 %vm3096_vm3, %v4063_v19 }
0x28f9   :  { %9322 = vmatpush3.bf16.msra.mxu0 %v10698_v39  ;;  %8395 = vmatprep.mubr.msk.f32.mxu0 %vm10023_vm1, %v10024_v28 }
0x28fa   :  { %9323 = vmatprep.subr.bf16.mxu0 %v10022_v14 }
0x28fd   :  { %9325 = vmatpush3.bf16.msra.mxu0 %v10704_v29 }
0x28fe   :  { %9338 = vmatprep.subr.bf16.mxu0 %v10022_v14 }
0x29cb   :  { %v4133_v47 = vpop.f32.mrb[46].mxu0 }
0x29cc   :  { %v4134_v48 = vadd.f32 %v10813_v34, %v4133_v47  ;;  %v8367_v24 = vpop.f32.mrb[47].mxu0 }
0x29ce   :  { %v4138_v11 = vmin.f32 %v4134_v48, 0.0  ;;  %vm4137_vm13 = vcmp.gt.f32.partialorder %v4134_v48, 0.0 }
0x29d0   :  { %v4139_v27 = vmul.f32 1.442695, %v4138_v11 }
0x29d2   :  { %9824 = vpow2.f32 %v4139_v27 }
0x29dc   :  { %v9825_v35 = vpop.eup %9824 }
0x29dd   :  { %v7161_v37 = vadd.f32 -1.0, %v9825_v35 }
0x29df   :  { %v4142_v26 = vsel %vm4137_vm13, %v4134_v48, %v7161_v37 }
0x29e0   :  { %8385 = vmatmul.mubr.msk.f32.vlgmr.msra.gmra.mrb[50].mxu1 %vm3096_vm3, %v4142_v26 }
0x29e1   :  { %9328 = vmatpush3.bf16.msra.mxu1 %v10729_v55  ;;  %8414 = vmatprep.mubr.msk.f32.mxu1 %vm10023_vm1, %v10024_v28 }
0x29e2   :  { %9329 = vmatprep.subr.bf16.mxu1 %v10022_v14 }
0x29e5   :  { %9331 = vmatpush3.bf16.msra.mxu1 %v10739_v59 }
0x29e6   :  { %9332 = vmatprep.subr.bf16.mxu1 %v10022_v14 }
0x29e9   :  { %9334 = vmatpush3.bf16.msra.mxu1 %v10749_v62 }
0x29ea   :  { %9335 = vmatprep.subr.bf16.mxu1 %v10022_v14 }
0x29ed   :  { %9337 = vmatpush3.bf16.msra.mxu1 %v10759_v1 }
0x29ee   :  { %9350 = vmatprep.subr.bf16.mxu1 %v10022_v14 }
0x2ab3   :  { %v4212_v41 = vpop.f32.mrb[50].mxu1 }
0x2ab4   :  { %v10983_v22 = vadd.f32 %v10830_v56, %v4212_v41  ;;  %v8386_v31 = vpop.f32.mrb[51].mxu1 }
0x2ab6   :  { %v4216_v49 = vmul.f32 0.041666668, %v10983_v22 }
0x2ab8   :  { %4218 = vrot.lane.b32.xlu1 %v4216_v49, %s10026_s7 }
0x2b2a   :  { %v4219_v44 = vpop.permute.xlu1 %4218 }
0x2b2b   :  { %v4221_v50 = vadd.f32 %v4219_v44, %v10944_v16 }
0x2b2d   :  { %4223 = vrot.lane.b32.xlu0 %v4221_v50, %s10027_s29 }
0x2b9f   :  { %v4224_v42 = vpop.permute.xlu0 %4223 }
0x2ba0   :  { %8396 = vmatmul.mubr.msk.f32.vlgmr.msra.gmra.mrb[48].mxu0 %vm395_vm2, %v4224_v42 }
0x2ba1   :  { %9340 = vmatpush3.bf16.msra.mxu0 %v10779_v17  ;;  %8433 = vmatprep.mubr.msk.f32.mxu0 %vm10023_vm1, %v10024_v28 }
0x2ba2   :  { %9341 = vmatprep.subr.bf16.mxu0 %v10022_v14 }
0x2ba5   :  { %9343 = vmatpush3.bf16.msra.mxu0 %v10789_v25 }
0x2ba6   :  { %9344 = vmatprep.subr.bf16.mxu0 %v10022_v14 }
0x2ba9   :  { %9346 = vmatpush3.bf16.msra.mxu0 %v10799_v30 }
0x2baa   :  { %9347 = vmatprep.subr.bf16.mxu0 %v10022_v14 }
0x2bad   :  { %9349 = vmatpush3.bf16.msra.mxu0 %v10809_v23 }
0x2bae   :  { %9356 = vmatprep.subr.bf16.mxu0 %v10022_v14 }
0x2c73   :  { %v4293_v40 = vpop.f32.mrb[48].mxu0 }
0x2c74   :  { %v4294_v21 = vadd.f32 %v10763_v2, %v4293_v40  ;;  %v8397_v45 = vpop.f32.mrb[49].mxu0 }
0x2c76   :  { %v4298_v38 = vmin.f32 %v4294_v21, 0.0  ;;  %vm4297_vm14 = vcmp.gt.f32.partialorder %v4294_v21, 0.0 }
0x2c78   :  { %v4299_v51 = vmul.f32 1.442695, %v4298_v38 }
0x2c7a   :  { %9826 = vpow2.f32 %v4299_v51 }
0x2c84   :  { %v9827_v52 = vpop.eup %9826 }
0x2c85   :  { %v7164_v43 = vadd.f32 -1.0, %v9827_v52 }
0x2c87   :  { %v4302_v7 = vsel %vm4297_vm14, %v4294_v21, %v7164_v43 }
0x2c88   :  { %8415 = vmatmul.mubr.msk.f32.vlgmr.msra.gmra.mrb[52].mxu1 %vm3096_vm3, %v4302_v7 }
0x2c89   :  { %9352 = vmatpush3.bf16.msra.mxu1 %v10698_v39  ;;  %8444 = vmatprep.mubr.msk.f32.mxu1 %vm10023_vm1, %v10024_v28 }
0x2c8a   :  { %9353 = vmatprep.subr.bf16.mxu1 %v10022_v14 }
0x2c8d   :  { %9355 = vmatpush3.bf16.msra.mxu1 %v10704_v29 }
0x2c8e   :  { %9368 = vmatprep.subr.bf16.mxu1 %v10022_v14 }
0x2d5b   :  { %v4372_v57 = vpop.f32.mrb[52].mxu1 }
0x2d5c   :  { %v4373_v58 = vadd.f32 %v10813_v34, %v4372_v57  ;;  %v8416_v60 = vpop.f32.mrb[53].mxu1 }
0x2d5e   :  { %v4377_v61 = vmin.f32 %v4373_v58, 0.0  ;;  %vm4376_vm15 = vcmp.gt.f32.partialorder %v4373_v58, 0.0 }
0x2d60   :  { %v4378_v63 = vmul.f32 1.442695, %v4377_v61 }
0x2d62   :  { %9828 = vpow2.f32 %v4378_v63 }
0x2d6c   :  { %v9829_v0 = vpop.eup %9828 }
0x2d6d   :  { %v7166_v3 = vadd.f32 -1.0, %v9829_v0 }
0x2d6f   :  { %v4381_v4 = vsel %vm4376_vm15, %v4373_v58, %v7166_v3 }
0x2d70   :  { %8434 = vmatmul.mubr.msk.f32.vlgmr.msra.gmra.mrb[50].mxu0 %vm3096_vm3, %v4381_v4 }
0x2d71   :  { %9358 = vmatpush3.bf16.msra.mxu0 %v10729_v55  ;;  %8463 = vmatprep.mubr.msk.f32.mxu0 %vm10023_vm1, %v10024_v28 }
0x2d72   :  { %9359 = vmatprep.subr.bf16.mxu0 %v10022_v14 }
0x2d75   :  { %9361 = vmatpush3.bf16.msra.mxu0 %v10739_v59 }
0x2d76   :  { %9362 = vmatprep.subr.bf16.mxu0 %v10022_v14 }
0x2d79   :  { %9364 = vmatpush3.bf16.msra.mxu0 %v10749_v62 }
0x2d7a   :  { %9365 = vmatprep.subr.bf16.mxu0 %v10022_v14 }
0x2d7d   :  { %9367 = vmatpush3.bf16.msra.mxu0 %v10759_v1 }
0x2d7e   :  { %9380 = vmatprep.subr.bf16.mxu0 %v10022_v14 }
0x2e43   :  { %v4451_v5 = vpop.f32.mrb[50].mxu0 }
0x2e44   :  { %v4452_v6 = vadd.f32 %v10830_v56, %v4451_v5  ;;  %v8435_v8 = vpop.f32.mrb[51].mxu0 }
0x2e46   :  { %v4455_v9 = vmul.f32 0.041666668, %v4452_v6  ;;  %v4933_v41 = vmul.f32 2.0, %v4452_v6 }
0x2e48   :  { %4457 = vrot.lane.b32.xlu1 %v4455_v9, %s10026_s7  ;;  %v4934_v50 = vadd.f32 %v4933_v41, %v10983_v22 }
0x2eba   :  { %v4458_v10 = vpop.permute.xlu1 %4457 }
0x2ebb   :  { %v4460_v13 = vadd.f32 %v4458_v10, %v10944_v16 }
0x2ebd   :  { %4462 = vrot.lane.b32.xlu0 %v4460_v13, %s10027_s29 }
0x2f2f   :  { %v4463_v15 = vpop.permute.xlu0 %4462 }
0x2f30   :  { %8445 = vmatmul.mubr.msk.f32.vlgmr.msra.gmra.mrb[54].mxu1 %vm395_vm2, %v4463_v15 }
0x2f31   :  { %9370 = vmatpush3.bf16.msra.mxu1 %v10779_v17  ;;  %8482 = vmatprep.mubr.msk.f32.mxu1 %vm10023_vm1, %v10024_v28 }
0x2f32   :  { %9371 = vmatprep.subr.bf16.mxu1 %v10022_v14 }
0x2f35   :  { %9373 = vmatpush3.bf16.msra.mxu1 %v10789_v25 }
0x2f36   :  { %9374 = vmatprep.subr.bf16.mxu1 %v10022_v14 }
0x2f39   :  { %9376 = vmatpush3.bf16.msra.mxu1 %v10799_v30 }
0x2f3a   :  { %9377 = vmatprep.subr.bf16.mxu1 %v10022_v14 }
0x2f3d   :  { %9379 = vmatpush3.bf16.msra.mxu1 %v10809_v23 }
0x2f3e   :  { %9386 = vmatprep.subr.bf16.mxu1 %v10022_v14 }
0x3003   :  { %v4532_v53 = vpop.f32.mrb[54].mxu1 }
0x3004   :  { %v4533_v46 = vadd.f32 %v10763_v2, %v4532_v53  ;;  %v8446_v18 = vpop.f32.mrb[55].mxu1 }
0x3006   :  { %v4537_v20 = vmin.f32 %v4533_v46, 0.0  ;;  %vm4536_vm4 = vcmp.gt.f32.partialorder %v4533_v46, 0.0 }
0x3008   :  { %v4538_v32 = vmul.f32 1.442695, %v4537_v20 }
0x300a   :  { %9830 = vpow2.f32 %v4538_v32 }
0x3014   :  { %v9831_v33 = vpop.eup %9830 }
0x3015   :  { %v7169_v36 = vadd.f32 -1.0, %v9831_v33 }
0x3017   :  { %v4541_v19 = vsel %vm4536_vm4, %v4533_v46, %v7169_v36 }
0x3018   :  { %8464 = vmatmul.mubr.msk.f32.vlgmr.msra.gmra.mrb[52].mxu0 %vm3096_vm3, %v4541_v19 }
0x3019   :  { %9382 = vmatpush3.bf16.msra.mxu0 %v10698_v39  ;;  %8493 = vmatprep.mubr.msk.f32.mxu0 %vm10023_vm1, %v10024_v28 }
0x301a   :  { %9383 = vmatprep.subr.bf16.mxu0 %v10022_v14 }
0x301d   :  { %9385 = vmatpush3.bf16.msra.mxu0 %v10704_v29 }
0x301e   :  { %9398 = vmatprep.subr.bf16.mxu0 %v10022_v14 }
0x30eb   :  { %v4611_v47 = vpop.f32.mrb[52].mxu0 }
0x30ec   :  { %v4612_v48 = vadd.f32 %v10813_v34, %v4611_v47  ;;  %v8465_v24 = vpop.f32.mrb[53].mxu0 }
0x30ee   :  { %v4616_v11 = vmin.f32 %v4612_v48, 0.0  ;;  %vm4615_vm5 = vcmp.gt.f32.partialorder %v4612_v48, 0.0 }
0x30f0   :  { %v4617_v27 = vmul.f32 1.442695, %v4616_v11 }
0x30f2   :  { %9832 = vpow2.f32 %v4617_v27 }
0x30fc   :  { %v9833_v35 = vpop.eup %9832 }
0x30fd   :  { %v7171_v37 = vadd.f32 -1.0, %v9833_v35 }
0x30ff   :  { %v4620_v26 = vsel %vm4615_vm5, %v4612_v48, %v7171_v37 }
0x3100   :  { %8483 = vmatmul.mubr.msk.f32.vlgmr.msra.gmra.mrb[56].mxu1 %vm3096_vm3, %v4620_v26 }
0x3101   :  { %9388 = vmatpush3.bf16.msra.mxu1 %v10729_v55  ;;  %8512 = vmatprep.mubr.msk.f32.mxu1 %vm10023_vm1, %v10024_v28 }
0x3102   :  { %9389 = vmatprep.subr.bf16.mxu1 %v10022_v14 }
0x3105   :  { %9391 = vmatpush3.bf16.msra.mxu1 %v10739_v59 }
0x3106   :  { %9392 = vmatprep.subr.bf16.mxu1 %v10022_v14 }
0x3109   :  { %9394 = vmatpush3.bf16.msra.mxu1 %v10749_v62 }
0x310a   :  { %9395 = vmatprep.subr.bf16.mxu1 %v10022_v14 }
0x310d   :  { %9397 = vmatpush3.bf16.msra.mxu1 %v10759_v1 }
0x310e   :  { %9410 = vmatprep.subr.bf16.mxu1 %v10022_v14 }
0x31d3   :  { %v4690_v31 = vpop.f32.mrb[56].mxu1 }
0x31d4   :  { %v4691_v49 = vadd.f32 %v10830_v56, %v4690_v31  ;;  %v8484_v44 = vpop.f32.mrb[57].mxu1 }
0x31d6   :  { %v4694_v42 = vmul.f32 0.083333336, %v4691_v49  ;;  %v4935_v40 = vmul.f32 2.0, %v4691_v49 }
0x31d8   :  { %4696 = vrot.lane.b32.xlu1 %v4694_v42, %s10026_s7  ;;  %v4936_v21 = vadd.f32 %v4935_v40, %v4934_v50 }
0x324a   :  { %v4697_v45 = vpop.permute.xlu1 %4696 }
0x324b   :  { %v4699_v38 = vadd.f32 %v4697_v45, %v10944_v16 }
0x324d   :  { %4701 = vrot.lane.b32.xlu0 %v4699_v38, %s10027_s29 }
0x32bf   :  { %v4702_v51 = vpop.permute.xlu0 %4701 }
0x32c0   :  { %8494 = vmatmul.mubr.msk.f32.vlgmr.msra.gmra.mrb[54].mxu0 %vm395_vm2, %v4702_v51 }
0x32c1   :  { %9400 = vmatpush3.bf16.msra.mxu0 %v10779_v17  ;;  %8531 = vmatprep.mubr.msk.f32.mxu0 %vm10023_vm1, %v10024_v28 }
0x32c2   :  { %9401 = vmatprep.subr.bf16.mxu0 %v10022_v14 }
0x32c5   :  { %9403 = vmatpush3.bf16.msra.mxu0 %v10789_v25 }
0x32c6   :  { %9404 = vmatprep.subr.bf16.mxu0 %v10022_v14 }
0x32c9   :  { %9406 = vmatpush3.bf16.msra.mxu0 %v10799_v30 }
0x32ca   :  { %9407 = vmatprep.subr.bf16.mxu0 %v10022_v14 }
0x32cd   :  { %9409 = vmatpush3.bf16.msra.mxu0 %v10809_v23 }
0x32ce   :  { %9416 = vmatprep.subr.bf16.mxu0 %v10022_v14 }
0x3393   :  { %v4771_v22 = vpop.f32.mrb[54].mxu0 }
0x3394   :  { %v4772_v52 = vadd.f32 %v10763_v2, %v4771_v22  ;;  %v8495_v43 = vpop.f32.mrb[55].mxu0  ;;  %v11150_v22 = vld [vmem:[#allocation9] ss:$0 sm:$0xff] }
0x3396   :  { %v4776_v7 = vmin.f32 %v4772_v52, 0.0  ;;  %vm4775_vm6 = vcmp.gt.f32.partialorder %v4772_v52, 0.0 }
0x3398   :  { %v4777_v57 = vmul.f32 1.442695, %v4776_v7 }
0x339a   :  { %9834 = vpow2.f32 %v4777_v57 }
0x33a4   :  { %v9835_v58 = vpop.eup %9834 }
0x33a5   :  { %v7174_v60 = vadd.f32 -1.0, %v9835_v58 }
0x33a7   :  { %v4780_v61 = vsel %vm4775_vm6, %v4772_v52, %v7174_v60 }
0x33a8   :  { %8513 = vmatmul.mubr.msk.f32.vlgmr.msra.gmra.mrb[58].mxu1 %vm3096_vm3, %v4780_v61 }
0x33a9   :  { %9412 = vmatpush3.bf16.msra.mxu1 %v10698_v39  ;;  %8542 = vmatprep.mubr.msk.f32.mxu1 %vm10023_vm1, %v10024_v28 }
0x33aa   :  { %9413 = vmatprep.subr.bf16.mxu1 %v10022_v14 }
0x33ad   :  { %9415 = vmatpush3.bf16.msra.mxu1 %v10704_v29 }
0x33ae   :  { %9428 = vmatprep.subr.bf16.mxu1 %v10022_v14 }
0x347b   :  { %v4850_v63 = vpop.f32.mrb[58].mxu1 }
0x347c   :  { %v4851_v0 = vadd.f32 %v10813_v34, %v4850_v63  ;;  %v8514_v3 = vpop.f32.mrb[59].mxu1 }
0x347e   :  { %v4855_v4 = vmin.f32 %v4851_v0, 0.0  ;;  %vm4854_vm7 = vcmp.gt.f32.partialorder %v4851_v0, 0.0 }
0x3480   :  { %v4856_v5 = vmul.f32 1.442695, %v4855_v4 }
0x3482   :  { %9836 = vpow2.f32 %v4856_v5 }
0x348c   :  { %v9837_v6 = vpop.eup %9836 }
0x348d   :  { %v7176_v8 = vadd.f32 -1.0, %v9837_v6 }
0x348f   :  { %v4859_v9 = vsel %vm4854_vm7, %v4851_v0, %v7176_v8 }
0x3490   :  { %8532 = vmatmul.mubr.msk.f32.vlgmr.msra.gmra.mrb[56].mxu0 %vm3096_vm3, %v4859_v9 }
0x3491   :  { %9418 = vmatpush3.bf16.msra.mxu0 %v10729_v55  ;;  %8561 = vmatprep.mubr.msk.f32.mxu0 %vm10023_vm1, %v10024_v28 }
0x3492   :  { %9419 = vmatprep.subr.bf16.mxu0 %v10022_v14 }
0x3495   :  { %9421 = vmatpush3.bf16.msra.mxu0 %v10739_v59 }
0x3496   :  { %9422 = vmatprep.subr.bf16.mxu0 %v10022_v14 }
0x3499   :  { %9424 = vmatpush3.bf16.msra.mxu0 %v10749_v62 }
0x349a   :  { %9425 = vmatprep.subr.bf16.mxu0 %v10022_v14 }
0x349d   :  { %9427 = vmatpush3.bf16.msra.mxu0 %v10759_v1 }
0x349e   :  { %9440 = vmatprep.subr.bf16.mxu0 %v10022_v14 }
0x3563   :  { %v4929_v10 = vpop.f32.mrb[56].mxu0 }
0x3564   :  { %v4930_v13 = vadd.f32 %v10830_v56, %v4929_v10  ;;  %v8533_v15 = vpop.f32.mrb[57].mxu0 }
0x3566   :  { %v4937_v53 = vadd.f32 %v4936_v21, %v4930_v13 }
0x3568   :  { %v4938_v46 = vmul.f32 0.013888889, %v4937_v53 }
0x356a   :  { %4940 = vrot.lane.b32.xlu1 %v4938_v46, %s10026_s7 }
0x35dc   :  { %v4941_v18 = vpop.permute.xlu1 %4940 }
0x35dd   :  { %v11094_v20 = vadd.f32 %v4941_v18, %v10944_v16 }
0x35df   :  { %4945 = vrot.lane.b32.xlu0 %v11094_v20, %s10027_s29 }
0x3651   :  { %v11098_v32 = vpop.permute.xlu0 %4945 }
0x3652   :  { %8543 = vmatmul.mubr.msk.f32.vlgmr.msra.gmra.mrb[60].mxu1 %vm395_vm2, %v11098_v32 }
0x3653   :  { %9430 = vmatpush3.bf16.msra.mxu1 %v10779_v17  ;;  %8580 = vmatprep.mubr.msk.f32.mxu1 %vm10023_vm1, %v10024_v28 }
0x3654   :  { %9431 = vmatprep.subr.bf16.mxu1 %v10022_v14 }
0x3657   :  { %9433 = vmatpush3.bf16.msra.mxu1 %v10789_v25 }
0x3658   :  { %9434 = vmatprep.subr.bf16.mxu1 %v10022_v14 }
0x365b   :  { %9436 = vmatpush3.bf16.msra.mxu1 %v10799_v30 }
0x365c   :  { %9437 = vmatprep.subr.bf16.mxu1 %v10022_v14 }
0x365f   :  { %9439 = vmatpush3.bf16.msra.mxu1 %v10809_v23 }
0x3660   :  { %9446 = vmatprep.subr.bf16.mxu1 %v10022_v14 }
0x3725   :  { %v5015_v16 = vpop.f32.mrb[60].mxu1 }
0x3726   :  { %v5016_v33 = vadd.f32 %v10763_v2, %v5015_v16  ;;  %v8544_v36 = vpop.f32.mrb[61].mxu1 }
0x3728   :  { %v5020_v19 = vmin.f32 %v5016_v33, 0.0  ;;  %vm5019_vm8 = vcmp.gt.f32.partialorder %v5016_v33, 0.0 }
0x372a   :  { %v5021_v47 = vmul.f32 1.442695, %v5020_v19 }
0x372c   :  { %9838 = vpow2.f32 %v5021_v47 }
0x3736   :  { %v9839_v48 = vpop.eup %9838 }
0x3737   :  { %v7179_v24 = vadd.f32 -1.0, %v9839_v48 }
0x3739   :  { %v5024_v11 = vsel %vm5019_vm8, %v5016_v33, %v7179_v24 }
0x373a   :  { %8562 = vmatmul.mubr.msk.f32.vlgmr.msra.gmra.mrb[58].mxu0 %vm3096_vm3, %v5024_v11 }
0x373b   :  { %9442 = vmatpush3.bf16.msra.mxu0 %v10698_v39  ;;  %8591 = vmatprep.mubr.msk.f32.mxu0 %vm10023_vm1, %v10024_v28 }
0x373c   :  { %9443 = vmatprep.subr.bf16.mxu0 %v10022_v14 }
0x373f   :  { %9445 = vmatpush3.bf16.msra.mxu0 %v10704_v29 }
0x3740   :  { %9458 = vmatprep.subr.bf16.mxu0 %v10022_v14 }
0x380d   :  { %v5094_v2 = vpop.f32.mrb[58].mxu0 }
0x380e   :  { %v5095_v27 = vadd.f32 %v10813_v34, %v5094_v2  ;;  %v8563_v35 = vpop.f32.mrb[59].mxu0  ;;  %v11195_v2 = vld [vmem:[#allocation10] ss:$0 sm:$0xff] }
0x3810   :  { %v5099_v37 = vmin.f32 %v5095_v27, 0.0  ;;  %vm5098_vm9 = vcmp.gt.f32.partialorder %v5095_v27, 0.0 }
0x3812   :  { %v5100_v26 = vmul.f32 1.442695, %v5099_v37 }
0x3814   :  { %9840 = vpow2.f32 %v5100_v26 }
0x381e   :  { %v9841_v41 = vpop.eup %9840 }
0x381f   :  { %v7181_v31 = vadd.f32 -1.0, %v9841_v41 }
0x3821   :  { %v5103_v49 = vsel %vm5098_vm9, %v5095_v27, %v7181_v31 }
0x3822   :  { %8581 = vmatmul.mubr.msk.f32.vlgmr.msra.gmra.mrb[62].mxu1 %vm3096_vm3, %v5103_v49 }
0x3823   :  { %9448 = vmatpush3.bf16.msra.mxu1 %v10729_v55  ;;  %8610 = vmatprep.mubr.msk.f32.mxu1 %vm10023_vm1, %v10024_v28 }
0x3824   :  { %9449 = vmatprep.subr.bf16.mxu1 %v10022_v14 }
0x3827   :  { %9451 = vmatpush3.bf16.msra.mxu1 %v10739_v59 }
0x3828   :  { %9452 = vmatprep.subr.bf16.mxu1 %v10022_v14 }
0x382b   :  { %9454 = vmatpush3.bf16.msra.mxu1 %v10749_v62 }
0x382c   :  { %9455 = vmatprep.subr.bf16.mxu1 %v10022_v14 }
0x382f   :  { %9457 = vmatpush3.bf16.msra.mxu1 %v10759_v1 }
0x3830   :  { %9470 = vmatprep.subr.bf16.mxu1 %v10022_v14 }
0x38f5   :  { %v5173_v44 = vpop.f32.mrb[62].mxu1 }
0x38f6   :  { %v11133_v50 = vadd.f32 %v10830_v56, %v5173_v44  ;;  %v8582_v42 = vpop.f32.mrb[63].mxu1 }
0x38f8   :  { %v5177_v40 = vmul.f32 0.041666668, %v11133_v50 }
0x38fa   :  { %5179 = vrot.lane.b32.xlu1 %v5177_v40, %s10026_s7  ;;  %v11212_v40 = vld [vmem:[%s11506_s15] ss:$0 sm:$0xff] }
0x396c   :  { %v5180_v21 = vpop.permute.xlu1 %5179 }
0x396d   :  { %v5182_v45 = vadd.f32 %v5180_v21, %v11094_v20 }
0x396f   :  { %5184 = vrot.lane.b32.xlu0 %v5182_v45, %s10027_s29 }
0x39e1   :  { %v5185_v38 = vpop.permute.xlu0 %5184 }
0x39e2   :  { %8592 = vmatmul.mubr.msk.f32.vlgmr.msra.gmra.mrb[60].mxu0 %vm395_vm2, %v5185_v38 }
0x39e3   :  { %9460 = vmatpush3.bf16.msra.mxu0 %v10779_v17  ;;  %8629 = vmatprep.mubr.msk.f32.mxu0 %vm10023_vm1, %v10024_v28 }
0x39e4   :  { %9461 = vmatprep.subr.bf16.mxu0 %v10022_v14 }
0x39e7   :  { %9463 = vmatpush3.bf16.msra.mxu0 %v10789_v25 }
0x39e8   :  { %9464 = vmatprep.subr.bf16.mxu0 %v10022_v14 }
0x39eb   :  { %9466 = vmatpush3.bf16.msra.mxu0 %v10799_v30 }
0x39ec   :  { %9467 = vmatprep.subr.bf16.mxu0 %v10022_v14 }
0x39ef   :  { %9469 = vmatpush3.bf16.msra.mxu0 %v10809_v23 }
0x39f0   :  { %9476 = vmatprep.subr.bf16.mxu0 %v10022_v14 }
0x3ab5   :  { %v5254_v51 = vpop.f32.mrb[60].mxu0 }
0x3ab6   :  { %v5255_v52 = vadd.f32 %v11150_v22, %v5254_v51  ;;  %v8593_v43 = vpop.f32.mrb[61].mxu0 }
0x3ab8   :  { %v5259_v7 = vmin.f32 %v5255_v52, 0.0  ;;  %vm5258_vm10 = vcmp.gt.f32.partialorder %v5255_v52, 0.0 }
0x3aba   :  { %v5260_v57 = vmul.f32 1.442695, %v5259_v7 }
0x3abc   :  { %9842 = vpow2.f32 %v5260_v57 }
0x3ac6   :  { %v9843_v58 = vpop.eup %9842 }
0x3ac7   :  { %v7184_v60 = vadd.f32 -1.0, %v9843_v58 }
0x3ac9   :  { %v5263_v61 = vsel %vm5258_vm10, %v5255_v52, %v7184_v60 }
0x3aca   :  { %8611 = vmatmul.mubr.msk.f32.vlgmr.msra.gmra.mrb[64].mxu1 %vm3096_vm3, %v5263_v61 }
0x3acb   :  { %9472 = vmatpush3.bf16.msra.mxu1 %v10698_v39  ;;  %8640 = vmatprep.mubr.msk.f32.mxu1 %vm10023_vm1, %v10024_v28 }
0x3acc   :  { %9473 = vmatprep.subr.bf16.mxu1 %v10022_v14 }
0x3acf   :  { %9475 = vmatpush3.bf16.msra.mxu1 %v10704_v29 }
0x3ad0   :  { %9488 = vmatprep.subr.bf16.mxu1 %v10022_v14 }
0x3b9d   :  { %v5333_v63 = vpop.f32.mrb[64].mxu1 }
0x3b9e   :  { %v5334_v0 = vadd.f32 %v10813_v34, %v5333_v63  ;;  %v8612_v3 = vpop.f32.mrb[65].mxu1 }
0x3ba0   :  { %v5338_v4 = vmin.f32 %v5334_v0, 0.0  ;;  %vm5337_vm11 = vcmp.gt.f32.partialorder %v5334_v0, 0.0 }
0x3ba2   :  { %v5339_v5 = vmul.f32 1.442695, %v5338_v4 }
0x3ba4   :  { %9844 = vpow2.f32 %v5339_v5 }
0x3bae   :  { %v9845_v6 = vpop.eup %9844 }
0x3baf   :  { %v7186_v8 = vadd.f32 -1.0, %v9845_v6 }
0x3bb1   :  { %v5342_v9 = vsel %vm5337_vm11, %v5334_v0, %v7186_v8 }
0x3bb2   :  { %8630 = vmatmul.mubr.msk.f32.vlgmr.msra.gmra.mrb[62].mxu0 %vm3096_vm3, %v5342_v9 }
0x3bb3   :  { %9478 = vmatpush3.bf16.msra.mxu0 %v10729_v55  ;;  %8659 = vmatprep.mubr.msk.f32.mxu0 %vm10023_vm1, %v10024_v28 }
0x3bb4   :  { %9479 = vmatprep.subr.bf16.mxu0 %v10022_v14 }
0x3bb7   :  { %9481 = vmatpush3.bf16.msra.mxu0 %v10739_v59 }
0x3bb8   :  { %9482 = vmatprep.subr.bf16.mxu0 %v10022_v14 }
0x3bbb   :  { %9484 = vmatpush3.bf16.msra.mxu0 %v10749_v62 }
0x3bbc   :  { %9485 = vmatprep.subr.bf16.mxu0 %v10022_v14 }
0x3bbf   :  { %9487 = vmatpush3.bf16.msra.mxu0 %v10759_v1 }
0x3bc0   :  { %9500 = vmatprep.subr.bf16.mxu0 %v10022_v14 }
0x3c85   :  { %v5412_v34 = vpop.f32.mrb[62].mxu0 }
0x3c86   :  { %v5413_v10 = vadd.f32 %v10830_v56, %v5412_v34  ;;  %v8631_v13 = vpop.f32.mrb[63].mxu0 }
0x3c88   :  { %v5416_v15 = vmul.f32 0.041666668, %v5413_v10  ;;  %v5894_v44 = vmul.f32 2.0, %v5413_v10 }
0x3c8a   :  { %5418 = vrot.lane.b32.xlu1 %v5416_v15, %s10026_s7  ;;  %v5895_v38 = vadd.f32 %v5894_v44, %v11133_v50 }
0x3cfc   :  { %v5419_v53 = vpop.permute.xlu1 %5418 }
0x3cfd   :  { %v5421_v46 = vadd.f32 %v5419_v53, %v11094_v20 }
0x3cff   :  { %5423 = vrot.lane.b32.xlu0 %v5421_v46, %s10027_s29 }
0x3d71   :  { %v5424_v18 = vpop.permute.xlu0 %5423 }
0x3d72   :  { %8641 = vmatmul.mubr.msk.f32.vlgmr.msra.gmra.mrb[66].mxu1 %vm395_vm2, %v5424_v18 }
0x3d73   :  { %9490 = vmatpush3.bf16.msra.mxu1 %v10779_v17  ;;  %8678 = vmatprep.mubr.msk.f32.mxu1 %vm10023_vm1, %v10024_v28 }
0x3d74   :  { %9491 = vmatprep.subr.bf16.mxu1 %v10022_v14 }
0x3d77   :  { %9493 = vmatpush3.bf16.msra.mxu1 %v10789_v25 }
0x3d78   :  { %9494 = vmatprep.subr.bf16.mxu1 %v10022_v14 }
0x3d7b   :  { %9496 = vmatpush3.bf16.msra.mxu1 %v10799_v30 }
0x3d7c   :  { %9497 = vmatprep.subr.bf16.mxu1 %v10022_v14 }
0x3d7f   :  { %9499 = vmatpush3.bf16.msra.mxu1 %v10809_v23 }
0x3d80   :  { %9506 = vmatprep.subr.bf16.mxu1 %v10022_v14 }
0x3e45   :  { %v5493_v56 = vpop.f32.mrb[66].mxu1 }
0x3e46   :  { %v5494_v16 = vadd.f32 %v11150_v22, %v5493_v56  ;;  %v8642_v33 = vpop.f32.mrb[67].mxu1 }
0x3e48   :  { %v5498_v36 = vmin.f32 %v5494_v16, 0.0  ;;  %vm5497_vm12 = vcmp.gt.f32.partialorder %v5494_v16, 0.0 }
0x3e4a   :  { %v5499_v19 = vmul.f32 1.442695, %v5498_v36 }
0x3e4c   :  { %9846 = vpow2.f32 %v5499_v19 }
0x3e56   :  { %v9847_v47 = vpop.eup %9846 }
0x3e57   :  { %v7189_v48 = vadd.f32 -1.0, %v9847_v47 }
0x3e59   :  { %v5502_v24 = vsel %vm5497_vm12, %v5494_v16, %v7189_v48 }
0x3e5a   :  { %8660 = vmatmul.mubr.msk.f32.vlgmr.msra.gmra.mrb[64].mxu0 %vm3096_vm3, %v5502_v24 }
0x3e5b   :  { %9502 = vmatpush3.bf16.msra.mxu0 %v10698_v39  ;;  %8689 = vmatprep.mubr.msk.f32.mxu0 %vm10023_vm1, %v10024_v28 }
0x3e5c   :  { %9503 = vmatprep.subr.bf16.mxu0 %v10022_v14 }
0x3e5f   :  { %9505 = vmatpush3.bf16.msra.mxu0 %v10704_v29 }
0x3e60   :  { %9518 = vmatprep.subr.bf16.mxu0 %v10022_v14 }
0x3f2d   :  { %v5572_v11 = vpop.f32.mrb[64].mxu0 }
0x3f2e   :  { %v5573_v27 = vadd.f32 %v11195_v2, %v5572_v11  ;;  %v8661_v35 = vpop.f32.mrb[65].mxu0 }
0x3f30   :  { %v5577_v37 = vmin.f32 %v5573_v27, 0.0  ;;  %vm5576_vm13 = vcmp.gt.f32.partialorder %v5573_v27, 0.0 }
0x3f32   :  { %v5578_v26 = vmul.f32 1.442695, %v5577_v37 }
0x3f34   :  { %9848 = vpow2.f32 %v5578_v26 }
0x3f3e   :  { %v9849_v41 = vpop.eup %9848 }
0x3f3f   :  { %v7191_v31 = vadd.f32 -1.0, %v9849_v41 }
0x3f41   :  { %v5581_v49 = vsel %vm5576_vm13, %v5573_v27, %v7191_v31 }
0x3f42   :  { %8679 = vmatmul.mubr.msk.f32.vlgmr.msra.gmra.mrb[68].mxu1 %vm3096_vm3, %v5581_v49 }
0x3f43   :  { %9508 = vmatpush3.bf16.msra.mxu1 %v10729_v55  ;;  %8708 = vmatprep.mubr.msk.f32.mxu1 %vm10023_vm1, %v10024_v28 }
0x3f44   :  { %9509 = vmatprep.subr.bf16.mxu1 %v10022_v14 }
0x3f47   :  { %9511 = vmatpush3.bf16.msra.mxu1 %v10739_v59 }
0x3f48   :  { %9512 = vmatprep.subr.bf16.mxu1 %v10022_v14 }
0x3f4b   :  { %9514 = vmatpush3.bf16.msra.mxu1 %v10749_v62 }
0x3f4c   :  { %9515 = vmatprep.subr.bf16.mxu1 %v10022_v14 }
0x3f4f   :  { %9517 = vmatpush3.bf16.msra.mxu1 %v10759_v1 }
0x3f50   :  { %9530 = vmatprep.subr.bf16.mxu1 %v10022_v14 }
0x4015   :  { %v5651_v42 = vpop.f32.mrb[68].mxu1 }
0x4016   :  { %v5652_v21 = vadd.f32 %v11212_v40, %v5651_v42  ;;  %v8680_v45 = vpop.f32.mrb[69].mxu1 }
0x4018   :  { %v5655_v51 = vmul.f32 0.083333336, %v5652_v21  ;;  %v5896_v52 = vmul.f32 2.0, %v5652_v21 }
0x401a   :  { %5657 = vrot.lane.b32.xlu1 %v5655_v51, %s10026_s7  ;;  %v5897_v43 = vadd.f32 %v5896_v52, %v5895_v38 }
0x408c   :  { %v5658_v7 = vpop.permute.xlu1 %5657 }
0x408d   :  { %v5660_v57 = vadd.f32 %v5658_v7, %v11094_v20 }
0x408f   :  { %5662 = vrot.lane.b32.xlu0 %v5660_v57, %s10027_s29 }
0x4101   :  { %v5663_v58 = vpop.permute.xlu0 %5662 }
0x4102   :  { %8690 = vmatmul.mubr.msk.f32.vlgmr.msra.gmra.mrb[66].mxu0 %vm395_vm2, %v5663_v58 }
0x4103   :  { %9520 = vmatpush3.bf16.msra.mxu0 %v10779_v17  ;;  %8727 = vmatprep.mubr.msk.f32.mxu0 %vm10023_vm1, %v10024_v28 }
0x4104   :  { %9521 = vmatprep.subr.bf16.mxu0 %v10022_v14 }
0x4107   :  { %9523 = vmatpush3.bf16.msra.mxu0 %v10789_v25 }
0x4108   :  { %9524 = vmatprep.subr.bf16.mxu0 %v10022_v14 }
0x410b   :  { %9526 = vmatpush3.bf16.msra.mxu0 %v10799_v30 }
0x410c   :  { %9527 = vmatprep.subr.bf16.mxu0 %v10022_v14 }
0x410f   :  { %9529 = vmatpush3.bf16.msra.mxu0 %v10809_v23 }
0x4110   :  { %9536 = vmatprep.subr.bf16.mxu0 %v10022_v14 }
0x41d5   :  { %v5732_v50 = vpop.f32.mrb[66].mxu0 }
0x41d6   :  { %v5733_v60 = vadd.f32 %v11150_v22, %v5732_v50  ;;  %v8691_v61 = vpop.f32.mrb[67].mxu0 }
0x41d8   :  { %v5737_v63 = vmin.f32 %v5733_v60, 0.0  ;;  %vm5736_vm14 = vcmp.gt.f32.partialorder %v5733_v60, 0.0 }
0x41da   :  { %v5738_v0 = vmul.f32 1.442695, %v5737_v63 }
0x41dc   :  { %9850 = vpow2.f32 %v5738_v0 }
0x41e6   :  { %v9851_v3 = vpop.eup %9850 }
0x41e7   :  { %v7194_v4 = vadd.f32 -1.0, %v9851_v3 }
0x41e9   :  { %v5741_v5 = vsel %vm5736_vm14, %v5733_v60, %v7194_v4 }
0x41ea   :  { %8709 = vmatmul.mubr.msk.f32.vlgmr.msra.gmra.mrb[70].mxu1 %vm3096_vm3, %v5741_v5 }
0x41eb   :  { %9532 = vmatpush3.bf16.msra.mxu1 %v10698_v39  ;;  %8738 = vmatprep.mubr.msk.f32.mxu1 %vm10023_vm1, %v10024_v28 }
0x41ec   :  { %9533 = vmatprep.subr.bf16.mxu1 %v10022_v14 }
0x41ef   :  { %9535 = vmatpush3.bf16.msra.mxu1 %v10704_v29 }
0x41f0   :  { %9548 = vmatprep.subr.bf16.mxu1 %v10022_v14 }
0x42bd   :  { %v5811_v6 = vpop.f32.mrb[70].mxu1 }
0x42be   :  { %v5812_v8 = vadd.f32 %v11195_v2, %v5811_v6  ;;  %v8710_v9 = vpop.f32.mrb[71].mxu1 }
0x42c0   :  { %v5816_v34 = vmin.f32 %v5812_v8, 0.0  ;;  %vm5815_vm15 = vcmp.gt.f32.partialorder %v5812_v8, 0.0 }
0x42c2   :  { %v5817_v10 = vmul.f32 1.442695, %v5816_v34 }
0x42c4   :  { %9852 = vpow2.f32 %v5817_v10 }
0x42ce   :  { %v9853_v13 = vpop.eup %9852 }
0x42cf   :  { %v7196_v15 = vadd.f32 -1.0, %v9853_v13 }
0x42d1   :  { %v5820_v53 = vsel %vm5815_vm15, %v5812_v8, %v7196_v15 }
0x42d2   :  { %8728 = vmatmul.mubr.msk.f32.vlgmr.msra.gmra.mrb[68].mxu0 %vm3096_vm3, %v5820_v53 }
0x42d3   :  { %9538 = vmatpush3.bf16.msra.mxu0 %v10729_v55  ;;  %8757 = vmatprep.mubr.msk.f32.mxu0 %vm10023_vm1, %v10024_v28 }
0x42d4   :  { %9539 = vmatprep.subr.bf16.mxu0 %v10022_v14 }
0x42d7   :  { %9541 = vmatpush3.bf16.msra.mxu0 %v10739_v59 }
0x42d8   :  { %9542 = vmatprep.subr.bf16.mxu0 %v10022_v14 }
0x42db   :  { %9544 = vmatpush3.bf16.msra.mxu0 %v10749_v62 }
0x42dc   :  { %9545 = vmatprep.subr.bf16.mxu0 %v10022_v14 }
0x42df   :  { %9547 = vmatpush3.bf16.msra.mxu0 %v10759_v1 }
0x42e0   :  { %9560 = vmatprep.subr.bf16.mxu0 %v10022_v14 }
0x43a5   :  { %v5890_v46 = vpop.f32.mrb[68].mxu0 }
0x43a6   :  { %v5891_v18 = vadd.f32 %v11212_v40, %v5890_v46  ;;  %v8729_v56 = vpop.f32.mrb[69].mxu0 }
0x43a8   :  { %v5898_v16 = vadd.f32 %v5897_v43, %v5891_v18 }
0x43aa   :  { %v5899_v33 = vmul.f32 0.013888889, %v5898_v16 }
0x43ac   :  { %5901 = vrot.lane.b32.xlu1 %v5899_v33, %s10026_s7 }
0x441e   :  { %v5902_v36 = vpop.permute.xlu1 %5901 }
0x441f   :  { %v11253_v19 = vadd.f32 %v5902_v36, %v11094_v20 }
0x4421   :  { %5906 = vrot.lane.b32.xlu0 %v11253_v19, %s10027_s29 }
0x4493   :  { %v11257_v47 = vpop.permute.xlu0 %5906 }
0x4494   :  { %8739 = vmatmul.mubr.msk.f32.vlgmr.msra.gmra.mrb[72].mxu1 %vm395_vm2, %v11257_v47 }
0x4495   :  { %9550 = vmatpush3.bf16.msra.mxu1 %v10779_v17  ;;  %8776 = vmatprep.mubr.msk.f32.mxu1 %vm10023_vm1, %v10024_v28 }
0x4496   :  { %9551 = vmatprep.subr.bf16.mxu1 %v10022_v14 }
0x4499   :  { %9553 = vmatpush3.bf16.msra.mxu1 %v10789_v25 }
0x449a   :  { %9554 = vmatprep.subr.bf16.mxu1 %v10022_v14 }
0x449d   :  { %9556 = vmatpush3.bf16.msra.mxu1 %v10799_v30 }
0x449e   :  { %9557 = vmatprep.subr.bf16.mxu1 %v10022_v14 }
0x44a1   :  { %9559 = vmatpush3.bf16.msra.mxu1 %v10809_v23 }
0x44a2   :  { %9566 = vmatprep.subr.bf16.mxu1 %v10022_v14 }
0x4567   :  { %v5976_v20 = vpop.f32.mrb[72].mxu1 }
0x4568   :  { %v5977_v48 = vadd.f32 %v11150_v22, %v5976_v20  ;;  %v8740_v24 = vpop.f32.mrb[73].mxu1 }
0x456a   :  { %v5981_v11 = vmin.f32 %v5977_v48, 0.0  ;;  %vm5980_vm4 = vcmp.gt.f32.partialorder %v5977_v48, 0.0 }
0x456c   :  { %v5982_v27 = vmul.f32 1.442695, %v5981_v11 }
0x456e   :  { %9854 = vpow2.f32 %v5982_v27 }
0x4578   :  { %v9855_v35 = vpop.eup %9854 }
0x4579   :  { %v7199_v37 = vadd.f32 -1.0, %v9855_v35 }
0x457b   :  { %v5985_v26 = vsel %vm5980_vm4, %v5977_v48, %v7199_v37 }
0x457c   :  { %8758 = vmatmul.mubr.msk.f32.vlgmr.msra.gmra.mrb[70].mxu0 %vm3096_vm3, %v5985_v26 }
0x457d   :  { %9562 = vmatpush3.bf16.msra.mxu0 %v10698_v39  ;;  %8787 = vmatprep.mubr.msk.f32.mxu0 %vm10023_vm1, %v10024_v28 }
0x457e   :  { %9563 = vmatprep.subr.bf16.mxu0 %v10022_v14 }
0x4581   :  { %9565 = vmatpush3.bf16.msra.mxu0 %v10704_v29 }
0x4582   :  { %9578 = vmatprep.subr.bf16.mxu0 %v10022_v14 }
0x464f   :  { %v6055_v41 = vpop.f32.mrb[70].mxu0 }
0x4650   :  { %v6056_v31 = vadd.f32 %v11195_v2, %v6055_v41  ;;  %v8759_v49 = vpop.f32.mrb[71].mxu0 }
0x4652   :  { %v6060_v44 = vmin.f32 %v6056_v31, 0.0  ;;  %vm6059_vm5 = vcmp.gt.f32.partialorder %v6056_v31, 0.0 }
0x4654   :  { %v6061_v42 = vmul.f32 1.442695, %v6060_v44 }
0x4656   :  { %9856 = vpow2.f32 %v6061_v42 }
0x4660   :  { %v9857_v21 = vpop.eup %9856 }
0x4661   :  { %v7201_v45 = vadd.f32 -1.0, %v9857_v21 }
0x4663   :  { %v6064_v38 = vsel %vm6059_vm5, %v6056_v31, %v7201_v45 }
0x4664   :  { %8777 = vmatmul.mubr.msk.f32.vlgmr.msra.gmra.mrb[74].mxu1 %vm3096_vm3, %v6064_v38 }
0x4665   :  { %9568 = vmatpush3.bf16.msra.mxu1 %v10729_v55  ;;  %8806 = vmatprep.mubr.msk.f32.mxu1 %vm10023_vm1, %v10024_v28 }
0x4666   :  { %9569 = vmatprep.subr.bf16.mxu1 %v10022_v14 }
0x4669   :  { %9571 = vmatpush3.bf16.msra.mxu1 %v10739_v59 }
0x466a   :  { %9572 = vmatprep.subr.bf16.mxu1 %v10022_v14 }
0x466d   :  { %9574 = vmatpush3.bf16.msra.mxu1 %v10749_v62 }
0x466e   :  { %9575 = vmatprep.subr.bf16.mxu1 %v10022_v14 }
0x4671   :  { %9577 = vmatpush3.bf16.msra.mxu1 %v10759_v1 }
0x4672   :  { %9590 = vmatprep.subr.bf16.mxu1 %v10022_v14 }
0x4737   :  { %v6134_v51 = vpop.f32.mrb[74].mxu1 }
0x4738   :  { %v11292_v52 = vadd.f32 %v11212_v40, %v6134_v51  ;;  %v8778_v43 = vpop.f32.mrb[75].mxu1 }
0x473a   :  { %v6138_v7 = vmul.f32 0.041666668, %v11292_v52 }
0x473c   :  { %6140 = vrot.lane.b32.xlu1 %v6138_v7, %s10026_s7 }
0x47ae   :  { %v6141_v57 = vpop.permute.xlu1 %6140 }
0x47af   :  { %v6143_v58 = vadd.f32 %v6141_v57, %v11253_v19 }
0x47b1   :  { %6145 = vrot.lane.b32.xlu0 %v6143_v58, %s10027_s29 }
0x4823   :  { %v6146_v50 = vpop.permute.xlu0 %6145 }
0x4824   :  { %8788 = vmatmul.mubr.msk.f32.vlgmr.msra.gmra.mrb[72].mxu0 %vm395_vm2, %v6146_v50 }
0x4825   :  { %9580 = vmatpush3.bf16.msra.mxu0 %v10779_v17  ;;  %8825 = vmatprep.mubr.msk.f32.mxu0 %vm10023_vm1, %v10024_v28 }
0x4826   :  { %9581 = vmatprep.subr.bf16.mxu0 %v10022_v14 }
0x4829   :  { %9583 = vmatpush3.bf16.msra.mxu0 %v10789_v25 }
0x482a   :  { %9584 = vmatprep.subr.bf16.mxu0 %v10022_v14 }
0x482d   :  { %9586 = vmatpush3.bf16.msra.mxu0 %v10799_v30 }
0x482e   :  { %9587 = vmatprep.subr.bf16.mxu0 %v10022_v14 }
0x4831   :  { %9589 = vmatpush3.bf16.msra.mxu0 %v10809_v23 }
0x4832   :  { %9596 = vmatprep.subr.bf16.mxu0 %v10022_v14 }
0x48f7   :  { %v6215_v60 = vpop.f32.mrb[72].mxu0 }
0x48f8   :  { %v6216_v61 = vadd.f32 %v11150_v22, %v6215_v60  ;;  %v8789_v63 = vpop.f32.mrb[73].mxu0 }
0x48fa   :  { %v6220_v0 = vmin.f32 %v6216_v61, 0.0  ;;  %vm6219_vm6 = vcmp.gt.f32.partialorder %v6216_v61, 0.0 }
0x48fc   :  { %v6221_v3 = vmul.f32 1.442695, %v6220_v0 }
0x48fe   :  { %9858 = vpow2.f32 %v6221_v3 }
0x4908   :  { %v9859_v4 = vpop.eup %9858 }
0x4909   :  { %v7204_v5 = vadd.f32 -1.0, %v9859_v4 }
0x490b   :  { %v6224_v6 = vsel %vm6219_vm6, %v6216_v61, %v7204_v5  ;;  %v179_v5 = vld [vmem:[%s11507_s16 + $0x18] sm:$0xff] }
0x490c   :  { %8807 = vmatmul.mubr.msk.f32.vlgmr.msra.gmra.mrb[76].mxu1 %vm3096_vm3, %v6224_v6 }
0x490d   :  { %9592 = vmatpush3.bf16.msra.mxu1 %v10698_v39  ;;  %8836 = vmatprep.mubr.msk.f32.mxu1 %vm10023_vm1, %v10024_v28 }
0x490e   :  { %9593 = vmatprep.subr.bf16.mxu1 %v10022_v14 }
0x4911   :  { %9595 = vmatpush3.bf16.msra.mxu1 %v10704_v29 }
0x4912   :  { %9608 = vmatprep.subr.bf16.mxu1 %v10022_v14 }
0x49df   :  { %v6294_v8 = vpop.f32.mrb[76].mxu1 }
0x49e0   :  { %v6295_v9 = vadd.f32 %v11195_v2, %v6294_v8  ;;  %v8808_v34 = vpop.f32.mrb[77].mxu1 }
0x49e2   :  { %v6299_v10 = vmin.f32 %v6295_v9, 0.0  ;;  %vm6298_vm7 = vcmp.gt.f32.partialorder %v6295_v9, 0.0 }
0x49e4   :  { %v6300_v13 = vmul.f32 1.442695, %v6299_v10 }
0x49e6   :  { %9860 = vpow2.f32 %v6300_v13 }
0x49f0   :  { %v9861_v15 = vpop.eup %9860 }
0x49f1   :  { %v7206_v53 = vadd.f32 -1.0, %v9861_v15 }
0x49f3   :  { %v6303_v46 = vsel %vm6298_vm7, %v6295_v9, %v7206_v53 }
0x49f4   :  { %8826 = vmatmul.mubr.msk.f32.vlgmr.msra.gmra.mrb[74].mxu0 %vm3096_vm3, %v6303_v46  ;;  %v181_v46 = vld [vmem:[%s11509_s18] sm:$0xff] }
0x49f5   :  { %9598 = vmatpush3.bf16.msra.mxu0 %v10729_v55  ;;  %8855 = vmatprep.mubr.msk.f32.mxu0 %vm10023_vm1, %v10024_v28 }
0x49f6   :  { %9599 = vmatprep.subr.bf16.mxu0 %v10022_v14 }
0x49f9   :  { %9601 = vmatpush3.bf16.msra.mxu0 %v10739_v59 }
0x49fa   :  { %9602 = vmatprep.subr.bf16.mxu0 %v10022_v14 }
0x49fd   :  { %9604 = vmatpush3.bf16.msra.mxu0 %v10749_v62 }
0x49fe   :  { %9605 = vmatprep.subr.bf16.mxu0 %v10022_v14 }
0x4a01   :  { %9607 = vmatpush3.bf16.msra.mxu0 %v10759_v1 }
0x4a02   :  { %9620 = vmatprep.subr.bf16.mxu0 %v10022_v14 }
0x4ac7   :  { %v6373_v18 = vpop.f32.mrb[74].mxu0 }
0x4ac8   :  { %v6374_v56 = vadd.f32 %v11212_v40, %v6373_v18  ;;  %v8827_v16 = vpop.f32.mrb[75].mxu0 }
0x4aca   :  { %v6377_v33 = vmul.f32 0.041666668, %v6374_v56 }
0x4acc   :  { %6379 = vrot.lane.b32.xlu1 %v6377_v33, %s10026_s7 }
0x4b3e   :  { %v6380_v36 = vpop.permute.xlu1 %6379 }
0x4b3f   :  { %v6382_v20 = vadd.f32 %v6380_v36, %v11253_v19  ;;  %v183_v36 = vld [vmem:[%s11509_s18 + $0x10] sm:$0xff] }
0x4b41   :  { %6384 = vrot.lane.b32.xlu0 %v6382_v20, %s10027_s29  ;;  %v184_v20 = vld [vmem:[%s11509_s18 + $0x18] sm:$0xff] }
0x4bb3   :  { %v6385_v48 = vpop.permute.xlu0 %6384 }
0x4bb4   :  { %8837 = vmatmul.mubr.msk.f32.vlgmr.msra.gmra.mrb[78].mxu1 %vm395_vm2, %v6385_v48 }
0x4bb5   :  { %9610 = vmatpush3.bf16.msra.mxu1 %v10779_v17  ;;  %8874 = vmatprep.mubr.msk.f32.mxu1 %vm10023_vm1, %v10024_v28 }
0x4bb6   :  { %9611 = vmatprep.subr.bf16.mxu1 %v10022_v14 }
0x4bb9   :  { %9613 = vmatpush3.bf16.msra.mxu1 %v10789_v25 }
0x4bba   :  { %9614 = vmatprep.subr.bf16.mxu1 %v10022_v14 }
0x4bbd   :  { %9616 = vmatpush3.bf16.msra.mxu1 %v10799_v30 }
0x4bbe   :  { %9617 = vmatprep.subr.bf16.mxu1 %v10022_v14 }
0x4bc1   :  { %9619 = vmatpush3.bf16.msra.mxu1 %v10809_v23 }
0x4bc2   :  { %9626 = vmatprep.subr.bf16.mxu1 %v10022_v14 }
0x4c87   :  { %v6454_v24 = vpop.f32.mrb[78].mxu1 }
0x4c88   :  { %v6455_v11 = vadd.f32 %v11150_v22, %v6454_v24  ;;  %v8838_v27 = vpop.f32.mrb[79].mxu1 }
0x4c89   :  { %v9660_v27 = vpack.c.bf16 %v184_v20, %v183_v36 }
0x4c8a   :  { %v6459_v35 = vmin.f32 %v6455_v11, 0.0  ;;  %vm6458_vm8 = vcmp.gt.f32.partialorder %v6455_v11, 0.0 }
0x4c8c   :  { %v6460_v37 = vmul.f32 1.442695, %v6459_v35  ;;  %v185_v35 = vld [vmem:[%s11509_s18 + $0x20] sm:$0xff] }
0x4c8e   :  { %9862 = vpow2.f32 %v6460_v37  ;;  %v186_v37 = vld [vmem:[%s11509_s18 + $0x28] sm:$0xff] }
0x4c98   :  { %v9863_v26 = vpop.eup %9862 }
0x4c99   :  { %v7209_v41 = vadd.f32 -1.0, %v9863_v26  ;;  %v9663_v26 = vpack.c.bf16 %v186_v37, %v185_v35 }
0x4c9b   :  { %v6463_v31 = vsel %vm6458_vm8, %v6455_v11, %v7209_v41  ;;  %v187_v41 = vld [vmem:[%s11509_s18 + $0x30] sm:$0xff] }
0x4c9c   :  { %8856 = vmatmul.mubr.msk.f32.vlgmr.msra.gmra.mrb[76].mxu0 %vm3096_vm3, %v6463_v31  ;;  %v188_v31 = vld [vmem:[%s11509_s18 + $0x38] sm:$0xff] }
0x4c9d   :  { %9622 = vmatpush3.bf16.msra.mxu0 %v10698_v39  ;;  %8885 = vmatprep.mubr.msk.f32.mxu0 %vm10023_vm1, %v10024_v28 }
0x4c9e   :  { %9623 = vmatprep.subr.bf16.mxu0 %v10022_v14 }
0x4ca1   :  { %9625 = vmatpush3.bf16.msra.mxu0 %v10704_v29  ;;  %v6855_v29 = vmul.f32 2.0, %v6374_v56 }
0x4ca2   :  { %9638 = vmatprep.subr.bf16.mxu0 %v10022_v14 }
0x4ca3   :  { %v6856_v57 = vadd.f32 %v6855_v29, %v11292_v52 }
0x4d6f   :  { %v6533_v49 = vpop.f32.mrb[76].mxu0 }
0x4d70   :  { %v6534_v44 = vadd.f32 %v11195_v2, %v6533_v49  ;;  %v8857_v42 = vpop.f32.mrb[77].mxu0  ;;  %v7218_v49 = vld [vmem:[%s11508_s17] ss:$0 sm:$0xff] }
0x4d72   :  { %v6538_v21 = vmin.f32 %v6534_v44, 0.0  ;;  %vm6537_vm9 = vcmp.gt.f32.partialorder %v6534_v44, 0.0 }
0x4d74   :  { %v6539_v45 = vmul.f32 1.442695, %v6538_v21 }
0x4d76   :  { %9864 = vpow2.f32 %v6539_v45 }
0x4d80   :  { %v9865_v38 = vpop.eup %9864 }
0x4d81   :  { %v7211_v51 = vadd.f32 -1.0, %v9865_v38 }
0x4d83   :  { %v6542_v39 = vsel %vm6537_vm9, %v6534_v44, %v7211_v51  ;;  %v9666_v44 = vpack.c.bf16 %v188_v31, %v187_v41 }
0x4d84   :  { %8875 = vmatmul.mubr.msk.f32.vlgmr.msra.gmra.mrb[80].mxu1 %vm3096_vm3, %v6542_v39 }
0x4d85   :  { %9628 = vmatpush3.bf16.msra.mxu1 %v10729_v55  ;;  %8904 = vmatprep.mubr.msk.f32.mxu1 %vm10023_vm1, %v10024_v28 }
0x4d86   :  { %9629 = vmatprep.subr.bf16.mxu1 %v10022_v14 }
0x4d89   :  { %9631 = vmatpush3.bf16.msra.mxu1 %v10739_v59 }
0x4d8a   :  { %9632 = vmatprep.subr.bf16.mxu1 %v10022_v14 }
0x4d8d   :  { %9634 = vmatpush3.bf16.msra.mxu1 %v10749_v62 }
0x4d8e   :  { %9635 = vmatprep.subr.bf16.mxu1 %v10022_v14 }
0x4d91   :  { %9637 = vmatpush3.bf16.msra.mxu1 %v10759_v1 }
0x4d92   :  { %9650 = vmatprep.subr.bf16.mxu1 %v10022_v14 }
0x4e57   :  { %v6612_v43 = vpop.f32.mrb[80].mxu1 }
0x4e58   :  { %v6613_v55 = vadd.f32 %v11212_v40, %v6612_v43  ;;  %v8876_v7 = vpop.f32.mrb[81].mxu1 }
0x4e5a   :  { %v6616_v58 = vmul.f32 0.083333336, %v6613_v55  ;;  %v6857_v50 = vmul.f32 2.0, %v6613_v55 }
0x4e5c   :  { %6618 = vrot.lane.b32.xlu1 %v6616_v58, %s10026_s7  ;;  %v11367_v59 = vadd.f32 %v6857_v50, %v6856_v57  ;;  %v7224_v50 = vld [vmem:[%s11510_s19] ss:$0 sm:$0xff] }
0x4ece   :  { %v6619_v62 = vpop.permute.xlu1 %6618 }
0x4ecf   :  { %v6621_v60 = vadd.f32 %v6619_v62, %v11253_v19 }
0x4ed1   :  { %6623 = vrot.lane.b32.xlu0 %v6621_v60, %s10027_s29 }
0x4f43   :  { %v6624_v1 = vpop.permute.xlu0 %6623 }
0x4f44   :  { %8886 = vmatmul.mubr.msk.f32.vlgmr.msra.gmra.mrb[78].mxu0 %vm395_vm2, %v6624_v1 }
0x4f45   :  { %9640 = vmatpush3.bf16.msra.mxu0 %v10779_v17  ;;  %8923 = vmatprep.mubr.msk.f32.mxu0 %vm10023_vm1, %v10024_v28 }
0x4f46   :  { %9641 = vmatprep.subr.bf16.mxu0 %v10022_v14 }
0x4f49   :  { %9643 = vmatpush3.bf16.msra.mxu0 %v10789_v25  ;;  %v176_v25 = vld [vmem:[%s11507_s16] sm:$0xff] }
0x4f4a   :  { %9644 = vmatprep.subr.bf16.mxu0 %v10022_v14 }
0x4f4d   :  { %9646 = vmatpush3.bf16.msra.mxu0 %v10799_v30  ;;  %v177_v30 = vld [vmem:[%s11507_s16 + $0x8] sm:$0xff] }
0x4f4e   :  { %9647 = vmatprep.subr.bf16.mxu0 %v10022_v14 }
0x4f51   :  { %9649 = vmatpush3.bf16.msra.mxu0 %v10809_v23  ;;  %v9651_v23 = vpack.c.bf16 %v177_v30, %v176_v25 }
0x4f52   :  { %9656 = vmatprep.subr.bf16.mxu0 %v10022_v14 }
0x5017   :  { %v6693_v52 = vpop.f32.mrb[78].mxu0 }
0x5018   :  { %v6694_v17 = vadd.f32 %v11150_v22, %v6693_v52  ;;  %v8887_v61 = vpop.f32.mrb[79].mxu0  ;;  %v178_v22 = vld [vmem:[%s11507_s16 + $0x10] sm:$0xff] }
0x5019   :  { %v9654_v8 = vpack.c.bf16 %v179_v5, %v178_v22 }
0x501a   :  { %v6698_v63 = vmin.f32 %v6694_v17, 0.0  ;;  %vm6697_vm10 = vcmp.gt.f32.partialorder %v6694_v17, 0.0 }
0x501c   :  { %v6699_v0 = vmul.f32 1.442695, %v6698_v63 }
0x501e   :  { %9866 = vpow2.f32 %v6699_v0 }
0x5028   :  { %v9867_v3 = vpop.eup %9866 }
0x5029   :  { %v7214_v4 = vadd.f32 -1.0, %v9867_v3 }
0x502b   :  { %v6702_v6 = vsel %vm6697_vm10, %v6694_v17, %v7214_v4 }
0x502c   :  { %8905 = vmatmul.mubr.msk.f32.vlgmr.msra.gmra.mrb[82].mxu1 %vm3096_vm3, %v6702_v6 }
0x502d   :  { %9652 = vmatpush3.bf16.msra.mxu1 %v9651_v23  ;;  %8934 = vmatprep.mubr.msk.f32.mxu1 %vm10023_vm1, %v10024_v28 }
0x502e   :  { %9653 = vmatprep.subr.bf16.mxu1 %v10022_v14 }
0x5031   :  { %9655 = vmatpush3.bf16.msra.mxu1 %v9654_v8 }
0x5034   :  { %8935 = vmatmul.mubr.msk.f32.vlgmr.msra.gmra.mrb[84].mxu1 %vm395_vm2, %v10717_v54 }
0x5035   :  { %8937 = vmatprep.mubr.msk.f32.mxu1 %vm10023_vm1, %v10024_v28 }
0x5038   :  { %8938 = vmatmul.mubr.msk.f32.gmra.mrb[86].mxu1 %vm395_vm2, %v10948_v12 }
0x5039   :  { %8940 = vmatprep.mubr.msk.f32.mxu1 %vm10023_vm1, %v10024_v28 }
0x503c   :  { %8941 = vmatmul.mubr.msk.f32.gmra.mrb[88].mxu1 %vm395_vm2, %v11098_v32 }
0x503d   :  { %8943 = vmatprep.mubr.msk.f32.mxu1 %vm10023_vm1, %v10024_v28 }
0x5040   :  { %8944 = vmatmul.mubr.msk.f32.gmra.mrb[90].mxu1 %vm395_vm2, %v11257_v47  ;;  %v182_v47 = vld [vmem:[%s11509_s18 + $0x8] sm:$0xff] }
0x5041   :  { %8946 = vmatprep.mubr.msk.f32.mxu1 %vm10023_vm1, %v10024_v28  ;;  %v9657_v33 = vpack.c.bf16 %v182_v47, %v181_v46 }
0x50ff   :  { %v6772_v54 = vpop.f32.mrb[82].mxu1 }
0x5100   :  { %v6773_v9 = vadd.f32 %v11195_v2, %v6772_v54  ;;  %v8906_v34 = vpop.f32.mrb[83].mxu1 }
0x5102   :  { %v6777_v12 = vmin.f32 %v6773_v9, 0.0  ;;  %vm6776_vm11 = vcmp.gt.f32.partialorder %v6773_v9, 0.0 }
0x5104   :  { %v6778_v10 = vmul.f32 1.442695, %v6777_v12 }
0x5106   :  { %9868 = vpow2.f32 %v6778_v10 }
0x5107   :  { %v6943_v13 = vpop.f32.mrb[84].mxu1 }
0x5108   :  { %v8936_v15 = vpop.f32.mrb[85].mxu1  ;;  %v6944_v42 = vadd.f32 %v7218_v49, %v6943_v13 }
0x510a   :  { %v6967_v21 = vmax.f32 %v6944_v42, 0.0 }
0x510b   :  { %v6948_v53 = vpop.f32.mrb[86].mxu1 }
0x510c   :  { %v8939_v32 = vpop.f32.mrb[87].mxu1  ;;  %v6949_v45 = vadd.f32 %v7218_v49, %v6948_v53 }
0x510e   :  { %v6968_v38 = vmax.f32 %v6949_v45, 0.0 }
0x510f   :  { %v6953_v18 = vpop.f32.mrb[88].mxu1 }
0x5110   :  { %v9869_v56 = vpop.eup %9868  ;;  %v8942_v16 = vpop.f32.mrb[89].mxu1  ;;  %v6954_v51 = vadd.f32 %v7218_v49, %v6953_v18 }
0x5111   :  { %v7216_v2 = vadd.f32 -1.0, %v9869_v56 }
0x5112   :  { %v6969_v39 = vmax.f32 %v6954_v51, 0.0 }
0x5113   :  { %v6781_v48 = vsel %vm6776_vm11, %v6773_v9, %v7216_v2  ;;  %v6958_v24 = vpop.f32.mrb[90].mxu1 }
0x5114   :  { %v8945_v11 = vpop.f32.mrb[91].mxu1  ;;  %8924 = vmatmul.mubr.msk.f32.vlgmr.msra.gmra.mrb[80].mxu0 %vm3096_vm3, %v6781_v48  ;;  %v6959_v29 = vadd.f32 %v7218_v49, %v6958_v24 }
0x5115   :  { %9658 = vmatpush3.bf16.msra.mxu0 %v9657_v33  ;;  %8965 = vmatprep.mubr.msk.f32.mxu0 %vm10023_vm1, %v10024_v28 }
0x5116   :  { %9659 = vmatprep.subr.bf16.mxu0 %v10022_v14 }
0x5119   :  { %9661 = vmatpush3.bf16.msra.mxu0 %v9660_v27 }
0x511a   :  { %9662 = vmatprep.subr.bf16.mxu0 %v10022_v14 }
0x511d   :  { %9664 = vmatpush3.bf16.msra.mxu0 %v9663_v26 }
0x511e   :  { %9665 = vmatprep.subr.bf16.mxu0 %v10022_v14  ;;  %v6970_v14 = vmax.f32 %v6959_v29, 0.0 }
0x5121   :  { %9667 = vmatpush3.bf16.msra.mxu0 %v9666_v44 }
0x5124   :  { %8966 = vmatmul.mubr.msk.f32.vlgmr.msra.gmra.mrb[82].mxu0 %vm3096_vm3, %v6967_v21 }
0x5125   :  { %8968 = vmatprep.mubr.msk.f32.mxu0 %vm10023_vm1, %v10024_v28 }
0x5128   :  { %8969 = vmatmul.mubr.msk.f32.gmra.mrb[84].mxu0 %vm3096_vm3, %v6968_v38 }
0x5129   :  { %8971 = vmatprep.mubr.msk.f32.mxu0 %vm10023_vm1, %v10024_v28 }
0x512c   :  { %8972 = vmatmul.mubr.msk.f32.gmra.mrb[86].mxu0 %vm3096_vm3, %v6969_v39 }
0x512d   :  { %8974 = vmatprep.mubr.msk.f32.mxu0 %vm10023_vm1, %v10024_v28 }
0x5130   :  { %8975 = vmatmul.mubr.msk.f32.gmra.mrb[88].mxu0 %vm3096_vm3, %v6970_v14 }
0x5131   :  { %8977 = vmatprep.mubr.msk.f32.mxu0 %vm10023_vm1, %v10024_v28 }
0x51e7   :  { %v6851_v43 = vpop.f32.mrb[80].mxu0 }
0x51e8   :  { %v6852_v55 = vadd.f32 %v11212_v40, %v6851_v43  ;;  %v8925_v7 = vpop.f32.mrb[81].mxu0 }
0x51ea   :  { %v6859_v57 = vadd.f32 %v11367_v59, %v6852_v55 }
0x51ec   :  { %v6860_v58 = vmul.f32 0.013888889, %v6859_v57 }
0x51ee   :  { %6862 = vrot.lane.b32.xlu1 %v6860_v58, %s10026_s7 }
0x51f7   :  { %v7059_v62 = vpop.f32.mrb[82].mxu0 }
0x51f8   :  { %v7060_v60 = vadd.f32 %v7224_v50, %v7059_v62  ;;  %v8967_v1 = vpop.f32.mrb[83].mxu0 }
0x51fa   :  { %7083 = vst.msk [vmem:[%s11511_s20] sm:$0xff] %vm200_vm0, %v7060_v60 }
0x51fb   :  { %v7064_v28 = vpop.f32.mrb[84].mxu0 }
0x51fc   :  { %v7065_v40 = vadd.f32 %v7224_v50, %v7064_v28  ;;  %v8970_v52 = vpop.f32.mrb[85].mxu0 }
0x51fe   :  { %7084 = vst.msk [vmem:[%s11511_s20 + $0x8] sm:$0xff] %vm200_vm0, %v7065_v40 }
0x51ff   :  { %v7069_v59 = vpop.f32.mrb[86].mxu0 }
0x5200   :  { %v7070_v17 = vadd.f32 %v7224_v50, %v7069_v59  ;;  %v8973_v61 = vpop.f32.mrb[87].mxu0 }
0x5202   :  { %7085 = vst.msk [vmem:[%s11511_s20 + $0x10] sm:$0xff] %vm200_vm0, %v7070_v17 }
0x5203   :  { %v7074_v63 = vpop.f32.mrb[88].mxu0 }
0x5204   :  { %v7075_v0 = vadd.f32 %v7224_v50, %v7074_v63  ;;  %v8976_v25 = vpop.f32.mrb[89].mxu0 }
0x5206   :  { %7086 = vst.msk [vmem:[%s11511_s20 + $0x18] sm:$0xff] %vm200_vm0, %v7075_v0 }
0x5260   :  { %v6863_v30 = vpop.permute.xlu1 %6862 }
0x5261   :  { %v6865_v3 = vadd.f32 %v6863_v30, %v11253_v19 }
0x5263   :  { %6873 = vrot.lane.b32.xlu0 %v6865_v3, %s10027_s29 }
0x52d5   :  { %v6874_v4 = vpop.permute.xlu0 %6873 }
0x52d6   :  { %8947 = vmatmul.mubr.msk.f32.gmra.mrb[92].mxu1 %vm395_vm2, %v6874_v4 }
0x53a9   :  { %v6963_v23 = vpop.f32.mrb[92].mxu1 }
0x53aa   :  { %v6964_v22 = vadd.f32 %v7218_v49, %v6963_v23  ;;  %v8948_v5 = vpop.f32.mrb[93].mxu1 }
0x53ac   :  { %v6971_v6 = vmax.f32 %v6964_v22, 0.0 }
0x53ae   :  { %8978 = vmatmul.mubr.msk.f32.gmra.mrb[90].mxu0 %vm3096_vm3, %v6971_v6 }
0x5481   :  { %v7079_v8 = vpop.f32.mrb[90].mxu0 }
0x5482   :  { %v7080_v54 = vadd.f32 %v7224_v50, %v7079_v8  ;;  %v8979_v9 = vpop.f32.mrb[91].mxu0 }
0x5484   :  { %7087 = vst.msk [vmem:[%s11511_s20 + $0x20] sm:$0xff] %vm200_vm0, %v7080_v54 }
0x5485   :  { %7092 = vsyncpa [#allocation3], 1 }
0x5486   :  { %7093 = vsyncpa [#allocation5], 1 }
0x5487   :  { %7094 = vsyncpa [#allocation8], 1 }
0x5488   :  { %7095 = vsyncpa [#allocation11], 1 }

</bundles_post_ra>
